<compile_context>
chip_gen: v7x
topology: tpu7x:2x2x1
jax: 0.10.0
libtpu: 0.0.40
codegen_flags: <defaults>
</compile_context>

<pallas_src>
import functools

import jax
import jax.numpy as jnp
from jax.experimental import pallas as pl
from jax.experimental.pallas import tpu as pltpu

K0 = 3                     # kernel[0]  (spatial kernel size)
K1 = 3                     # kernel[1]  (temporal kernel size)
PAD0 = (K0 - 1) // 2
PAD1 = (K1 - 1) // 2
NTAPS = K0 * K0 * K1
SVD_K = 10                 # sketch rank of simple_randomized_torch_svd

# Below this m = H*W a pallas_call dispatch costs more than the (n,k)@(k,m)
# matmul itself, so the SVT reconstruction falls back to plain XLA.
PALLAS_SVT_MIN_M = 16 * 1024


def _vmem_limit_bytes():
    """Per-generation VMEM planning number: ~75% of physical per-core VMEM
    (~96 MiB on v5e/v6e's 128 MiB, ~48 MiB on v7x's 64 MiB)."""
    cap = 64 * 1024 * 1024
    try:
        cap = int(getattr(pltpu.get_tpu_info(), "vmem_capacity_bytes", cap))
    except Exception:
        pass
    return min((cap * 3) // 4, 96 * 1024 * 1024)


# --------------------------------------------------------------------------
# Kernel 1: fused complex-valued 3D convolution
#           Ltmp = conv1(x) + conv2(L) + conv3(x - L)
#                = conv_{w1+w3}(x) + conv_{w2-w3}(L) + combined bias
# Lane-dense layout: each plane is the row-major flattened H*W spatial slice on
# the lane axis; TB output time slices (sublanes) are produced per grid step.
# --------------------------------------------------------------------------
def _ltmp_kernel(w_ref, b_ref, v_ref, o_ref, *, W, TB, HW):
    """w_ref: SMEM (4*NTAPS,) combined weights [xR, xI, LR, LI], each a
              (K0, K0, K1) filter flattened row-major.
       b_ref: SMEM (2,) combined biases [sum(bR - bI), sum(bR + bI)].
       v_ref: VMEM block (1, 4, TB+2, HWP): [xR, xI, LR, LI] planes, temporally
              windowed for this grid step, with a (W+1)-lane zero apron on each
              side of the flattened H*W axis (HWP = HW + 2*(W+1)).
       o_ref: VMEM block (2, 1, TB, HW): [0]=real, [1]=imag output time slices."""
    padl = W + 1

    # Column-boundary masks: they (together with the zero apron) implement the
    # spatial zero padding fully inside the kernel.  Row boundaries need no
    # mask: the flat shift lands in the zero apron there.
    col = jax.lax.broadcasted_iota(jnp.int32, (TB, HW), 1) % W
    m_col = {-1: (col >= 1).astype(jnp.float32),
             0: None,
             1: (col <= W - 2).astype(jnp.float32)}

    acc_r = jnp.zeros((TB, HW), jnp.float32)
    acc_i = jnp.zeros((TB, HW), jnp.float32)

    for di in range(K0):              # spatial row tap
        for dj in range(K0):          # spatial col tap
            off = (di - 1) * W + (dj - 1)          # flat spatial shift
            lo = padl + off                        # static lane window start
            # Accumulate this spatial tap over (operand, temporal tap) first,
            # then mask once -> mask work hoisted out of the inner loops.
            pacc_r = jnp.zeros((TB, HW), jnp.float32)
            pacc_i = jnp.zeros((TB, HW), jnp.float32)
            for m in range(2):        # operand: 0 = x (w1+w3), 1 = L (w2-w3)
                base_r = (2 * m) * NTAPS
                base_i = (2 * m + 1) * NTAPS
                for dt in range(K1):  # temporal tap (static sublane offset)
                    idx = di * (K0 * K1) + dj * K1 + dt
                    w_r = w_ref[base_r + idx]
                    w_i = w_ref[base_i + idx]
                    # Static windowed loads; the lane offset lowers to an XLU
                    # rotate/copy which is idle in this VALU-bound kernel.
                    sr = v_ref[0, 2 * m, dt:dt + TB, lo:lo + HW]
                    si = v_ref[0, 2 * m + 1, dt:dt + TB, lo:lo + HW]
                    # TODO(synk): on v6e/v7x sr/si could be bf16 (accumulate
                    # f32) for ~2x VALU throughput; keep f32 on v5e.
                    # complex conv: yR = R*wR - I*wI ; yI = I*wR + R*wI
                    pacc_r = pacc_r + w_r * sr - w_i * si
                    pacc_i = pacc_i + w_r * si + w_i * sr
            mask = m_col[dj - 1]
            if mask is None:
                acc_r = acc_r + pacc_r
                acc_i = acc_i + pacc_i
            else:
                acc_r = acc_r + mask * pacc_r
                acc_i = acc_i + mask * pacc_i

    # single fused bias add (replaces 3 per-conv bias adds); dense lane stores
    o_ref[0, 0] = acc_r + b_ref[0]
    o_ref[1, 0] = acc_i + b_ref[1]


def fused_ltmp(conv_w_flat, conv_b, x, L, *, t_block=2):
    """Returns Bt = Ltmp.view(H*W, T2)^T of shape (T2, H*W):
       rows [0:T] are the real time slices, rows [T:2T] the imaginary ones,
       each row a row-major flattened (H, W) plane (lane-dense)."""
    H, W, T2 = x.shape
    T = T2 // 2
    HW = H * W
    TB = t_block if (0 < t_block <= T and T % t_block == 0) else T
    nTB = T // TB
    PADL = W + 1                    # spatial zero apron on the flat lane axis
    HWP = HW + 2 * PADL

    # Reassociate: conv3 is linear, so conv3(x - L) = conv3(x) - conv3(L).
    w = conv_w_flat.reshape(6, NTAPS).astype(jnp.float32)
    w_comb = jnp.concatenate([w[0] + w[4], w[1] + w[5],      # x weights (R, I)
                              w[2] - w[4], w[3] - w[5]])      # L weights (R, I)
    b = conv_b.astype(jnp.float32)
    b_comb = jnp.stack([(b[0] - b[1]) + (b[2] - b[3]) + (b[4] - b[5]),
                        (b[0] + b[1]) + (b[2] + b[3]) + (b[4] + b[5])])

    def flat_planes(v):             # (H, W, T2) -> real (T, HW), imag (T, HW)
        vr = jnp.transpose(v[..., :T], (2, 0, 1)).reshape(T, HW)
        vi = jnp.transpose(v[..., T:], (2, 0, 1)).reshape(T, HW)
        return vr, vi

    xr, xi = flat_planes(x)
    lr, li = flat_planes(L)
    # One layout-prep pass: stack operands/components, add the 1-plane temporal
    # pad and the (W+1)-lane spatial apron, and materialize the 2-plane temporal
    # halo per block so BlockSpec windows are disjoint.
    vol = jnp.stack([xr, xi, lr, li], axis=0)                       # (4, T, HW)
    vol = jnp.pad(vol, ((0, 0), (PAD1, PAD1), (PADL, PADL)))        # (4, T+2, HWP)
    vol_w = jnp.stack([vol[:, tb * TB: tb * TB + TB + 2, :]
                       for tb in range(nTB)], axis=0)               # (nTB, 4, TB+2, HWP)

    kernel = functools.partial(_ltmp_kernel, W=W, TB=TB, HW=HW)
    smem = pl.BlockSpec(memory_space=pltpu.MemorySpace.SMEM)
    out = pl.pallas_call(
        kernel,
        out_shape=jax.ShapeDtypeStruct((2, nTB, TB, HW), jnp.float32),
        grid=(nTB,),
        in_specs=[smem, smem,
                  pl.BlockSpec((1, 4, TB + 2, HWP), lambda tb: (tb, 0, 0, 0))],
        out_specs=pl.BlockSpec((2, 1, TB, HW), lambda tb: (0, tb, 0, 0)),
        compiler_params=pltpu.CompilerParams(
            dimension_semantics=("parallel",),      # temporal blocks over v7x's 2 TCs
            vmem_limit_bytes=_vmem_limit_bytes()),
    )(w_comb, b_comb, vol_w)
    # TODO(synk): at production H*W add a second grid axis over lane tiles of
    # the flat spatial axis (vreg-resident accumulator tiles + halo'd windows).
    return out.reshape(T2, HW)      # contiguous merge: (2, nTB*TB, HW) -> (T2, HW)


# --------------------------------------------------------------------------
# Kernel 2: SVT low-rank reconstruction, output transposed so m = H*W is on
#           lanes.  Only the single (n, k) @ (k, m) MXU matmul lives in Pallas;
#           the tiny factor math stays in XLA.
# --------------------------------------------------------------------------
def _svt_matmul_kernel(f_ref, qt_ref, o_ref):
    """f_ref: VMEM (n, k) = Vh^T @ (relu(s - th*s0) * U_hat^T)
       qt_ref: VMEM (k, TM) tile of Q^T
       o_ref : VMEM (n, TM) tile of L^T (lane-dense in m)."""
    o_ref[...] = jnp.dot(f_ref[...], qt_ref[...],
                         preferred_element_type=jnp.float32)


def svt_reconstruct_t(thresh, U_hat, s, Vh, Q, *, force_pallas=False):
    """Returns L^T of shape (n, m) with m = H*W on the lane axis."""
    k, n = U_hat.shape
    m = Q.shape[0]
    s_th = jnp.maximum(s - thresh, 0.0)
    # Tiny (n,n)@(n,k) factor product: left to XLA (a few-percent MXU fill; a
    # pallas dispatch would cost more than the math).
    F = jnp.dot(Vh.T.astype(jnp.float32),
                (s_th[:, None] * U_hat.T).astype(jnp.float32))       # (n, k)
    Qt = Q.T.astype(jnp.float32)                                     # (k, m)

    if m < PALLAS_SVT_MIN_M and not force_pallas:
        return jnp.dot(F, Qt)       # dispatch cost beats the kernel at small m

    if m % 2048 == 0:
        TM = 2048
    elif m % 512 == 0:
        TM = 512
    elif m % 128 == 0:
        TM = 128
    else:
        TM = m
    return pl.pallas_call(
        _svt_matmul_kernel,
        out_shape=jax.ShapeDtypeStruct((n, m), jnp.float32),
        grid=(m // TM,),
        in_specs=[pl.BlockSpec((n, k), lambda i: (0, 0)),
                  pl.BlockSpec((k, TM), lambda i: (0, i))],
        out_specs=pl.BlockSpec((n, TM), lambda i: (0, i)),
        compiler_params=pltpu.CompilerParams(
            dimension_semantics=("parallel",),
            vmem_limit_bytes=_vmem_limit_bytes()),
    )(F, Qt)


# --------------------------------------------------------------------------
# svtC: randomized SVD sketch (XLA: tiny matmuls + QR + SVD) -> fused
#       threshold / reconstruction.  Operates on B^T = Ltmp^T (T2, H*W).
# --------------------------------------------------------------------------
def svtC_t(Bt, th, omega):
    n, m = Bt.shape
    # The torch code's assignment US[:, :min(m,n)] = U[:, :min(m,n)] only
    # type-checks when min(m, n) <= k (=10); keep that regime.
    assert m >= n and n <= SVD_K, "svtC expects H*W >= T2 and T2 <= 10"
    # TODO(synk): QR / SVD factorizations and the <=10-wide sketch matmuls have
    # no useful Pallas equivalent at these shapes; left to XLA.
    Y = jnp.dot(Bt.T, omega)                                 # (m, k) sketch B @ Omega
    Q, _ = jnp.linalg.qr(Y)                                  # (m, k)
    small = jnp.dot(Q.T, Bt.T)                               # (k, n) Q^T @ B
    U_hat, s, Vh = jnp.linalg.svd(small, full_matrices=False)    # (k,n),(n,),(n,n)
    thresh = th * s[0]
    return svt_reconstruct_t(thresh, U_hat, s, Vh, Q)        # (n, m) == L^T


# --------------------------------------------------------------------------
# ISTACell.forward
# --------------------------------------------------------------------------
def ista_cell_forward(params, x, L):
    H, W, T2 = x.shape
    # Ltmp = conv1(x) + conv2(L) + conv3(x - L), already as Bt = (T2, H*W)
    Bt = fused_ltmp(params["conv_w"], params["conv_b"], x, L)
    # thL = sigmoid(exp_L) * coef_L   (scalar parameter glue)
    thL = jax.nn.sigmoid(params["exp_L"]) * params["coef_L"]
    Lt_new = svtC_t(Bt, thL, params["omega"])                # (T2, H*W)
    L_new = jnp.transpose(Lt_new.reshape(T2, H, W), (1, 2, 0))   # back to (H, W, T2)
    # data[0] unchanged, data[1] updated
    return x, L_new


# --------------------------------------------------------------------------
# Deterministic parameter init (matches shapes in ISTACell.__init__)
# --------------------------------------------------------------------------
def init_params(key, coef_L=0.4):
    kw, kb = jax.random.split(key)
    fan_in = K0 * K0 * K1
    bound = 1.0 / (fan_in ** 0.5)            # PyTorch default conv init range
    # order: [conv1.convR, conv1.convI, conv2.convR, conv2.convI, conv3.convR, conv3.convI]
    conv_w = jax.random.uniform(kw, (6, K0, K0, K1), jnp.float32, -bound, bound)
    conv_b = jax.random.uniform(kb, (6,), jnp.float32, -bound, bound)
    return {
        "conv_w": conv_w.reshape(-1),
        "conv_b": conv_b,
        "exp_L": jnp.float32(0.0),           # nn.Parameter(exp_L) scalar
        "coef_L": jnp.float32(coef_L),
    }


# --------------------------------------------------------------------------
# Pure-JAX references (correctness checks)
# --------------------------------------------------------------------------
def _conv3d_same(vol, w, b):
    out = jax.lax.conv_general_dilated(
        vol[None, None], w[None, None],
        window_strides=(1, 1, 1),
        padding=((PAD0, PAD0), (PAD0, PAD0), (PAD1, PAD1)),
        dimension_numbers=("NCDHW", "OIDHW", "NCDHW"))
    return out[0, 0] + b


def ref_ltmp(conv_w_flat, conv_b, x, L):
    """Literal 3-complex-conv reference in (H, W, T2) layout."""
    T = x.shape[-1] // 2
    w = conv_w_flat.reshape(6, K0, K0, K1)

    def complex_conv(wr, wi, br, bi, v):
        vr, vi = v[..., :T], v[..., T:]
        cr = _conv3d_same(vr, wr, br) - _conv3d_same(vi, wi, bi)
        ci = _conv3d_same(vi, wr, br) + _conv3d_same(vr, wi, bi)
        return jnp.concatenate([cr, ci], axis=-1)

    S = x - L
    return (complex_conv(w[0], w[1], conv_b[0], conv_b[1], x)
            + complex_conv(w[2], w[3], conv_b[2], conv_b[3], L)
            + complex_conv(w[4], w[5], conv_b[4], conv_b[5], S))


if __name__ == "__main__":
    key = jax.random.PRNGKey(0)
    k_p, k_x, k_L, k_o, k_q, k_s = jax.random.split(key, 6)

    H, W, T = 16, 16, 4            # small shapes; T2 = 8 <= SVD_K as required
    T2 = 2 * T

    x = jax.random.normal(k_x, (H, W, T2), jnp.float32)
    L = 0.1 * jax.random.normal(k_L, (H, W, T2), jnp.float32)

    params = init_params(k_p)
    # deterministic stand-in for torch.rand((n, k)) inside the randomized SVD
    params["omega"] = jax.random.uniform(k_o, (T2, SVD_K), jnp.float32)

    # 1) fused lane-dense conv kernel vs literal 3-conv lax reference
    Bt = fused_ltmp(params["conv_w"], params["conv_b"], x, L)         # (T2, H*W)
    ltmp_hwt = jnp.transpose(Bt.reshape(T2, H, W), (1, 2, 0))          # -> (H, W, T2)
    ltmp_ref = ref_ltmp(params["conv_w"], params["conv_b"], x, L)
    assert jnp.allclose(ltmp_hwt, ltmp_ref, atol=2e-3, rtol=2e-3)

    # 2) SVT reconstruction kernel (forced Pallas path) vs pure-JAX reference
    Qf, _ = jnp.linalg.qr(jax.random.normal(k_q, (H * W, SVD_K), jnp.float32))
    small = jax.random.normal(k_s, (SVD_K, T2), jnp.float32)
    U_hat, s, Vh = jnp.linalg.svd(small, full_matrices=False)
    thresh = 0.3 * s[0]
    Lt = svt_reconstruct_t(thresh, U_hat, s, Vh, Qf, force_pallas=True)   # (T2, H*W)
    s_th = jnp.maximum(s - thresh, 0.0)
    L_ref = (Qf @ (U_hat * s_th)) @ Vh                                  # (H*W, T2)
    assert jnp.allclose(Lt, L_ref.T, atol=1e-3, rtol=1e-3)

    # 3) full ISTACell forward
    x_out, L_out = ista_cell_forward(params, x, L)
    jax.block_until_ready(L_out)
    assert x_out.shape == (H, W, T2) and L_out.shape == (H, W, T2)
    assert jnp.all(jnp.isfinite(L_out))
    print("KERNEL_OK")
</pallas_src>

<mosaic_0001>
module attributes {stable_mosaic.version = 11 : i64} {
  func.func @_ltmp_kernel(%arg0: i32, %arg1: memref<108xf32, #tpu.memory_space<smem>>, %arg2: memref<2xf32, #tpu.memory_space<smem>>, %arg3: memref<1x4x4x290xf32, #tpu.memory_space<vmem>>, %arg4: memref<2x1x2x256xf32, #tpu.memory_space<vmem>>) attributes {dimension_semantics = [#tpu.dimension_semantics<parallel>], iteration_bounds = array<i64: 2>, scalar_prefetch = 0 : i64, scratch_operands = 0 : i64, tpu.core_type = #tpu.core_type<tc>, window_params = [{transform_indices = @transform_0, window_bounds = array<i64: 108>}, {transform_indices = @transform_1, window_bounds = array<i64: 2>}, {transform_indices = @transform_2, window_bounds = array<i64: 1, 4, 4, 290>}, {transform_indices = @transform_3, window_bounds = array<i64: 2, 1, 2, 256>}]} {
    %0 = tpu.iota {dimensions = array<i32: 1>} : vector<2x256xi32>
    %c16_i32 = arith.constant 16 : i32
    %c0_i32 = arith.constant 0 : i32
    %1 = arith.cmpi eq, %c16_i32, %c0_i32 : i32
    %c1_i32 = arith.constant 1 : i32
    %2 = arith.select %1, %c1_i32, %c16_i32 : i32
    %3 = vector.broadcast %2 : i32 to vector<2x256xi32>
    %4 = arith.remsi %0, %3 : vector<2x256xi32>
    %c0_i32_0 = arith.constant 0 : i32
    %5 = vector.broadcast %c0_i32_0 : i32 to vector<2x256xi32>
    %6 = arith.cmpi ne, %4, %5 : vector<2x256xi32>
    %c0_i32_1 = arith.constant 0 : i32
    %7 = vector.broadcast %c0_i32_1 : i32 to vector<2x256xi32>
    %8 = arith.cmpi slt, %4, %7 : vector<2x256xi32>
    %c0_i32_2 = arith.constant 0 : i32
    %9 = arith.cmpi slt, %2, %c0_i32_2 : i32
    %10 = vector.broadcast %9 : i1 to vector<2x256xi1>
    %11 = vector.broadcast %10 : vector<2x256xi1> to vector<2x256xi1>
    %12 = arith.xori %8, %11 : vector<2x256xi1>
    %13 = arith.andi %12, %6 : vector<2x256xi1>
    %14 = vector.broadcast %2 : i32 to vector<2x256xi32>
    %15 = arith.addi %4, %14 : vector<2x256xi32>
    %16 = arith.select %13, %15, %4 : vector<2x256xi1>, vector<2x256xi32>
    %c1_i32_3 = arith.constant 1 : i32
    %17 = vector.broadcast %c1_i32_3 : i32 to vector<2x256xi32>
    %18 = arith.cmpi sge, %16, %17 : vector<2x256xi32>
    %19 = arith.extui %18 : vector<2x256xi1> to vector<2x256xi32>
    %20 = arith.sitofp %19 : vector<2x256xi32> to vector<2x256xf32>
    %c14_i32 = arith.constant 14 : i32
    %21 = vector.broadcast %c14_i32 : i32 to vector<2x256xi32>
    %22 = arith.cmpi sle, %16, %21 : vector<2x256xi32>
    %23 = arith.extui %22 : vector<2x256xi1> to vector<2x256xi32>
    %24 = arith.sitofp %23 : vector<2x256xi32> to vector<2x256xf32>
    %cst = arith.constant 0.000000e+00 : f32
    %25 = vector.broadcast %cst : f32 to vector<2x256xf32>
    %cst_4 = arith.constant 0.000000e+00 : f32
    %26 = vector.broadcast %cst_4 : f32 to vector<2x256xf32>
    %cst_5 = arith.constant 0.000000e+00 : f32
    %27 = vector.broadcast %cst_5 : f32 to vector<2x256xf32>
    %cst_6 = arith.constant 0.000000e+00 : f32
    %28 = vector.broadcast %cst_6 : f32 to vector<2x256xf32>
    %c0 = arith.constant 0 : index
    %29 = memref.load %arg1[%c0] : memref<108xf32, #tpu.memory_space<smem>>
    %c27 = arith.constant 27 : index
    %30 = memref.load %arg1[%c27] : memref<108xf32, #tpu.memory_space<smem>>
    %c0_7 = arith.constant 0 : index
    %c0_8 = arith.constant 0 : index
    %c0_9 = arith.constant 0 : index
    %c0_10 = arith.constant 0 : index
    %31 = vector.load %arg3[%c0_7, %c0_8, %c0_9, %c0_10] : memref<1x4x4x290xf32, #tpu.memory_space<vmem>>, vector<1x1x2x256xf32>
    %32 = vector.shape_cast %31 : vector<1x1x2x256xf32> to vector<2x256xf32>
    %c0_11 = arith.constant 0 : index
    %c1 = arith.constant 1 : index
    %c0_12 = arith.constant 0 : index
    %c0_13 = arith.constant 0 : index
    %33 = vector.load %arg3[%c0_11, %c1, %c0_12, %c0_13] : memref<1x4x4x290xf32, #tpu.memory_space<vmem>>, vector<1x1x2x256xf32>
    %34 = vector.shape_cast %33 : vector<1x1x2x256xf32> to vector<2x256xf32>
    %35 = vector.broadcast %29 : f32 to vector<2x256xf32>
    %36 = arith.mulf %35, %32 : vector<2x256xf32>
    %37 = arith.addf %27, %36 : vector<2x256xf32>
    %38 = vector.broadcast %30 : f32 to vector<2x256xf32>
    %39 = arith.mulf %38, %34 : vector<2x256xf32>
    %40 = arith.subf %37, %39 : vector<2x256xf32>
    %41 = vector.broadcast %29 : f32 to vector<2x256xf32>
    %42 = arith.mulf %41, %34 : vector<2x256xf32>
    %43 = arith.addf %28, %42 : vector<2x256xf32>
    %44 = vector.broadcast %30 : f32 to vector<2x256xf32>
    %45 = arith.mulf %44, %32 : vector<2x256xf32>
    %46 = arith.addf %43, %45 : vector<2x256xf32>
    %c1_14 = arith.constant 1 : index
    %47 = memref.load %arg1[%c1_14] : memref<108xf32, #tpu.memory_space<smem>>
    %c28 = arith.constant 28 : index
    %48 = memref.load %arg1[%c28] : memref<108xf32, #tpu.memory_space<smem>>
    %c0_15 = arith.constant 0 : index
    %c0_16 = arith.constant 0 : index
    %c1_17 = arith.constant 1 : index
    %c0_18 = arith.constant 0 : index
    %49 = vector.load %arg3[%c0_15, %c0_16, %c1_17, %c0_18] : memref<1x4x4x290xf32, #tpu.memory_space<vmem>>, vector<1x1x2x256xf32>
    %50 = vector.shape_cast %49 : vector<1x1x2x256xf32> to vector<2x256xf32>
    %c0_19 = arith.constant 0 : index
    %c1_20 = arith.constant 1 : index
    %c1_21 = arith.constant 1 : index
    %c0_22 = arith.constant 0 : index
    %51 = vector.load %arg3[%c0_19, %c1_20, %c1_21, %c0_22] : memref<1x4x4x290xf32, #tpu.memory_space<vmem>>, vector<1x1x2x256xf32>
    %52 = vector.shape_cast %51 : vector<1x1x2x256xf32> to vector<2x256xf32>
    %53 = vector.broadcast %47 : f32 to vector<2x256xf32>
    %54 = arith.mulf %53, %50 : vector<2x256xf32>
    %55 = arith.addf %40, %54 : vector<2x256xf32>
    %56 = vector.broadcast %48 : f32 to vector<2x256xf32>
    %57 = arith.mulf %56, %52 : vector<2x256xf32>
    %58 = arith.subf %55, %57 : vector<2x256xf32>
    %59 = vector.broadcast %47 : f32 to vector<2x256xf32>
    %60 = arith.mulf %59, %52 : vector<2x256xf32>
    %61 = arith.addf %46, %60 : vector<2x256xf32>
    %62 = vector.broadcast %48 : f32 to vector<2x256xf32>
    %63 = arith.mulf %62, %50 : vector<2x256xf32>
    %64 = arith.addf %61, %63 : vector<2x256xf32>
    %c2 = arith.constant 2 : index
    %65 = memref.load %arg1[%c2] : memref<108xf32, #tpu.memory_space<smem>>
    %c29 = arith.constant 29 : index
    %66 = memref.load %arg1[%c29] : memref<108xf32, #tpu.memory_space<smem>>
    %c0_23 = arith.constant 0 : index
    %c0_24 = arith.constant 0 : index
    %c2_25 = arith.constant 2 : index
    %c0_26 = arith.constant 0 : index
    %67 = vector.load %arg3[%c0_23, %c0_24, %c2_25, %c0_26] : memref<1x4x4x290xf32, #tpu.memory_space<vmem>>, vector<1x1x2x256xf32>
    %68 = vector.shape_cast %67 : vector<1x1x2x256xf32> to vector<2x256xf32>
    %c0_27 = arith.constant 0 : index
    %c1_28 = arith.constant 1 : index
    %c2_29 = arith.constant 2 : index
    %c0_30 = arith.constant 0 : index
    %69 = vector.load %arg3[%c0_27, %c1_28, %c2_29, %c0_30] : memref<1x4x4x290xf32, #tpu.memory_space<vmem>>, vector<1x1x2x256xf32>
    %70 = vector.shape_cast %69 : vector<1x1x2x256xf32> to vector<2x256xf32>
    %71 = vector.broadcast %65 : f32 to vector<2x256xf32>
    %72 = arith.mulf %71, %68 : vector<2x256xf32>
    %73 = arith.addf %58, %72 : vector<2x256xf32>
    %74 = vector.broadcast %66 : f32 to vector<2x256xf32>
    %75 = arith.mulf %74, %70 : vector<2x256xf32>
    %76 = arith.subf %73, %75 : vector<2x256xf32>
    %77 = vector.broadcast %65 : f32 to vector<2x256xf32>
    %78 = arith.mulf %77, %70 : vector<2x256xf32>
    %79 = arith.addf %64, %78 : vector<2x256xf32>
    %80 = vector.broadcast %66 : f32 to vector<2x256xf32>
    %81 = arith.mulf %80, %68 : vector<2x256xf32>
    %82 = arith.addf %79, %81 : vector<2x256xf32>
    %c54 = arith.constant 54 : index
    %83 = memref.load %arg1[%c54] : memref<108xf32, #tpu.memory_space<smem>>
    %c81 = arith.constant 81 : index
    %84 = memref.load %arg1[%c81] : memref<108xf32, #tpu.memory_space<smem>>
    %c0_31 = arith.constant 0 : index
    %c2_32 = arith.constant 2 : index
    %c0_33 = arith.constant 0 : index
    %c0_34 = arith.constant 0 : index
    %85 = vector.load %arg3[%c0_31, %c2_32, %c0_33, %c0_34] : memref<1x4x4x290xf32, #tpu.memory_space<vmem>>, vector<1x1x2x256xf32>
    %86 = vector.shape_cast %85 : vector<1x1x2x256xf32> to vector<2x256xf32>
    %c0_35 = arith.constant 0 : index
    %c3 = arith.constant 3 : index
    %c0_36 = arith.constant 0 : index
    %c0_37 = arith.constant 0 : index
    %87 = vector.load %arg3[%c0_35, %c3, %c0_36, %c0_37] : memref<1x4x4x290xf32, #tpu.memory_space<vmem>>, vector<1x1x2x256xf32>
    %88 = vector.shape_cast %87 : vector<1x1x2x256xf32> to vector<2x256xf32>
    %89 = vector.broadcast %83 : f32 to vector<2x256xf32>
    %90 = arith.mulf %89, %86 : vector<2x256xf32>
    %91 = arith.addf %76, %90 : vector<2x256xf32>
    %92 = vector.broadcast %84 : f32 to vector<2x256xf32>
    %93 = arith.mulf %92, %88 : vector<2x256xf32>
    %94 = arith.subf %91, %93 : vector<2x256xf32>
    %95 = vector.broadcast %83 : f32 to vector<2x256xf32>
    %96 = arith.mulf %95, %88 : vector<2x256xf32>
    %97 = arith.addf %82, %96 : vector<2x256xf32>
    %98 = vector.broadcast %84 : f32 to vector<2x256xf32>
    %99 = arith.mulf %98, %86 : vector<2x256xf32>
    %100 = arith.addf %97, %99 : vector<2x256xf32>
    %c55 = arith.constant 55 : index
    %101 = memref.load %arg1[%c55] : memref<108xf32, #tpu.memory_space<smem>>
    %c82 = arith.constant 82 : index
    %102 = memref.load %arg1[%c82] : memref<108xf32, #tpu.memory_space<smem>>
    %c0_38 = arith.constant 0 : index
    %c2_39 = arith.constant 2 : index
    %c1_40 = arith.constant 1 : index
    %c0_41 = arith.constant 0 : index
    %103 = vector.load %arg3[%c0_38, %c2_39, %c1_40, %c0_41] : memref<1x4x4x290xf32, #tpu.memory_space<vmem>>, vector<1x1x2x256xf32>
    %104 = vector.shape_cast %103 : vector<1x1x2x256xf32> to vector<2x256xf32>
    %c0_42 = arith.constant 0 : index
    %c3_43 = arith.constant 3 : index
    %c1_44 = arith.constant 1 : index
    %c0_45 = arith.constant 0 : index
    %105 = vector.load %arg3[%c0_42, %c3_43, %c1_44, %c0_45] : memref<1x4x4x290xf32, #tpu.memory_space<vmem>>, vector<1x1x2x256xf32>
    %106 = vector.shape_cast %105 : vector<1x1x2x256xf32> to vector<2x256xf32>
    %107 = vector.broadcast %101 : f32 to vector<2x256xf32>
    %108 = arith.mulf %107, %104 : vector<2x256xf32>
    %109 = arith.addf %94, %108 : vector<2x256xf32>
    %110 = vector.broadcast %102 : f32 to vector<2x256xf32>
    %111 = arith.mulf %110, %106 : vector<2x256xf32>
    %112 = arith.subf %109, %111 : vector<2x256xf32>
    %113 = vector.broadcast %101 : f32 to vector<2x256xf32>
    %114 = arith.mulf %113, %106 : vector<2x256xf32>
    %115 = arith.addf %100, %114 : vector<2x256xf32>
    %116 = vector.broadcast %102 : f32 to vector<2x256xf32>
    %117 = arith.mulf %116, %104 : vector<2x256xf32>
    %118 = arith.addf %115, %117 : vector<2x256xf32>
    %c56 = arith.constant 56 : index
    %119 = memref.load %arg1[%c56] : memref<108xf32, #tpu.memory_space<smem>>
    %c83 = arith.constant 83 : index
    %120 = memref.load %arg1[%c83] : memref<108xf32, #tpu.memory_space<smem>>
    %c0_46 = arith.constant 0 : index
    %c2_47 = arith.constant 2 : index
    %c2_48 = arith.constant 2 : index
    %c0_49 = arith.constant 0 : index
    %121 = vector.load %arg3[%c0_46, %c2_47, %c2_48, %c0_49] : memref<1x4x4x290xf32, #tpu.memory_space<vmem>>, vector<1x1x2x256xf32>
    %122 = vector.shape_cast %121 : vector<1x1x2x256xf32> to vector<2x256xf32>
    %c0_50 = arith.constant 0 : index
    %c3_51 = arith.constant 3 : index
    %c2_52 = arith.constant 2 : index
    %c0_53 = arith.constant 0 : index
    %123 = vector.load %arg3[%c0_50, %c3_51, %c2_52, %c0_53] : memref<1x4x4x290xf32, #tpu.memory_space<vmem>>, vector<1x1x2x256xf32>
    %124 = vector.shape_cast %123 : vector<1x1x2x256xf32> to vector<2x256xf32>
    %125 = vector.broadcast %119 : f32 to vector<2x256xf32>
    %126 = arith.mulf %125, %122 : vector<2x256xf32>
    %127 = arith.addf %112, %126 : vector<2x256xf32>
    %128 = vector.broadcast %120 : f32 to vector<2x256xf32>
    %129 = arith.mulf %128, %124 : vector<2x256xf32>
    %130 = arith.subf %127, %129 : vector<2x256xf32>
    %131 = vector.broadcast %119 : f32 to vector<2x256xf32>
    %132 = arith.mulf %131, %124 : vector<2x256xf32>
    %133 = arith.addf %118, %132 : vector<2x256xf32>
    %134 = vector.broadcast %120 : f32 to vector<2x256xf32>
    %135 = arith.mulf %134, %122 : vector<2x256xf32>
    %136 = arith.addf %133, %135 : vector<2x256xf32>
    %137 = arith.mulf %20, %130 : vector<2x256xf32>
    %138 = arith.addf %25, %137 : vector<2x256xf32>
    %139 = arith.mulf %20, %136 : vector<2x256xf32>
    %140 = arith.addf %26, %139 : vector<2x256xf32>
    %cst_54 = arith.constant 0.000000e+00 : f32
    %141 = vector.broadcast %cst_54 : f32 to vector<2x256xf32>
    %cst_55 = arith.constant 0.000000e+00 : f32
    %142 = vector.broadcast %cst_55 : f32 to vector<2x256xf32>
    %c3_56 = arith.constant 3 : index
    %143 = memref.load %arg1[%c3_56] : memref<108xf32, #tpu.memory_space<smem>>
    %c30 = arith.constant 30 : index
    %144 = memref.load %arg1[%c30] : memref<108xf32, #tpu.memory_space<smem>>
    %c0_57 = arith.constant 0 : index
    %c0_58 = arith.constant 0 : index
    %c0_59 = arith.constant 0 : index
    %c1_60 = arith.constant 1 : index
    %145 = vector.load %arg3[%c0_57, %c0_58, %c0_59, %c1_60] : memref<1x4x4x290xf32, #tpu.memory_space<vmem>>, vector<1x1x2x256xf32>
    %146 = vector.shape_cast %145 : vector<1x1x2x256xf32> to vector<2x256xf32>
    %c0_61 = arith.constant 0 : index
    %c1_62 = arith.constant 1 : index
    %c0_63 = arith.constant 0 : index
    %c1_64 = arith.constant 1 : index
    %147 = vector.load %arg3[%c0_61, %c1_62, %c0_63, %c1_64] : memref<1x4x4x290xf32, #tpu.memory_space<vmem>>, vector<1x1x2x256xf32>
    %148 = vector.shape_cast %147 : vector<1x1x2x256xf32> to vector<2x256xf32>
    %149 = vector.broadcast %143 : f32 to vector<2x256xf32>
    %150 = arith.mulf %149, %146 : vector<2x256xf32>
    %151 = arith.addf %141, %150 : vector<2x256xf32>
    %152 = vector.broadcast %144 : f32 to vector<2x256xf32>
    %153 = arith.mulf %152, %148 : vector<2x256xf32>
    %154 = arith.subf %151, %153 : vector<2x256xf32>
    %155 = vector.broadcast %143 : f32 to vector<2x256xf32>
    %156 = arith.mulf %155, %148 : vector<2x256xf32>
    %157 = arith.addf %142, %156 : vector<2x256xf32>
    %158 = vector.broadcast %144 : f32 to vector<2x256xf32>
    %159 = arith.mulf %158, %146 : vector<2x256xf32>
    %160 = arith.addf %157, %159 : vector<2x256xf32>
    %c4 = arith.constant 4 : index
    %161 = memref.load %arg1[%c4] : memref<108xf32, #tpu.memory_space<smem>>
    %c31 = arith.constant 31 : index
    %162 = memref.load %arg1[%c31] : memref<108xf32, #tpu.memory_space<smem>>
    %c0_65 = arith.constant 0 : index
    %c0_66 = arith.constant 0 : index
    %c1_67 = arith.constant 1 : index
    %c1_68 = arith.constant 1 : index
    %163 = vector.load %arg3[%c0_65, %c0_66, %c1_67, %c1_68] : memref<1x4x4x290xf32, #tpu.memory_space<vmem>>, vector<1x1x2x256xf32>
    %164 = vector.shape_cast %163 : vector<1x1x2x256xf32> to vector<2x256xf32>
    %c0_69 = arith.constant 0 : index
    %c1_70 = arith.constant 1 : index
    %c1_71 = arith.constant 1 : index
    %c1_72 = arith.constant 1 : index
    %165 = vector.load %arg3[%c0_69, %c1_70, %c1_71, %c1_72] : memref<1x4x4x290xf32, #tpu.memory_space<vmem>>, vector<1x1x2x256xf32>
    %166 = vector.shape_cast %165 : vector<1x1x2x256xf32> to vector<2x256xf32>
    %167 = vector.broadcast %161 : f32 to vector<2x256xf32>
    %168 = arith.mulf %167, %164 : vector<2x256xf32>
    %169 = arith.addf %154, %168 : vector<2x256xf32>
    %170 = vector.broadcast %162 : f32 to vector<2x256xf32>
    %171 = arith.mulf %170, %166 : vector<2x256xf32>
    %172 = arith.subf %169, %171 : vector<2x256xf32>
    %173 = vector.broadcast %161 : f32 to vector<2x256xf32>
    %174 = arith.mulf %173, %166 : vector<2x256xf32>
    %175 = arith.addf %160, %174 : vector<2x256xf32>
    %176 = vector.broadcast %162 : f32 to vector<2x256xf32>
    %177 = arith.mulf %176, %164 : vector<2x256xf32>
    %178 = arith.addf %175, %177 : vector<2x256xf32>
    %c5 = arith.constant 5 : index
    %179 = memref.load %arg1[%c5] : memref<108xf32, #tpu.memory_space<smem>>
    %c32 = arith.constant 32 : index
    %180 = memref.load %arg1[%c32] : memref<108xf32, #tpu.memory_space<smem>>
    %c0_73 = arith.constant 0 : index
    %c0_74 = arith.constant 0 : index
    %c2_75 = arith.constant 2 : index
    %c1_76 = arith.constant 1 : index
    %181 = vector.load %arg3[%c0_73, %c0_74, %c2_75, %c1_76] : memref<1x4x4x290xf32, #tpu.memory_space<vmem>>, vector<1x1x2x256xf32>
    %182 = vector.shape_cast %181 : vector<1x1x2x256xf32> to vector<2x256xf32>
    %c0_77 = arith.constant 0 : index
    %c1_78 = arith.constant 1 : index
    %c2_79 = arith.constant 2 : index
    %c1_80 = arith.constant 1 : index
    %183 = vector.load %arg3[%c0_77, %c1_78, %c2_79, %c1_80] : memref<1x4x4x290xf32, #tpu.memory_space<vmem>>, vector<1x1x2x256xf32>
    %184 = vector.shape_cast %183 : vector<1x1x2x256xf32> to vector<2x256xf32>
    %185 = vector.broadcast %179 : f32 to vector<2x256xf32>
    %186 = arith.mulf %185, %182 : vector<2x256xf32>
    %187 = arith.addf %172, %186 : vector<2x256xf32>
    %188 = vector.broadcast %180 : f32 to vector<2x256xf32>
    %189 = arith.mulf %188, %184 : vector<2x256xf32>
    %190 = arith.subf %187, %189 : vector<2x256xf32>
    %191 = vector.broadcast %179 : f32 to vector<2x256xf32>
    %192 = arith.mulf %191, %184 : vector<2x256xf32>
    %193 = arith.addf %178, %192 : vector<2x256xf32>
    %194 = vector.broadcast %180 : f32 to vector<2x256xf32>
    %195 = arith.mulf %194, %182 : vector<2x256xf32>
    %196 = arith.addf %193, %195 : vector<2x256xf32>
    %c57 = arith.constant 57 : index
    %197 = memref.load %arg1[%c57] : memref<108xf32, #tpu.memory_space<smem>>
    %c84 = arith.constant 84 : index
    %198 = memref.load %arg1[%c84] : memref<108xf32, #tpu.memory_space<smem>>
    %c0_81 = arith.constant 0 : index
    %c2_82 = arith.constant 2 : index
    %c0_83 = arith.constant 0 : index
    %c1_84 = arith.constant 1 : index
    %199 = vector.load %arg3[%c0_81, %c2_82, %c0_83, %c1_84] : memref<1x4x4x290xf32, #tpu.memory_space<vmem>>, vector<1x1x2x256xf32>
    %200 = vector.shape_cast %199 : vector<1x1x2x256xf32> to vector<2x256xf32>
    %c0_85 = arith.constant 0 : index
    %c3_86 = arith.constant 3 : index
    %c0_87 = arith.constant 0 : index
    %c1_88 = arith.constant 1 : index
    %201 = vector.load %arg3[%c0_85, %c3_86, %c0_87, %c1_88] : memref<1x4x4x290xf32, #tpu.memory_space<vmem>>, vector<1x1x2x256xf32>
    %202 = vector.shape_cast %201 : vector<1x1x2x256xf32> to vector<2x256xf32>
    %203 = vector.broadcast %197 : f32 to vector<2x256xf32>
    %204 = arith.mulf %203, %200 : vector<2x256xf32>
    %205 = arith.addf %190, %204 : vector<2x256xf32>
    %206 = vector.broadcast %198 : f32 to vector<2x256xf32>
    %207 = arith.mulf %206, %202 : vector<2x256xf32>
    %208 = arith.subf %205, %207 : vector<2x256xf32>
    %209 = vector.broadcast %197 : f32 to vector<2x256xf32>
    %210 = arith.mulf %209, %202 : vector<2x256xf32>
    %211 = arith.addf %196, %210 : vector<2x256xf32>
    %212 = vector.broadcast %198 : f32 to vector<2x256xf32>
    %213 = arith.mulf %212, %200 : vector<2x256xf32>
    %214 = arith.addf %211, %213 : vector<2x256xf32>
    %c58 = arith.constant 58 : index
    %215 = memref.load %arg1[%c58] : memref<108xf32, #tpu.memory_space<smem>>
    %c85 = arith.constant 85 : index
    %216 = memref.load %arg1[%c85] : memref<108xf32, #tpu.memory_space<smem>>
    %c0_89 = arith.constant 0 : index
    %c2_90 = arith.constant 2 : index
    %c1_91 = arith.constant 1 : index
    %c1_92 = arith.constant 1 : index
    %217 = vector.load %arg3[%c0_89, %c2_90, %c1_91, %c1_92] : memref<1x4x4x290xf32, #tpu.memory_space<vmem>>, vector<1x1x2x256xf32>
    %218 = vector.shape_cast %217 : vector<1x1x2x256xf32> to vector<2x256xf32>
    %c0_93 = arith.constant 0 : index
    %c3_94 = arith.constant 3 : index
    %c1_95 = arith.constant 1 : index
    %c1_96 = arith.constant 1 : index
    %219 = vector.load %arg3[%c0_93, %c3_94, %c1_95, %c1_96] : memref<1x4x4x290xf32, #tpu.memory_space<vmem>>, vector<1x1x2x256xf32>
    %220 = vector.shape_cast %219 : vector<1x1x2x256xf32> to vector<2x256xf32>
    %221 = vector.broadcast %215 : f32 to vector<2x256xf32>
    %222 = arith.mulf %221, %218 : vector<2x256xf32>
    %223 = arith.addf %208, %222 : vector<2x256xf32>
    %224 = vector.broadcast %216 : f32 to vector<2x256xf32>
    %225 = arith.mulf %224, %220 : vector<2x256xf32>
    %226 = arith.subf %223, %225 : vector<2x256xf32>
    %227 = vector.broadcast %215 : f32 to vector<2x256xf32>
    %228 = arith.mulf %227, %220 : vector<2x256xf32>
    %229 = arith.addf %214, %228 : vector<2x256xf32>
    %230 = vector.broadcast %216 : f32 to vector<2x256xf32>
    %231 = arith.mulf %230, %218 : vector<2x256xf32>
    %232 = arith.addf %229, %231 : vector<2x256xf32>
    %c59 = arith.constant 59 : index
    %233 = memref.load %arg1[%c59] : memref<108xf32, #tpu.memory_space<smem>>
    %c86 = arith.constant 86 : index
    %234 = memref.load %arg1[%c86] : memref<108xf32, #tpu.memory_space<smem>>
    %c0_97 = arith.constant 0 : index
    %c2_98 = arith.constant 2 : index
    %c2_99 = arith.constant 2 : index
    %c1_100 = arith.constant 1 : index
    %235 = vector.load %arg3[%c0_97, %c2_98, %c2_99, %c1_100] : memref<1x4x4x290xf32, #tpu.memory_space<vmem>>, vector<1x1x2x256xf32>
    %236 = vector.shape_cast %235 : vector<1x1x2x256xf32> to vector<2x256xf32>
    %c0_101 = arith.constant 0 : index
    %c3_102 = arith.constant 3 : index
    %c2_103 = arith.constant 2 : index
    %c1_104 = arith.constant 1 : index
    %237 = vector.load %arg3[%c0_101, %c3_102, %c2_103, %c1_104] : memref<1x4x4x290xf32, #tpu.memory_space<vmem>>, vector<1x1x2x256xf32>
    %238 = vector.shape_cast %237 : vector<1x1x2x256xf32> to vector<2x256xf32>
    %239 = vector.broadcast %233 : f32 to vector<2x256xf32>
    %240 = arith.mulf %239, %236 : vector<2x256xf32>
    %241 = arith.addf %226, %240 : vector<2x256xf32>
    %242 = vector.broadcast %234 : f32 to vector<2x256xf32>
    %243 = arith.mulf %242, %238 : vector<2x256xf32>
    %244 = arith.subf %241, %243 : vector<2x256xf32>
    %245 = vector.broadcast %233 : f32 to vector<2x256xf32>
    %246 = arith.mulf %245, %238 : vector<2x256xf32>
    %247 = arith.addf %232, %246 : vector<2x256xf32>
    %248 = vector.broadcast %234 : f32 to vector<2x256xf32>
    %249 = arith.mulf %248, %236 : vector<2x256xf32>
    %250 = arith.addf %247, %249 : vector<2x256xf32>
    %251 = arith.addf %138, %244 : vector<2x256xf32>
    %252 = arith.addf %140, %250 : vector<2x256xf32>
    %cst_105 = arith.constant 0.000000e+00 : f32
    %253 = vector.broadcast %cst_105 : f32 to vector<2x256xf32>
    %cst_106 = arith.constant 0.000000e+00 : f32
    %254 = vector.broadcast %cst_106 : f32 to vector<2x256xf32>
    %c6 = arith.constant 6 : index
    %255 = memref.load %arg1[%c6] : memref<108xf32, #tpu.memory_space<smem>>
    %c33 = arith.constant 33 : index
    %256 = memref.load %arg1[%c33] : memref<108xf32, #tpu.memory_space<smem>>
    %c0_107 = arith.constant 0 : index
    %c0_108 = arith.constant 0 : index
    %c0_109 = arith.constant 0 : index
    %c2_110 = arith.constant 2 : index
    %257 = vector.load %arg3[%c0_107, %c0_108, %c0_109, %c2_110] : memref<1x4x4x290xf32, #tpu.memory_space<vmem>>, vector<1x1x2x256xf32>
    %258 = vector.shape_cast %257 : vector<1x1x2x256xf32> to vector<2x256xf32>
    %c0_111 = arith.constant 0 : index
    %c1_112 = arith.constant 1 : index
    %c0_113 = arith.constant 0 : index
    %c2_114 = arith.constant 2 : index
    %259 = vector.load %arg3[%c0_111, %c1_112, %c0_113, %c2_114] : memref<1x4x4x290xf32, #tpu.memory_space<vmem>>, vector<1x1x2x256xf32>
    %260 = vector.shape_cast %259 : vector<1x1x2x256xf32> to vector<2x256xf32>
    %261 = vector.broadcast %255 : f32 to vector<2x256xf32>
    %262 = arith.mulf %261, %258 : vector<2x256xf32>
    %263 = arith.addf %253, %262 : vector<2x256xf32>
    %264 = vector.broadcast %256 : f32 to vector<2x256xf32>
    %265 = arith.mulf %264, %260 : vector<2x256xf32>
    %266 = arith.subf %263, %265 : vector<2x256xf32>
    %267 = vector.broadcast %255 : f32 to vector<2x256xf32>
    %268 = arith.mulf %267, %260 : vector<2x256xf32>
    %269 = arith.addf %254, %268 : vector<2x256xf32>
    %270 = vector.broadcast %256 : f32 to vector<2x256xf32>
    %271 = arith.mulf %270, %258 : vector<2x256xf32>
    %272 = arith.addf %269, %271 : vector<2x256xf32>
    %c7 = arith.constant 7 : index
    %273 = memref.load %arg1[%c7] : memref<108xf32, #tpu.memory_space<smem>>
    %c34 = arith.constant 34 : index
    %274 = memref.load %arg1[%c34] : memref<108xf32, #tpu.memory_space<smem>>
    %c0_115 = arith.constant 0 : index
    %c0_116 = arith.constant 0 : index
    %c1_117 = arith.constant 1 : index
    %c2_118 = arith.constant 2 : index
    %275 = vector.load %arg3[%c0_115, %c0_116, %c1_117, %c2_118] : memref<1x4x4x290xf32, #tpu.memory_space<vmem>>, vector<1x1x2x256xf32>
    %276 = vector.shape_cast %275 : vector<1x1x2x256xf32> to vector<2x256xf32>
    %c0_119 = arith.constant 0 : index
    %c1_120 = arith.constant 1 : index
    %c1_121 = arith.constant 1 : index
    %c2_122 = arith.constant 2 : index
    %277 = vector.load %arg3[%c0_119, %c1_120, %c1_121, %c2_122] : memref<1x4x4x290xf32, #tpu.memory_space<vmem>>, vector<1x1x2x256xf32>
    %278 = vector.shape_cast %277 : vector<1x1x2x256xf32> to vector<2x256xf32>
    %279 = vector.broadcast %273 : f32 to vector<2x256xf32>
    %280 = arith.mulf %279, %276 : vector<2x256xf32>
    %281 = arith.addf %266, %280 : vector<2x256xf32>
    %282 = vector.broadcast %274 : f32 to vector<2x256xf32>
    %283 = arith.mulf %282, %278 : vector<2x256xf32>
    %284 = arith.subf %281, %283 : vector<2x256xf32>
    %285 = vector.broadcast %273 : f32 to vector<2x256xf32>
    %286 = arith.mulf %285, %278 : vector<2x256xf32>
    %287 = arith.addf %272, %286 : vector<2x256xf32>
    %288 = vector.broadcast %274 : f32 to vector<2x256xf32>
    %289 = arith.mulf %288, %276 : vector<2x256xf32>
    %290 = arith.addf %287, %289 : vector<2x256xf32>
    %c8 = arith.constant 8 : index
    %291 = memref.load %arg1[%c8] : memref<108xf32, #tpu.memory_space<smem>>
    %c35 = arith.constant 35 : index
    %292 = memref.load %arg1[%c35] : memref<108xf32, #tpu.memory_space<smem>>
    %c0_123 = arith.constant 0 : index
    %c0_124 = arith.constant 0 : index
    %c2_125 = arith.constant 2 : index
    %c2_126 = arith.constant 2 : index
    %293 = vector.load %arg3[%c0_123, %c0_124, %c2_125, %c2_126] : memref<1x4x4x290xf32, #tpu.memory_space<vmem>>, vector<1x1x2x256xf32>
    %294 = vector.shape_cast %293 : vector<1x1x2x256xf32> to vector<2x256xf32>
    %c0_127 = arith.constant 0 : index
    %c1_128 = arith.constant 1 : index
    %c2_129 = arith.constant 2 : index
    %c2_130 = arith.constant 2 : index
    %295 = vector.load %arg3[%c0_127, %c1_128, %c2_129, %c2_130] : memref<1x4x4x290xf32, #tpu.memory_space<vmem>>, vector<1x1x2x256xf32>
    %296 = vector.shape_cast %295 : vector<1x1x2x256xf32> to vector<2x256xf32>
    %297 = vector.broadcast %291 : f32 to vector<2x256xf32>
    %298 = arith.mulf %297, %294 : vector<2x256xf32>
    %299 = arith.addf %284, %298 : vector<2x256xf32>
    %300 = vector.broadcast %292 : f32 to vector<2x256xf32>
    %301 = arith.mulf %300, %296 : vector<2x256xf32>
    %302 = arith.subf %299, %301 : vector<2x256xf32>
    %303 = vector.broadcast %291 : f32 to vector<2x256xf32>
    %304 = arith.mulf %303, %296 : vector<2x256xf32>
    %305 = arith.addf %290, %304 : vector<2x256xf32>
    %306 = vector.broadcast %292 : f32 to vector<2x256xf32>
    %307 = arith.mulf %306, %294 : vector<2x256xf32>
    %308 = arith.addf %305, %307 : vector<2x256xf32>
    %c60 = arith.constant 60 : index
    %309 = memref.load %arg1[%c60] : memref<108xf32, #tpu.memory_space<smem>>
    %c87 = arith.constant 87 : index
    %310 = memref.load %arg1[%c87] : memref<108xf32, #tpu.memory_space<smem>>
    %c0_131 = arith.constant 0 : index
    %c2_132 = arith.constant 2 : index
    %c0_133 = arith.constant 0 : index
    %c2_134 = arith.constant 2 : index
    %311 = vector.load %arg3[%c0_131, %c2_132, %c0_133, %c2_134] : memref<1x4x4x290xf32, #tpu.memory_space<vmem>>, vector<1x1x2x256xf32>
    %312 = vector.shape_cast %311 : vector<1x1x2x256xf32> to vector<2x256xf32>
    %c0_135 = arith.constant 0 : index
    %c3_136 = arith.constant 3 : index
    %c0_137 = arith.constant 0 : index
    %c2_138 = arith.constant 2 : index
    %313 = vector.load %arg3[%c0_135, %c3_136, %c0_137, %c2_138] : memref<1x4x4x290xf32, #tpu.memory_space<vmem>>, vector<1x1x2x256xf32>
    %314 = vector.shape_cast %313 : vector<1x1x2x256xf32> to vector<2x256xf32>
    %315 = vector.broadcast %309 : f32 to vector<2x256xf32>
    %316 = arith.mulf %315, %312 : vector<2x256xf32>
    %317 = arith.addf %302, %316 : vector<2x256xf32>
    %318 = vector.broadcast %310 : f32 to vector<2x256xf32>
    %319 = arith.mulf %318, %314 : vector<2x256xf32>
    %320 = arith.subf %317, %319 : vector<2x256xf32>
    %321 = vector.broadcast %309 : f32 to vector<2x256xf32>
    %322 = arith.mulf %321, %314 : vector<2x256xf32>
    %323 = arith.addf %308, %322 : vector<2x256xf32>
    %324 = vector.broadcast %310 : f32 to vector<2x256xf32>
    %325 = arith.mulf %324, %312 : vector<2x256xf32>
    %326 = arith.addf %323, %325 : vector<2x256xf32>
    %c61 = arith.constant 61 : index
    %327 = memref.load %arg1[%c61] : memref<108xf32, #tpu.memory_space<smem>>
    %c88 = arith.constant 88 : index
    %328 = memref.load %arg1[%c88] : memref<108xf32, #tpu.memory_space<smem>>
    %c0_139 = arith.constant 0 : index
    %c2_140 = arith.constant 2 : index
    %c1_141 = arith.constant 1 : index
    %c2_142 = arith.constant 2 : index
    %329 = vector.load %arg3[%c0_139, %c2_140, %c1_141, %c2_142] : memref<1x4x4x290xf32, #tpu.memory_space<vmem>>, vector<1x1x2x256xf32>
    %330 = vector.shape_cast %329 : vector<1x1x2x256xf32> to vector<2x256xf32>
    %c0_143 = arith.constant 0 : index
    %c3_144 = arith.constant 3 : index
    %c1_145 = arith.constant 1 : index
    %c2_146 = arith.constant 2 : index
    %331 = vector.load %arg3[%c0_143, %c3_144, %c1_145, %c2_146] : memref<1x4x4x290xf32, #tpu.memory_space<vmem>>, vector<1x1x2x256xf32>
    %332 = vector.shape_cast %331 : vector<1x1x2x256xf32> to vector<2x256xf32>
    %333 = vector.broadcast %327 : f32 to vector<2x256xf32>
    %334 = arith.mulf %333, %330 : vector<2x256xf32>
    %335 = arith.addf %320, %334 : vector<2x256xf32>
    %336 = vector.broadcast %328 : f32 to vector<2x256xf32>
    %337 = arith.mulf %336, %332 : vector<2x256xf32>
    %338 = arith.subf %335, %337 : vector<2x256xf32>
    %339 = vector.broadcast %327 : f32 to vector<2x256xf32>
    %340 = arith.mulf %339, %332 : vector<2x256xf32>
    %341 = arith.addf %326, %340 : vector<2x256xf32>
    %342 = vector.broadcast %328 : f32 to vector<2x256xf32>
    %343 = arith.mulf %342, %330 : vector<2x256xf32>
    %344 = arith.addf %341, %343 : vector<2x256xf32>
    %c62 = arith.constant 62 : index
    %345 = memref.load %arg1[%c62] : memref<108xf32, #tpu.memory_space<smem>>
    %c89 = arith.constant 89 : index
    %346 = memref.load %arg1[%c89] : memref<108xf32, #tpu.memory_space<smem>>
    %c0_147 = arith.constant 0 : index
    %c2_148 = arith.constant 2 : index
    %c2_149 = arith.constant 2 : index
    %c2_150 = arith.constant 2 : index
    %347 = vector.load %arg3[%c0_147, %c2_148, %c2_149, %c2_150] : memref<1x4x4x290xf32, #tpu.memory_space<vmem>>, vector<1x1x2x256xf32>
    %348 = vector.shape_cast %347 : vector<1x1x2x256xf32> to vector<2x256xf32>
    %c0_151 = arith.constant 0 : index
    %c3_152 = arith.constant 3 : index
    %c2_153 = arith.constant 2 : index
    %c2_154 = arith.constant 2 : index
    %349 = vector.load %arg3[%c0_151, %c3_152, %c2_153, %c2_154] : memref<1x4x4x290xf32, #tpu.memory_space<vmem>>, vector<1x1x2x256xf32>
    %350 = vector.shape_cast %349 : vector<1x1x2x256xf32> to vector<2x256xf32>
    %351 = vector.broadcast %345 : f32 to vector<2x256xf32>
    %352 = arith.mulf %351, %348 : vector<2x256xf32>
    %353 = arith.addf %338, %352 : vector<2x256xf32>
    %354 = vector.broadcast %346 : f32 to vector<2x256xf32>
    %355 = arith.mulf %354, %350 : vector<2x256xf32>
    %356 = arith.subf %353, %355 : vector<2x256xf32>
    %357 = vector.broadcast %345 : f32 to vector<2x256xf32>
    %358 = arith.mulf %357, %350 : vector<2x256xf32>
    %359 = arith.addf %344, %358 : vector<2x256xf32>
    %360 = vector.broadcast %346 : f32 to vector<2x256xf32>
    %361 = arith.mulf %360, %348 : vector<2x256xf32>
    %362 = arith.addf %359, %361 : vector<2x256xf32>
    %363 = arith.mulf %24, %356 : vector<2x256xf32>
    %364 = arith.addf %251, %363 : vector<2x256xf32>
    %365 = arith.mulf %24, %362 : vector<2x256xf32>
    %366 = arith.addf %252, %365 : vector<2x256xf32>
    %cst_155 = arith.constant 0.000000e+00 : f32
    %367 = vector.broadcast %cst_155 : f32 to vector<2x256xf32>
    %cst_156 = arith.constant 0.000000e+00 : f32
    %368 = vector.broadcast %cst_156 : f32 to vector<2x256xf32>
    %c9 = arith.constant 9 : index
    %369 = memref.load %arg1[%c9] : memref<108xf32, #tpu.memory_space<smem>>
    %c36 = arith.constant 36 : index
    %370 = memref.load %arg1[%c36] : memref<108xf32, #tpu.memory_space<smem>>
    %c0_157 = arith.constant 0 : index
    %c0_158 = arith.constant 0 : index
    %c0_159 = arith.constant 0 : index
    %c16 = arith.constant 16 : index
    %371 = vector.load %arg3[%c0_157, %c0_158, %c0_159, %c16] : memref<1x4x4x290xf32, #tpu.memory_space<vmem>>, vector<1x1x2x256xf32>
    %372 = vector.shape_cast %371 : vector<1x1x2x256xf32> to vector<2x256xf32>
    %c0_160 = arith.constant 0 : index
    %c1_161 = arith.constant 1 : index
    %c0_162 = arith.constant 0 : index
    %c16_163 = arith.constant 16 : index
    %373 = vector.load %arg3[%c0_160, %c1_161, %c0_162, %c16_163] : memref<1x4x4x290xf32, #tpu.memory_space<vmem>>, vector<1x1x2x256xf32>
    %374 = vector.shape_cast %373 : vector<1x1x2x256xf32> to vector<2x256xf32>
    %375 = vector.broadcast %369 : f32 to vector<2x256xf32>
    %376 = arith.mulf %375, %372 : vector<2x256xf32>
    %377 = arith.addf %367, %376 : vector<2x256xf32>
    %378 = vector.broadcast %370 : f32 to vector<2x256xf32>
    %379 = arith.mulf %378, %374 : vector<2x256xf32>
    %380 = arith.subf %377, %379 : vector<2x256xf32>
    %381 = vector.broadcast %369 : f32 to vector<2x256xf32>
    %382 = arith.mulf %381, %374 : vector<2x256xf32>
    %383 = arith.addf %368, %382 : vector<2x256xf32>
    %384 = vector.broadcast %370 : f32 to vector<2x256xf32>
    %385 = arith.mulf %384, %372 : vector<2x256xf32>
    %386 = arith.addf %383, %385 : vector<2x256xf32>
    %c10 = arith.constant 10 : index
    %387 = memref.load %arg1[%c10] : memref<108xf32, #tpu.memory_space<smem>>
    %c37 = arith.constant 37 : index
    %388 = memref.load %arg1[%c37] : memref<108xf32, #tpu.memory_space<smem>>
    %c0_164 = arith.constant 0 : index
    %c0_165 = arith.constant 0 : index
    %c1_166 = arith.constant 1 : index
    %c16_167 = arith.constant 16 : index
    %389 = vector.load %arg3[%c0_164, %c0_165, %c1_166, %c16_167] : memref<1x4x4x290xf32, #tpu.memory_space<vmem>>, vector<1x1x2x256xf32>
    %390 = vector.shape_cast %389 : vector<1x1x2x256xf32> to vector<2x256xf32>
    %c0_168 = arith.constant 0 : index
    %c1_169 = arith.constant 1 : index
    %c1_170 = arith.constant 1 : index
    %c16_171 = arith.constant 16 : index
    %391 = vector.load %arg3[%c0_168, %c1_169, %c1_170, %c16_171] : memref<1x4x4x290xf32, #tpu.memory_space<vmem>>, vector<1x1x2x256xf32>
    %392 = vector.shape_cast %391 : vector<1x1x2x256xf32> to vector<2x256xf32>
    %393 = vector.broadcast %387 : f32 to vector<2x256xf32>
    %394 = arith.mulf %393, %390 : vector<2x256xf32>
    %395 = arith.addf %380, %394 : vector<2x256xf32>
    %396 = vector.broadcast %388 : f32 to vector<2x256xf32>
    %397 = arith.mulf %396, %392 : vector<2x256xf32>
    %398 = arith.subf %395, %397 : vector<2x256xf32>
    %399 = vector.broadcast %387 : f32 to vector<2x256xf32>
    %400 = arith.mulf %399, %392 : vector<2x256xf32>
    %401 = arith.addf %386, %400 : vector<2x256xf32>
    %402 = vector.broadcast %388 : f32 to vector<2x256xf32>
    %403 = arith.mulf %402, %390 : vector<2x256xf32>
    %404 = arith.addf %401, %403 : vector<2x256xf32>
    %c11 = arith.constant 11 : index
    %405 = memref.load %arg1[%c11] : memref<108xf32, #tpu.memory_space<smem>>
    %c38 = arith.constant 38 : index
    %406 = memref.load %arg1[%c38] : memref<108xf32, #tpu.memory_space<smem>>
    %c0_172 = arith.constant 0 : index
    %c0_173 = arith.constant 0 : index
    %c2_174 = arith.constant 2 : index
    %c16_175 = arith.constant 16 : index
    %407 = vector.load %arg3[%c0_172, %c0_173, %c2_174, %c16_175] : memref<1x4x4x290xf32, #tpu.memory_space<vmem>>, vector<1x1x2x256xf32>
    %408 = vector.shape_cast %407 : vector<1x1x2x256xf32> to vector<2x256xf32>
    %c0_176 = arith.constant 0 : index
    %c1_177 = arith.constant 1 : index
    %c2_178 = arith.constant 2 : index
    %c16_179 = arith.constant 16 : index
    %409 = vector.load %arg3[%c0_176, %c1_177, %c2_178, %c16_179] : memref<1x4x4x290xf32, #tpu.memory_space<vmem>>, vector<1x1x2x256xf32>
    %410 = vector.shape_cast %409 : vector<1x1x2x256xf32> to vector<2x256xf32>
    %411 = vector.broadcast %405 : f32 to vector<2x256xf32>
    %412 = arith.mulf %411, %408 : vector<2x256xf32>
    %413 = arith.addf %398, %412 : vector<2x256xf32>
    %414 = vector.broadcast %406 : f32 to vector<2x256xf32>
    %415 = arith.mulf %414, %410 : vector<2x256xf32>
    %416 = arith.subf %413, %415 : vector<2x256xf32>
    %417 = vector.broadcast %405 : f32 to vector<2x256xf32>
    %418 = arith.mulf %417, %410 : vector<2x256xf32>
    %419 = arith.addf %404, %418 : vector<2x256xf32>
    %420 = vector.broadcast %406 : f32 to vector<2x256xf32>
    %421 = arith.mulf %420, %408 : vector<2x256xf32>
    %422 = arith.addf %419, %421 : vector<2x256xf32>
    %c63 = arith.constant 63 : index
    %423 = memref.load %arg1[%c63] : memref<108xf32, #tpu.memory_space<smem>>
    %c90 = arith.constant 90 : index
    %424 = memref.load %arg1[%c90] : memref<108xf32, #tpu.memory_space<smem>>
    %c0_180 = arith.constant 0 : index
    %c2_181 = arith.constant 2 : index
    %c0_182 = arith.constant 0 : index
    %c16_183 = arith.constant 16 : index
    %425 = vector.load %arg3[%c0_180, %c2_181, %c0_182, %c16_183] : memref<1x4x4x290xf32, #tpu.memory_space<vmem>>, vector<1x1x2x256xf32>
    %426 = vector.shape_cast %425 : vector<1x1x2x256xf32> to vector<2x256xf32>
    %c0_184 = arith.constant 0 : index
    %c3_185 = arith.constant 3 : index
    %c0_186 = arith.constant 0 : index
    %c16_187 = arith.constant 16 : index
    %427 = vector.load %arg3[%c0_184, %c3_185, %c0_186, %c16_187] : memref<1x4x4x290xf32, #tpu.memory_space<vmem>>, vector<1x1x2x256xf32>
    %428 = vector.shape_cast %427 : vector<1x1x2x256xf32> to vector<2x256xf32>
    %429 = vector.broadcast %423 : f32 to vector<2x256xf32>
    %430 = arith.mulf %429, %426 : vector<2x256xf32>
    %431 = arith.addf %416, %430 : vector<2x256xf32>
    %432 = vector.broadcast %424 : f32 to vector<2x256xf32>
    %433 = arith.mulf %432, %428 : vector<2x256xf32>
    %434 = arith.subf %431, %433 : vector<2x256xf32>
    %435 = vector.broadcast %423 : f32 to vector<2x256xf32>
    %436 = arith.mulf %435, %428 : vector<2x256xf32>
    %437 = arith.addf %422, %436 : vector<2x256xf32>
    %438 = vector.broadcast %424 : f32 to vector<2x256xf32>
    %439 = arith.mulf %438, %426 : vector<2x256xf32>
    %440 = arith.addf %437, %439 : vector<2x256xf32>
    %c64 = arith.constant 64 : index
    %441 = memref.load %arg1[%c64] : memref<108xf32, #tpu.memory_space<smem>>
    %c91 = arith.constant 91 : index
    %442 = memref.load %arg1[%c91] : memref<108xf32, #tpu.memory_space<smem>>
    %c0_188 = arith.constant 0 : index
    %c2_189 = arith.constant 2 : index
    %c1_190 = arith.constant 1 : index
    %c16_191 = arith.constant 16 : index
    %443 = vector.load %arg3[%c0_188, %c2_189, %c1_190, %c16_191] : memref<1x4x4x290xf32, #tpu.memory_space<vmem>>, vector<1x1x2x256xf32>
    %444 = vector.shape_cast %443 : vector<1x1x2x256xf32> to vector<2x256xf32>
    %c0_192 = arith.constant 0 : index
    %c3_193 = arith.constant 3 : index
    %c1_194 = arith.constant 1 : index
    %c16_195 = arith.constant 16 : index
    %445 = vector.load %arg3[%c0_192, %c3_193, %c1_194, %c16_195] : memref<1x4x4x290xf32, #tpu.memory_space<vmem>>, vector<1x1x2x256xf32>
    %446 = vector.shape_cast %445 : vector<1x1x2x256xf32> to vector<2x256xf32>
    %447 = vector.broadcast %441 : f32 to vector<2x256xf32>
    %448 = arith.mulf %447, %444 : vector<2x256xf32>
    %449 = arith.addf %434, %448 : vector<2x256xf32>
    %450 = vector.broadcast %442 : f32 to vector<2x256xf32>
    %451 = arith.mulf %450, %446 : vector<2x256xf32>
    %452 = arith.subf %449, %451 : vector<2x256xf32>
    %453 = vector.broadcast %441 : f32 to vector<2x256xf32>
    %454 = arith.mulf %453, %446 : vector<2x256xf32>
    %455 = arith.addf %440, %454 : vector<2x256xf32>
    %456 = vector.broadcast %442 : f32 to vector<2x256xf32>
    %457 = arith.mulf %456, %444 : vector<2x256xf32>
    %458 = arith.addf %455, %457 : vector<2x256xf32>
    %c65 = arith.constant 65 : index
    %459 = memref.load %arg1[%c65] : memref<108xf32, #tpu.memory_space<smem>>
    %c92 = arith.constant 92 : index
    %460 = memref.load %arg1[%c92] : memref<108xf32, #tpu.memory_space<smem>>
    %c0_196 = arith.constant 0 : index
    %c2_197 = arith.constant 2 : index
    %c2_198 = arith.constant 2 : index
    %c16_199 = arith.constant 16 : index
    %461 = vector.load %arg3[%c0_196, %c2_197, %c2_198, %c16_199] : memref<1x4x4x290xf32, #tpu.memory_space<vmem>>, vector<1x1x2x256xf32>
    %462 = vector.shape_cast %461 : vector<1x1x2x256xf32> to vector<2x256xf32>
    %c0_200 = arith.constant 0 : index
    %c3_201 = arith.constant 3 : index
    %c2_202 = arith.constant 2 : index
    %c16_203 = arith.constant 16 : index
    %463 = vector.load %arg3[%c0_200, %c3_201, %c2_202, %c16_203] : memref<1x4x4x290xf32, #tpu.memory_space<vmem>>, vector<1x1x2x256xf32>
    %464 = vector.shape_cast %463 : vector<1x1x2x256xf32> to vector<2x256xf32>
    %465 = vector.broadcast %459 : f32 to vector<2x256xf32>
    %466 = arith.mulf %465, %462 : vector<2x256xf32>
    %467 = arith.addf %452, %466 : vector<2x256xf32>
    %468 = vector.broadcast %460 : f32 to vector<2x256xf32>
    %469 = arith.mulf %468, %464 : vector<2x256xf32>
    %470 = arith.subf %467, %469 : vector<2x256xf32>
    %471 = vector.broadcast %459 : f32 to vector<2x256xf32>
    %472 = arith.mulf %471, %464 : vector<2x256xf32>
    %473 = arith.addf %458, %472 : vector<2x256xf32>
    %474 = vector.broadcast %460 : f32 to vector<2x256xf32>
    %475 = arith.mulf %474, %462 : vector<2x256xf32>
    %476 = arith.addf %473, %475 : vector<2x256xf32>
    %477 = arith.mulf %20, %470 : vector<2x256xf32>
    %478 = arith.addf %364, %477 : vector<2x256xf32>
    %479 = arith.mulf %20, %476 : vector<2x256xf32>
    %480 = arith.addf %366, %479 : vector<2x256xf32>
    %cst_204 = arith.constant 0.000000e+00 : f32
    %481 = vector.broadcast %cst_204 : f32 to vector<2x256xf32>
    %cst_205 = arith.constant 0.000000e+00 : f32
    %482 = vector.broadcast %cst_205 : f32 to vector<2x256xf32>
    %c12 = arith.constant 12 : index
    %483 = memref.load %arg1[%c12] : memref<108xf32, #tpu.memory_space<smem>>
    %c39 = arith.constant 39 : index
    %484 = memref.load %arg1[%c39] : memref<108xf32, #tpu.memory_space<smem>>
    %c0_206 = arith.constant 0 : index
    %c0_207 = arith.constant 0 : index
    %c0_208 = arith.constant 0 : index
    %c17 = arith.constant 17 : index
    %485 = vector.load %arg3[%c0_206, %c0_207, %c0_208, %c17] : memref<1x4x4x290xf32, #tpu.memory_space<vmem>>, vector<1x1x2x256xf32>
    %486 = vector.shape_cast %485 : vector<1x1x2x256xf32> to vector<2x256xf32>
    %c0_209 = arith.constant 0 : index
    %c1_210 = arith.constant 1 : index
    %c0_211 = arith.constant 0 : index
    %c17_212 = arith.constant 17 : index
    %487 = vector.load %arg3[%c0_209, %c1_210, %c0_211, %c17_212] : memref<1x4x4x290xf32, #tpu.memory_space<vmem>>, vector<1x1x2x256xf32>
    %488 = vector.shape_cast %487 : vector<1x1x2x256xf32> to vector<2x256xf32>
    %489 = vector.broadcast %483 : f32 to vector<2x256xf32>
    %490 = arith.mulf %489, %486 : vector<2x256xf32>
    %491 = arith.addf %481, %490 : vector<2x256xf32>
    %492 = vector.broadcast %484 : f32 to vector<2x256xf32>
    %493 = arith.mulf %492, %488 : vector<2x256xf32>
    %494 = arith.subf %491, %493 : vector<2x256xf32>
    %495 = vector.broadcast %483 : f32 to vector<2x256xf32>
    %496 = arith.mulf %495, %488 : vector<2x256xf32>
    %497 = arith.addf %482, %496 : vector<2x256xf32>
    %498 = vector.broadcast %484 : f32 to vector<2x256xf32>
    %499 = arith.mulf %498, %486 : vector<2x256xf32>
    %500 = arith.addf %497, %499 : vector<2x256xf32>
    %c13 = arith.constant 13 : index
    %501 = memref.load %arg1[%c13] : memref<108xf32, #tpu.memory_space<smem>>
    %c40 = arith.constant 40 : index
    %502 = memref.load %arg1[%c40] : memref<108xf32, #tpu.memory_space<smem>>
    %c0_213 = arith.constant 0 : index
    %c0_214 = arith.constant 0 : index
    %c1_215 = arith.constant 1 : index
    %c17_216 = arith.constant 17 : index
    %503 = vector.load %arg3[%c0_213, %c0_214, %c1_215, %c17_216] : memref<1x4x4x290xf32, #tpu.memory_space<vmem>>, vector<1x1x2x256xf32>
    %504 = vector.shape_cast %503 : vector<1x1x2x256xf32> to vector<2x256xf32>
    %c0_217 = arith.constant 0 : index
    %c1_218 = arith.constant 1 : index
    %c1_219 = arith.constant 1 : index
    %c17_220 = arith.constant 17 : index
    %505 = vector.load %arg3[%c0_217, %c1_218, %c1_219, %c17_220] : memref<1x4x4x290xf32, #tpu.memory_space<vmem>>, vector<1x1x2x256xf32>
    %506 = vector.shape_cast %505 : vector<1x1x2x256xf32> to vector<2x256xf32>
    %507 = vector.broadcast %501 : f32 to vector<2x256xf32>
    %508 = arith.mulf %507, %504 : vector<2x256xf32>
    %509 = arith.addf %494, %508 : vector<2x256xf32>
    %510 = vector.broadcast %502 : f32 to vector<2x256xf32>
    %511 = arith.mulf %510, %506 : vector<2x256xf32>
    %512 = arith.subf %509, %511 : vector<2x256xf32>
    %513 = vector.broadcast %501 : f32 to vector<2x256xf32>
    %514 = arith.mulf %513, %506 : vector<2x256xf32>
    %515 = arith.addf %500, %514 : vector<2x256xf32>
    %516 = vector.broadcast %502 : f32 to vector<2x256xf32>
    %517 = arith.mulf %516, %504 : vector<2x256xf32>
    %518 = arith.addf %515, %517 : vector<2x256xf32>
    %c14 = arith.constant 14 : index
    %519 = memref.load %arg1[%c14] : memref<108xf32, #tpu.memory_space<smem>>
    %c41 = arith.constant 41 : index
    %520 = memref.load %arg1[%c41] : memref<108xf32, #tpu.memory_space<smem>>
    %c0_221 = arith.constant 0 : index
    %c0_222 = arith.constant 0 : index
    %c2_223 = arith.constant 2 : index
    %c17_224 = arith.constant 17 : index
    %521 = vector.load %arg3[%c0_221, %c0_222, %c2_223, %c17_224] : memref<1x4x4x290xf32, #tpu.memory_space<vmem>>, vector<1x1x2x256xf32>
    %522 = vector.shape_cast %521 : vector<1x1x2x256xf32> to vector<2x256xf32>
    %c0_225 = arith.constant 0 : index
    %c1_226 = arith.constant 1 : index
    %c2_227 = arith.constant 2 : index
    %c17_228 = arith.constant 17 : index
    %523 = vector.load %arg3[%c0_225, %c1_226, %c2_227, %c17_228] : memref<1x4x4x290xf32, #tpu.memory_space<vmem>>, vector<1x1x2x256xf32>
    %524 = vector.shape_cast %523 : vector<1x1x2x256xf32> to vector<2x256xf32>
    %525 = vector.broadcast %519 : f32 to vector<2x256xf32>
    %526 = arith.mulf %525, %522 : vector<2x256xf32>
    %527 = arith.addf %512, %526 : vector<2x256xf32>
    %528 = vector.broadcast %520 : f32 to vector<2x256xf32>
    %529 = arith.mulf %528, %524 : vector<2x256xf32>
    %530 = arith.subf %527, %529 : vector<2x256xf32>
    %531 = vector.broadcast %519 : f32 to vector<2x256xf32>
    %532 = arith.mulf %531, %524 : vector<2x256xf32>
    %533 = arith.addf %518, %532 : vector<2x256xf32>
    %534 = vector.broadcast %520 : f32 to vector<2x256xf32>
    %535 = arith.mulf %534, %522 : vector<2x256xf32>
    %536 = arith.addf %533, %535 : vector<2x256xf32>
    %c66 = arith.constant 66 : index
    %537 = memref.load %arg1[%c66] : memref<108xf32, #tpu.memory_space<smem>>
    %c93 = arith.constant 93 : index
    %538 = memref.load %arg1[%c93] : memref<108xf32, #tpu.memory_space<smem>>
    %c0_229 = arith.constant 0 : index
    %c2_230 = arith.constant 2 : index
    %c0_231 = arith.constant 0 : index
    %c17_232 = arith.constant 17 : index
    %539 = vector.load %arg3[%c0_229, %c2_230, %c0_231, %c17_232] : memref<1x4x4x290xf32, #tpu.memory_space<vmem>>, vector<1x1x2x256xf32>
    %540 = vector.shape_cast %539 : vector<1x1x2x256xf32> to vector<2x256xf32>
    %c0_233 = arith.constant 0 : index
    %c3_234 = arith.constant 3 : index
    %c0_235 = arith.constant 0 : index
    %c17_236 = arith.constant 17 : index
    %541 = vector.load %arg3[%c0_233, %c3_234, %c0_235, %c17_236] : memref<1x4x4x290xf32, #tpu.memory_space<vmem>>, vector<1x1x2x256xf32>
    %542 = vector.shape_cast %541 : vector<1x1x2x256xf32> to vector<2x256xf32>
    %543 = vector.broadcast %537 : f32 to vector<2x256xf32>
    %544 = arith.mulf %543, %540 : vector<2x256xf32>
    %545 = arith.addf %530, %544 : vector<2x256xf32>
    %546 = vector.broadcast %538 : f32 to vector<2x256xf32>
    %547 = arith.mulf %546, %542 : vector<2x256xf32>
    %548 = arith.subf %545, %547 : vector<2x256xf32>
    %549 = vector.broadcast %537 : f32 to vector<2x256xf32>
    %550 = arith.mulf %549, %542 : vector<2x256xf32>
    %551 = arith.addf %536, %550 : vector<2x256xf32>
    %552 = vector.broadcast %538 : f32 to vector<2x256xf32>
    %553 = arith.mulf %552, %540 : vector<2x256xf32>
    %554 = arith.addf %551, %553 : vector<2x256xf32>
    %c67 = arith.constant 67 : index
    %555 = memref.load %arg1[%c67] : memref<108xf32, #tpu.memory_space<smem>>
    %c94 = arith.constant 94 : index
    %556 = memref.load %arg1[%c94] : memref<108xf32, #tpu.memory_space<smem>>
    %c0_237 = arith.constant 0 : index
    %c2_238 = arith.constant 2 : index
    %c1_239 = arith.constant 1 : index
    %c17_240 = arith.constant 17 : index
    %557 = vector.load %arg3[%c0_237, %c2_238, %c1_239, %c17_240] : memref<1x4x4x290xf32, #tpu.memory_space<vmem>>, vector<1x1x2x256xf32>
    %558 = vector.shape_cast %557 : vector<1x1x2x256xf32> to vector<2x256xf32>
    %c0_241 = arith.constant 0 : index
    %c3_242 = arith.constant 3 : index
    %c1_243 = arith.constant 1 : index
    %c17_244 = arith.constant 17 : index
    %559 = vector.load %arg3[%c0_241, %c3_242, %c1_243, %c17_244] : memref<1x4x4x290xf32, #tpu.memory_space<vmem>>, vector<1x1x2x256xf32>
    %560 = vector.shape_cast %559 : vector<1x1x2x256xf32> to vector<2x256xf32>
    %561 = vector.broadcast %555 : f32 to vector<2x256xf32>
    %562 = arith.mulf %561, %558 : vector<2x256xf32>
    %563 = arith.addf %548, %562 : vector<2x256xf32>
    %564 = vector.broadcast %556 : f32 to vector<2x256xf32>
    %565 = arith.mulf %564, %560 : vector<2x256xf32>
    %566 = arith.subf %563, %565 : vector<2x256xf32>
    %567 = vector.broadcast %555 : f32 to vector<2x256xf32>
    %568 = arith.mulf %567, %560 : vector<2x256xf32>
    %569 = arith.addf %554, %568 : vector<2x256xf32>
    %570 = vector.broadcast %556 : f32 to vector<2x256xf32>
    %571 = arith.mulf %570, %558 : vector<2x256xf32>
    %572 = arith.addf %569, %571 : vector<2x256xf32>
    %c68 = arith.constant 68 : index
    %573 = memref.load %arg1[%c68] : memref<108xf32, #tpu.memory_space<smem>>
    %c95 = arith.constant 95 : index
    %574 = memref.load %arg1[%c95] : memref<108xf32, #tpu.memory_space<smem>>
    %c0_245 = arith.constant 0 : index
    %c2_246 = arith.constant 2 : index
    %c2_247 = arith.constant 2 : index
    %c17_248 = arith.constant 17 : index
    %575 = vector.load %arg3[%c0_245, %c2_246, %c2_247, %c17_248] : memref<1x4x4x290xf32, #tpu.memory_space<vmem>>, vector<1x1x2x256xf32>
    %576 = vector.shape_cast %575 : vector<1x1x2x256xf32> to vector<2x256xf32>
    %c0_249 = arith.constant 0 : index
    %c3_250 = arith.constant 3 : index
    %c2_251 = arith.constant 2 : index
    %c17_252 = arith.constant 17 : index
    %577 = vector.load %arg3[%c0_249, %c3_250, %c2_251, %c17_252] : memref<1x4x4x290xf32, #tpu.memory_space<vmem>>, vector<1x1x2x256xf32>
    %578 = vector.shape_cast %577 : vector<1x1x2x256xf32> to vector<2x256xf32>
    %579 = vector.broadcast %573 : f32 to vector<2x256xf32>
    %580 = arith.mulf %579, %576 : vector<2x256xf32>
    %581 = arith.addf %566, %580 : vector<2x256xf32>
    %582 = vector.broadcast %574 : f32 to vector<2x256xf32>
    %583 = arith.mulf %582, %578 : vector<2x256xf32>
    %584 = arith.subf %581, %583 : vector<2x256xf32>
    %585 = vector.broadcast %573 : f32 to vector<2x256xf32>
    %586 = arith.mulf %585, %578 : vector<2x256xf32>
    %587 = arith.addf %572, %586 : vector<2x256xf32>
    %588 = vector.broadcast %574 : f32 to vector<2x256xf32>
    %589 = arith.mulf %588, %576 : vector<2x256xf32>
    %590 = arith.addf %587, %589 : vector<2x256xf32>
    %591 = arith.addf %478, %584 : vector<2x256xf32>
    %592 = arith.addf %480, %590 : vector<2x256xf32>
    %cst_253 = arith.constant 0.000000e+00 : f32
    %593 = vector.broadcast %cst_253 : f32 to vector<2x256xf32>
    %cst_254 = arith.constant 0.000000e+00 : f32
    %594 = vector.broadcast %cst_254 : f32 to vector<2x256xf32>
    %c15 = arith.constant 15 : index
    %595 = memref.load %arg1[%c15] : memref<108xf32, #tpu.memory_space<smem>>
    %c42 = arith.constant 42 : index
    %596 = memref.load %arg1[%c42] : memref<108xf32, #tpu.memory_space<smem>>
    %c0_255 = arith.constant 0 : index
    %c0_256 = arith.constant 0 : index
    %c0_257 = arith.constant 0 : index
    %c18 = arith.constant 18 : index
    %597 = vector.load %arg3[%c0_255, %c0_256, %c0_257, %c18] : memref<1x4x4x290xf32, #tpu.memory_space<vmem>>, vector<1x1x2x256xf32>
    %598 = vector.shape_cast %597 : vector<1x1x2x256xf32> to vector<2x256xf32>
    %c0_258 = arith.constant 0 : index
    %c1_259 = arith.constant 1 : index
    %c0_260 = arith.constant 0 : index
    %c18_261 = arith.constant 18 : index
    %599 = vector.load %arg3[%c0_258, %c1_259, %c0_260, %c18_261] : memref<1x4x4x290xf32, #tpu.memory_space<vmem>>, vector<1x1x2x256xf32>
    %600 = vector.shape_cast %599 : vector<1x1x2x256xf32> to vector<2x256xf32>
    %601 = vector.broadcast %595 : f32 to vector<2x256xf32>
    %602 = arith.mulf %601, %598 : vector<2x256xf32>
    %603 = arith.addf %593, %602 : vector<2x256xf32>
    %604 = vector.broadcast %596 : f32 to vector<2x256xf32>
    %605 = arith.mulf %604, %600 : vector<2x256xf32>
    %606 = arith.subf %603, %605 : vector<2x256xf32>
    %607 = vector.broadcast %595 : f32 to vector<2x256xf32>
    %608 = arith.mulf %607, %600 : vector<2x256xf32>
    %609 = arith.addf %594, %608 : vector<2x256xf32>
    %610 = vector.broadcast %596 : f32 to vector<2x256xf32>
    %611 = arith.mulf %610, %598 : vector<2x256xf32>
    %612 = arith.addf %609, %611 : vector<2x256xf32>
    %c16_262 = arith.constant 16 : index
    %613 = memref.load %arg1[%c16_262] : memref<108xf32, #tpu.memory_space<smem>>
    %c43 = arith.constant 43 : index
    %614 = memref.load %arg1[%c43] : memref<108xf32, #tpu.memory_space<smem>>
    %c0_263 = arith.constant 0 : index
    %c0_264 = arith.constant 0 : index
    %c1_265 = arith.constant 1 : index
    %c18_266 = arith.constant 18 : index
    %615 = vector.load %arg3[%c0_263, %c0_264, %c1_265, %c18_266] : memref<1x4x4x290xf32, #tpu.memory_space<vmem>>, vector<1x1x2x256xf32>
    %616 = vector.shape_cast %615 : vector<1x1x2x256xf32> to vector<2x256xf32>
    %c0_267 = arith.constant 0 : index
    %c1_268 = arith.constant 1 : index
    %c1_269 = arith.constant 1 : index
    %c18_270 = arith.constant 18 : index
    %617 = vector.load %arg3[%c0_267, %c1_268, %c1_269, %c18_270] : memref<1x4x4x290xf32, #tpu.memory_space<vmem>>, vector<1x1x2x256xf32>
    %618 = vector.shape_cast %617 : vector<1x1x2x256xf32> to vector<2x256xf32>
    %619 = vector.broadcast %613 : f32 to vector<2x256xf32>
    %620 = arith.mulf %619, %616 : vector<2x256xf32>
    %621 = arith.addf %606, %620 : vector<2x256xf32>
    %622 = vector.broadcast %614 : f32 to vector<2x256xf32>
    %623 = arith.mulf %622, %618 : vector<2x256xf32>
    %624 = arith.subf %621, %623 : vector<2x256xf32>
    %625 = vector.broadcast %613 : f32 to vector<2x256xf32>
    %626 = arith.mulf %625, %618 : vector<2x256xf32>
    %627 = arith.addf %612, %626 : vector<2x256xf32>
    %628 = vector.broadcast %614 : f32 to vector<2x256xf32>
    %629 = arith.mulf %628, %616 : vector<2x256xf32>
    %630 = arith.addf %627, %629 : vector<2x256xf32>
    %c17_271 = arith.constant 17 : index
    %631 = memref.load %arg1[%c17_271] : memref<108xf32, #tpu.memory_space<smem>>
    %c44 = arith.constant 44 : index
    %632 = memref.load %arg1[%c44] : memref<108xf32, #tpu.memory_space<smem>>
    %c0_272 = arith.constant 0 : index
    %c0_273 = arith.constant 0 : index
    %c2_274 = arith.constant 2 : index
    %c18_275 = arith.constant 18 : index
    %633 = vector.load %arg3[%c0_272, %c0_273, %c2_274, %c18_275] : memref<1x4x4x290xf32, #tpu.memory_space<vmem>>, vector<1x1x2x256xf32>
    %634 = vector.shape_cast %633 : vector<1x1x2x256xf32> to vector<2x256xf32>
    %c0_276 = arith.constant 0 : index
    %c1_277 = arith.constant 1 : index
    %c2_278 = arith.constant 2 : index
    %c18_279 = arith.constant 18 : index
    %635 = vector.load %arg3[%c0_276, %c1_277, %c2_278, %c18_279] : memref<1x4x4x290xf32, #tpu.memory_space<vmem>>, vector<1x1x2x256xf32>
    %636 = vector.shape_cast %635 : vector<1x1x2x256xf32> to vector<2x256xf32>
    %637 = vector.broadcast %631 : f32 to vector<2x256xf32>
    %638 = arith.mulf %637, %634 : vector<2x256xf32>
    %639 = arith.addf %624, %638 : vector<2x256xf32>
    %640 = vector.broadcast %632 : f32 to vector<2x256xf32>
    %641 = arith.mulf %640, %636 : vector<2x256xf32>
    %642 = arith.subf %639, %641 : vector<2x256xf32>
    %643 = vector.broadcast %631 : f32 to vector<2x256xf32>
    %644 = arith.mulf %643, %636 : vector<2x256xf32>
    %645 = arith.addf %630, %644 : vector<2x256xf32>
    %646 = vector.broadcast %632 : f32 to vector<2x256xf32>
    %647 = arith.mulf %646, %634 : vector<2x256xf32>
    %648 = arith.addf %645, %647 : vector<2x256xf32>
    %c69 = arith.constant 69 : index
    %649 = memref.load %arg1[%c69] : memref<108xf32, #tpu.memory_space<smem>>
    %c96 = arith.constant 96 : index
    %650 = memref.load %arg1[%c96] : memref<108xf32, #tpu.memory_space<smem>>
    %c0_280 = arith.constant 0 : index
    %c2_281 = arith.constant 2 : index
    %c0_282 = arith.constant 0 : index
    %c18_283 = arith.constant 18 : index
    %651 = vector.load %arg3[%c0_280, %c2_281, %c0_282, %c18_283] : memref<1x4x4x290xf32, #tpu.memory_space<vmem>>, vector<1x1x2x256xf32>
    %652 = vector.shape_cast %651 : vector<1x1x2x256xf32> to vector<2x256xf32>
    %c0_284 = arith.constant 0 : index
    %c3_285 = arith.constant 3 : index
    %c0_286 = arith.constant 0 : index
    %c18_287 = arith.constant 18 : index
    %653 = vector.load %arg3[%c0_284, %c3_285, %c0_286, %c18_287] : memref<1x4x4x290xf32, #tpu.memory_space<vmem>>, vector<1x1x2x256xf32>
    %654 = vector.shape_cast %653 : vector<1x1x2x256xf32> to vector<2x256xf32>
    %655 = vector.broadcast %649 : f32 to vector<2x256xf32>
    %656 = arith.mulf %655, %652 : vector<2x256xf32>
    %657 = arith.addf %642, %656 : vector<2x256xf32>
    %658 = vector.broadcast %650 : f32 to vector<2x256xf32>
    %659 = arith.mulf %658, %654 : vector<2x256xf32>
    %660 = arith.subf %657, %659 : vector<2x256xf32>
    %661 = vector.broadcast %649 : f32 to vector<2x256xf32>
    %662 = arith.mulf %661, %654 : vector<2x256xf32>
    %663 = arith.addf %648, %662 : vector<2x256xf32>
    %664 = vector.broadcast %650 : f32 to vector<2x256xf32>
    %665 = arith.mulf %664, %652 : vector<2x256xf32>
    %666 = arith.addf %663, %665 : vector<2x256xf32>
    %c70 = arith.constant 70 : index
    %667 = memref.load %arg1[%c70] : memref<108xf32, #tpu.memory_space<smem>>
    %c97 = arith.constant 97 : index
    %668 = memref.load %arg1[%c97] : memref<108xf32, #tpu.memory_space<smem>>
    %c0_288 = arith.constant 0 : index
    %c2_289 = arith.constant 2 : index
    %c1_290 = arith.constant 1 : index
    %c18_291 = arith.constant 18 : index
    %669 = vector.load %arg3[%c0_288, %c2_289, %c1_290, %c18_291] : memref<1x4x4x290xf32, #tpu.memory_space<vmem>>, vector<1x1x2x256xf32>
    %670 = vector.shape_cast %669 : vector<1x1x2x256xf32> to vector<2x256xf32>
    %c0_292 = arith.constant 0 : index
    %c3_293 = arith.constant 3 : index
    %c1_294 = arith.constant 1 : index
    %c18_295 = arith.constant 18 : index
    %671 = vector.load %arg3[%c0_292, %c3_293, %c1_294, %c18_295] : memref<1x4x4x290xf32, #tpu.memory_space<vmem>>, vector<1x1x2x256xf32>
    %672 = vector.shape_cast %671 : vector<1x1x2x256xf32> to vector<2x256xf32>
    %673 = vector.broadcast %667 : f32 to vector<2x256xf32>
    %674 = arith.mulf %673, %670 : vector<2x256xf32>
    %675 = arith.addf %660, %674 : vector<2x256xf32>
    %676 = vector.broadcast %668 : f32 to vector<2x256xf32>
    %677 = arith.mulf %676, %672 : vector<2x256xf32>
    %678 = arith.subf %675, %677 : vector<2x256xf32>
    %679 = vector.broadcast %667 : f32 to vector<2x256xf32>
    %680 = arith.mulf %679, %672 : vector<2x256xf32>
    %681 = arith.addf %666, %680 : vector<2x256xf32>
    %682 = vector.broadcast %668 : f32 to vector<2x256xf32>
    %683 = arith.mulf %682, %670 : vector<2x256xf32>
    %684 = arith.addf %681, %683 : vector<2x256xf32>
    %c71 = arith.constant 71 : index
    %685 = memref.load %arg1[%c71] : memref<108xf32, #tpu.memory_space<smem>>
    %c98 = arith.constant 98 : index
    %686 = memref.load %arg1[%c98] : memref<108xf32, #tpu.memory_space<smem>>
    %c0_296 = arith.constant 0 : index
    %c2_297 = arith.constant 2 : index
    %c2_298 = arith.constant 2 : index
    %c18_299 = arith.constant 18 : index
    %687 = vector.load %arg3[%c0_296, %c2_297, %c2_298, %c18_299] : memref<1x4x4x290xf32, #tpu.memory_space<vmem>>, vector<1x1x2x256xf32>
    %688 = vector.shape_cast %687 : vector<1x1x2x256xf32> to vector<2x256xf32>
    %c0_300 = arith.constant 0 : index
    %c3_301 = arith.constant 3 : index
    %c2_302 = arith.constant 2 : index
    %c18_303 = arith.constant 18 : index
    %689 = vector.load %arg3[%c0_300, %c3_301, %c2_302, %c18_303] : memref<1x4x4x290xf32, #tpu.memory_space<vmem>>, vector<1x1x2x256xf32>
    %690 = vector.shape_cast %689 : vector<1x1x2x256xf32> to vector<2x256xf32>
    %691 = vector.broadcast %685 : f32 to vector<2x256xf32>
    %692 = arith.mulf %691, %688 : vector<2x256xf32>
    %693 = arith.addf %678, %692 : vector<2x256xf32>
    %694 = vector.broadcast %686 : f32 to vector<2x256xf32>
    %695 = arith.mulf %694, %690 : vector<2x256xf32>
    %696 = arith.subf %693, %695 : vector<2x256xf32>
    %697 = vector.broadcast %685 : f32 to vector<2x256xf32>
    %698 = arith.mulf %697, %690 : vector<2x256xf32>
    %699 = arith.addf %684, %698 : vector<2x256xf32>
    %700 = vector.broadcast %686 : f32 to vector<2x256xf32>
    %701 = arith.mulf %700, %688 : vector<2x256xf32>
    %702 = arith.addf %699, %701 : vector<2x256xf32>
    %703 = arith.mulf %24, %696 : vector<2x256xf32>
    %704 = arith.addf %591, %703 : vector<2x256xf32>
    %705 = arith.mulf %24, %702 : vector<2x256xf32>
    %706 = arith.addf %592, %705 : vector<2x256xf32>
    %cst_304 = arith.constant 0.000000e+00 : f32
    %707 = vector.broadcast %cst_304 : f32 to vector<2x256xf32>
    %cst_305 = arith.constant 0.000000e+00 : f32
    %708 = vector.broadcast %cst_305 : f32 to vector<2x256xf32>
    %c18_306 = arith.constant 18 : index
    %709 = memref.load %arg1[%c18_306] : memref<108xf32, #tpu.memory_space<smem>>
    %c45 = arith.constant 45 : index
    %710 = memref.load %arg1[%c45] : memref<108xf32, #tpu.memory_space<smem>>
    %c0_307 = arith.constant 0 : index
    %c0_308 = arith.constant 0 : index
    %c0_309 = arith.constant 0 : index
    %c32_310 = arith.constant 32 : index
    %711 = vector.load %arg3[%c0_307, %c0_308, %c0_309, %c32_310] : memref<1x4x4x290xf32, #tpu.memory_space<vmem>>, vector<1x1x2x256xf32>
    %712 = vector.shape_cast %711 : vector<1x1x2x256xf32> to vector<2x256xf32>
    %c0_311 = arith.constant 0 : index
    %c1_312 = arith.constant 1 : index
    %c0_313 = arith.constant 0 : index
    %c32_314 = arith.constant 32 : index
    %713 = vector.load %arg3[%c0_311, %c1_312, %c0_313, %c32_314] : memref<1x4x4x290xf32, #tpu.memory_space<vmem>>, vector<1x1x2x256xf32>
    %714 = vector.shape_cast %713 : vector<1x1x2x256xf32> to vector<2x256xf32>
    %715 = vector.broadcast %709 : f32 to vector<2x256xf32>
    %716 = arith.mulf %715, %712 : vector<2x256xf32>
    %717 = arith.addf %707, %716 : vector<2x256xf32>
    %718 = vector.broadcast %710 : f32 to vector<2x256xf32>
    %719 = arith.mulf %718, %714 : vector<2x256xf32>
    %720 = arith.subf %717, %719 : vector<2x256xf32>
    %721 = vector.broadcast %709 : f32 to vector<2x256xf32>
    %722 = arith.mulf %721, %714 : vector<2x256xf32>
    %723 = arith.addf %708, %722 : vector<2x256xf32>
    %724 = vector.broadcast %710 : f32 to vector<2x256xf32>
    %725 = arith.mulf %724, %712 : vector<2x256xf32>
    %726 = arith.addf %723, %725 : vector<2x256xf32>
    %c19 = arith.constant 19 : index
    %727 = memref.load %arg1[%c19] : memref<108xf32, #tpu.memory_space<smem>>
    %c46 = arith.constant 46 : index
    %728 = memref.load %arg1[%c46] : memref<108xf32, #tpu.memory_space<smem>>
    %c0_315 = arith.constant 0 : index
    %c0_316 = arith.constant 0 : index
    %c1_317 = arith.constant 1 : index
    %c32_318 = arith.constant 32 : index
    %729 = vector.load %arg3[%c0_315, %c0_316, %c1_317, %c32_318] : memref<1x4x4x290xf32, #tpu.memory_space<vmem>>, vector<1x1x2x256xf32>
    %730 = vector.shape_cast %729 : vector<1x1x2x256xf32> to vector<2x256xf32>
    %c0_319 = arith.constant 0 : index
    %c1_320 = arith.constant 1 : index
    %c1_321 = arith.constant 1 : index
    %c32_322 = arith.constant 32 : index
    %731 = vector.load %arg3[%c0_319, %c1_320, %c1_321, %c32_322] : memref<1x4x4x290xf32, #tpu.memory_space<vmem>>, vector<1x1x2x256xf32>
    %732 = vector.shape_cast %731 : vector<1x1x2x256xf32> to vector<2x256xf32>
    %733 = vector.broadcast %727 : f32 to vector<2x256xf32>
    %734 = arith.mulf %733, %730 : vector<2x256xf32>
    %735 = arith.addf %720, %734 : vector<2x256xf32>
    %736 = vector.broadcast %728 : f32 to vector<2x256xf32>
    %737 = arith.mulf %736, %732 : vector<2x256xf32>
    %738 = arith.subf %735, %737 : vector<2x256xf32>
    %739 = vector.broadcast %727 : f32 to vector<2x256xf32>
    %740 = arith.mulf %739, %732 : vector<2x256xf32>
    %741 = arith.addf %726, %740 : vector<2x256xf32>
    %742 = vector.broadcast %728 : f32 to vector<2x256xf32>
    %743 = arith.mulf %742, %730 : vector<2x256xf32>
    %744 = arith.addf %741, %743 : vector<2x256xf32>
    %c20 = arith.constant 20 : index
    %745 = memref.load %arg1[%c20] : memref<108xf32, #tpu.memory_space<smem>>
    %c47 = arith.constant 47 : index
    %746 = memref.load %arg1[%c47] : memref<108xf32, #tpu.memory_space<smem>>
    %c0_323 = arith.constant 0 : index
    %c0_324 = arith.constant 0 : index
    %c2_325 = arith.constant 2 : index
    %c32_326 = arith.constant 32 : index
    %747 = vector.load %arg3[%c0_323, %c0_324, %c2_325, %c32_326] : memref<1x4x4x290xf32, #tpu.memory_space<vmem>>, vector<1x1x2x256xf32>
    %748 = vector.shape_cast %747 : vector<1x1x2x256xf32> to vector<2x256xf32>
    %c0_327 = arith.constant 0 : index
    %c1_328 = arith.constant 1 : index
    %c2_329 = arith.constant 2 : index
    %c32_330 = arith.constant 32 : index
    %749 = vector.load %arg3[%c0_327, %c1_328, %c2_329, %c32_330] : memref<1x4x4x290xf32, #tpu.memory_space<vmem>>, vector<1x1x2x256xf32>
    %750 = vector.shape_cast %749 : vector<1x1x2x256xf32> to vector<2x256xf32>
    %751 = vector.broadcast %745 : f32 to vector<2x256xf32>
    %752 = arith.mulf %751, %748 : vector<2x256xf32>
    %753 = arith.addf %738, %752 : vector<2x256xf32>
    %754 = vector.broadcast %746 : f32 to vector<2x256xf32>
    %755 = arith.mulf %754, %750 : vector<2x256xf32>
    %756 = arith.subf %753, %755 : vector<2x256xf32>
    %757 = vector.broadcast %745 : f32 to vector<2x256xf32>
    %758 = arith.mulf %757, %750 : vector<2x256xf32>
    %759 = arith.addf %744, %758 : vector<2x256xf32>
    %760 = vector.broadcast %746 : f32 to vector<2x256xf32>
    %761 = arith.mulf %760, %748 : vector<2x256xf32>
    %762 = arith.addf %759, %761 : vector<2x256xf32>
    %c72 = arith.constant 72 : index
    %763 = memref.load %arg1[%c72] : memref<108xf32, #tpu.memory_space<smem>>
    %c99 = arith.constant 99 : index
    %764 = memref.load %arg1[%c99] : memref<108xf32, #tpu.memory_space<smem>>
    %c0_331 = arith.constant 0 : index
    %c2_332 = arith.constant 2 : index
    %c0_333 = arith.constant 0 : index
    %c32_334 = arith.constant 32 : index
    %765 = vector.load %arg3[%c0_331, %c2_332, %c0_333, %c32_334] : memref<1x4x4x290xf32, #tpu.memory_space<vmem>>, vector<1x1x2x256xf32>
    %766 = vector.shape_cast %765 : vector<1x1x2x256xf32> to vector<2x256xf32>
    %c0_335 = arith.constant 0 : index
    %c3_336 = arith.constant 3 : index
    %c0_337 = arith.constant 0 : index
    %c32_338 = arith.constant 32 : index
    %767 = vector.load %arg3[%c0_335, %c3_336, %c0_337, %c32_338] : memref<1x4x4x290xf32, #tpu.memory_space<vmem>>, vector<1x1x2x256xf32>
    %768 = vector.shape_cast %767 : vector<1x1x2x256xf32> to vector<2x256xf32>
    %769 = vector.broadcast %763 : f32 to vector<2x256xf32>
    %770 = arith.mulf %769, %766 : vector<2x256xf32>
    %771 = arith.addf %756, %770 : vector<2x256xf32>
    %772 = vector.broadcast %764 : f32 to vector<2x256xf32>
    %773 = arith.mulf %772, %768 : vector<2x256xf32>
    %774 = arith.subf %771, %773 : vector<2x256xf32>
    %775 = vector.broadcast %763 : f32 to vector<2x256xf32>
    %776 = arith.mulf %775, %768 : vector<2x256xf32>
    %777 = arith.addf %762, %776 : vector<2x256xf32>
    %778 = vector.broadcast %764 : f32 to vector<2x256xf32>
    %779 = arith.mulf %778, %766 : vector<2x256xf32>
    %780 = arith.addf %777, %779 : vector<2x256xf32>
    %c73 = arith.constant 73 : index
    %781 = memref.load %arg1[%c73] : memref<108xf32, #tpu.memory_space<smem>>
    %c100 = arith.constant 100 : index
    %782 = memref.load %arg1[%c100] : memref<108xf32, #tpu.memory_space<smem>>
    %c0_339 = arith.constant 0 : index
    %c2_340 = arith.constant 2 : index
    %c1_341 = arith.constant 1 : index
    %c32_342 = arith.constant 32 : index
    %783 = vector.load %arg3[%c0_339, %c2_340, %c1_341, %c32_342] : memref<1x4x4x290xf32, #tpu.memory_space<vmem>>, vector<1x1x2x256xf32>
    %784 = vector.shape_cast %783 : vector<1x1x2x256xf32> to vector<2x256xf32>
    %c0_343 = arith.constant 0 : index
    %c3_344 = arith.constant 3 : index
    %c1_345 = arith.constant 1 : index
    %c32_346 = arith.constant 32 : index
    %785 = vector.load %arg3[%c0_343, %c3_344, %c1_345, %c32_346] : memref<1x4x4x290xf32, #tpu.memory_space<vmem>>, vector<1x1x2x256xf32>
    %786 = vector.shape_cast %785 : vector<1x1x2x256xf32> to vector<2x256xf32>
    %787 = vector.broadcast %781 : f32 to vector<2x256xf32>
    %788 = arith.mulf %787, %784 : vector<2x256xf32>
    %789 = arith.addf %774, %788 : vector<2x256xf32>
    %790 = vector.broadcast %782 : f32 to vector<2x256xf32>
    %791 = arith.mulf %790, %786 : vector<2x256xf32>
    %792 = arith.subf %789, %791 : vector<2x256xf32>
    %793 = vector.broadcast %781 : f32 to vector<2x256xf32>
    %794 = arith.mulf %793, %786 : vector<2x256xf32>
    %795 = arith.addf %780, %794 : vector<2x256xf32>
    %796 = vector.broadcast %782 : f32 to vector<2x256xf32>
    %797 = arith.mulf %796, %784 : vector<2x256xf32>
    %798 = arith.addf %795, %797 : vector<2x256xf32>
    %c74 = arith.constant 74 : index
    %799 = memref.load %arg1[%c74] : memref<108xf32, #tpu.memory_space<smem>>
    %c101 = arith.constant 101 : index
    %800 = memref.load %arg1[%c101] : memref<108xf32, #tpu.memory_space<smem>>
    %c0_347 = arith.constant 0 : index
    %c2_348 = arith.constant 2 : index
    %c2_349 = arith.constant 2 : index
    %c32_350 = arith.constant 32 : index
    %801 = vector.load %arg3[%c0_347, %c2_348, %c2_349, %c32_350] : memref<1x4x4x290xf32, #tpu.memory_space<vmem>>, vector<1x1x2x256xf32>
    %802 = vector.shape_cast %801 : vector<1x1x2x256xf32> to vector<2x256xf32>
    %c0_351 = arith.constant 0 : index
    %c3_352 = arith.constant 3 : index
    %c2_353 = arith.constant 2 : index
    %c32_354 = arith.constant 32 : index
    %803 = vector.load %arg3[%c0_351, %c3_352, %c2_353, %c32_354] : memref<1x4x4x290xf32, #tpu.memory_space<vmem>>, vector<1x1x2x256xf32>
    %804 = vector.shape_cast %803 : vector<1x1x2x256xf32> to vector<2x256xf32>
    %805 = vector.broadcast %799 : f32 to vector<2x256xf32>
    %806 = arith.mulf %805, %802 : vector<2x256xf32>
    %807 = arith.addf %792, %806 : vector<2x256xf32>
    %808 = vector.broadcast %800 : f32 to vector<2x256xf32>
    %809 = arith.mulf %808, %804 : vector<2x256xf32>
    %810 = arith.subf %807, %809 : vector<2x256xf32>
    %811 = vector.broadcast %799 : f32 to vector<2x256xf32>
    %812 = arith.mulf %811, %804 : vector<2x256xf32>
    %813 = arith.addf %798, %812 : vector<2x256xf32>
    %814 = vector.broadcast %800 : f32 to vector<2x256xf32>
    %815 = arith.mulf %814, %802 : vector<2x256xf32>
    %816 = arith.addf %813, %815 : vector<2x256xf32>
    %817 = arith.mulf %20, %810 : vector<2x256xf32>
    %818 = arith.addf %704, %817 : vector<2x256xf32>
    %819 = arith.mulf %20, %816 : vector<2x256xf32>
    %820 = arith.addf %706, %819 : vector<2x256xf32>
    %cst_355 = arith.constant 0.000000e+00 : f32
    %821 = vector.broadcast %cst_355 : f32 to vector<2x256xf32>
    %cst_356 = arith.constant 0.000000e+00 : f32
    %822 = vector.broadcast %cst_356 : f32 to vector<2x256xf32>
    %c21 = arith.constant 21 : index
    %823 = memref.load %arg1[%c21] : memref<108xf32, #tpu.memory_space<smem>>
    %c48 = arith.constant 48 : index
    %824 = memref.load %arg1[%c48] : memref<108xf32, #tpu.memory_space<smem>>
    %c0_357 = arith.constant 0 : index
    %c0_358 = arith.constant 0 : index
    %c0_359 = arith.constant 0 : index
    %c33_360 = arith.constant 33 : index
    %825 = vector.load %arg3[%c0_357, %c0_358, %c0_359, %c33_360] : memref<1x4x4x290xf32, #tpu.memory_space<vmem>>, vector<1x1x2x256xf32>
    %826 = vector.shape_cast %825 : vector<1x1x2x256xf32> to vector<2x256xf32>
    %c0_361 = arith.constant 0 : index
    %c1_362 = arith.constant 1 : index
    %c0_363 = arith.constant 0 : index
    %c33_364 = arith.constant 33 : index
    %827 = vector.load %arg3[%c0_361, %c1_362, %c0_363, %c33_364] : memref<1x4x4x290xf32, #tpu.memory_space<vmem>>, vector<1x1x2x256xf32>
    %828 = vector.shape_cast %827 : vector<1x1x2x256xf32> to vector<2x256xf32>
    %829 = vector.broadcast %823 : f32 to vector<2x256xf32>
    %830 = arith.mulf %829, %826 : vector<2x256xf32>
    %831 = arith.addf %821, %830 : vector<2x256xf32>
    %832 = vector.broadcast %824 : f32 to vector<2x256xf32>
    %833 = arith.mulf %832, %828 : vector<2x256xf32>
    %834 = arith.subf %831, %833 : vector<2x256xf32>
    %835 = vector.broadcast %823 : f32 to vector<2x256xf32>
    %836 = arith.mulf %835, %828 : vector<2x256xf32>
    %837 = arith.addf %822, %836 : vector<2x256xf32>
    %838 = vector.broadcast %824 : f32 to vector<2x256xf32>
    %839 = arith.mulf %838, %826 : vector<2x256xf32>
    %840 = arith.addf %837, %839 : vector<2x256xf32>
    %c22 = arith.constant 22 : index
    %841 = memref.load %arg1[%c22] : memref<108xf32, #tpu.memory_space<smem>>
    %c49 = arith.constant 49 : index
    %842 = memref.load %arg1[%c49] : memref<108xf32, #tpu.memory_space<smem>>
    %c0_365 = arith.constant 0 : index
    %c0_366 = arith.constant 0 : index
    %c1_367 = arith.constant 1 : index
    %c33_368 = arith.constant 33 : index
    %843 = vector.load %arg3[%c0_365, %c0_366, %c1_367, %c33_368] : memref<1x4x4x290xf32, #tpu.memory_space<vmem>>, vector<1x1x2x256xf32>
    %844 = vector.shape_cast %843 : vector<1x1x2x256xf32> to vector<2x256xf32>
    %c0_369 = arith.constant 0 : index
    %c1_370 = arith.constant 1 : index
    %c1_371 = arith.constant 1 : index
    %c33_372 = arith.constant 33 : index
    %845 = vector.load %arg3[%c0_369, %c1_370, %c1_371, %c33_372] : memref<1x4x4x290xf32, #tpu.memory_space<vmem>>, vector<1x1x2x256xf32>
    %846 = vector.shape_cast %845 : vector<1x1x2x256xf32> to vector<2x256xf32>
    %847 = vector.broadcast %841 : f32 to vector<2x256xf32>
    %848 = arith.mulf %847, %844 : vector<2x256xf32>
    %849 = arith.addf %834, %848 : vector<2x256xf32>
    %850 = vector.broadcast %842 : f32 to vector<2x256xf32>
    %851 = arith.mulf %850, %846 : vector<2x256xf32>
    %852 = arith.subf %849, %851 : vector<2x256xf32>
    %853 = vector.broadcast %841 : f32 to vector<2x256xf32>
    %854 = arith.mulf %853, %846 : vector<2x256xf32>
    %855 = arith.addf %840, %854 : vector<2x256xf32>
    %856 = vector.broadcast %842 : f32 to vector<2x256xf32>
    %857 = arith.mulf %856, %844 : vector<2x256xf32>
    %858 = arith.addf %855, %857 : vector<2x256xf32>
    %c23 = arith.constant 23 : index
    %859 = memref.load %arg1[%c23] : memref<108xf32, #tpu.memory_space<smem>>
    %c50 = arith.constant 50 : index
    %860 = memref.load %arg1[%c50] : memref<108xf32, #tpu.memory_space<smem>>
    %c0_373 = arith.constant 0 : index
    %c0_374 = arith.constant 0 : index
    %c2_375 = arith.constant 2 : index
    %c33_376 = arith.constant 33 : index
    %861 = vector.load %arg3[%c0_373, %c0_374, %c2_375, %c33_376] : memref<1x4x4x290xf32, #tpu.memory_space<vmem>>, vector<1x1x2x256xf32>
    %862 = vector.shape_cast %861 : vector<1x1x2x256xf32> to vector<2x256xf32>
    %c0_377 = arith.constant 0 : index
    %c1_378 = arith.constant 1 : index
    %c2_379 = arith.constant 2 : index
    %c33_380 = arith.constant 33 : index
    %863 = vector.load %arg3[%c0_377, %c1_378, %c2_379, %c33_380] : memref<1x4x4x290xf32, #tpu.memory_space<vmem>>, vector<1x1x2x256xf32>
    %864 = vector.shape_cast %863 : vector<1x1x2x256xf32> to vector<2x256xf32>
    %865 = vector.broadcast %859 : f32 to vector<2x256xf32>
    %866 = arith.mulf %865, %862 : vector<2x256xf32>
    %867 = arith.addf %852, %866 : vector<2x256xf32>
    %868 = vector.broadcast %860 : f32 to vector<2x256xf32>
    %869 = arith.mulf %868, %864 : vector<2x256xf32>
    %870 = arith.subf %867, %869 : vector<2x256xf32>
    %871 = vector.broadcast %859 : f32 to vector<2x256xf32>
    %872 = arith.mulf %871, %864 : vector<2x256xf32>
    %873 = arith.addf %858, %872 : vector<2x256xf32>
    %874 = vector.broadcast %860 : f32 to vector<2x256xf32>
    %875 = arith.mulf %874, %862 : vector<2x256xf32>
    %876 = arith.addf %873, %875 : vector<2x256xf32>
    %c75 = arith.constant 75 : index
    %877 = memref.load %arg1[%c75] : memref<108xf32, #tpu.memory_space<smem>>
    %c102 = arith.constant 102 : index
    %878 = memref.load %arg1[%c102] : memref<108xf32, #tpu.memory_space<smem>>
    %c0_381 = arith.constant 0 : index
    %c2_382 = arith.constant 2 : index
    %c0_383 = arith.constant 0 : index
    %c33_384 = arith.constant 33 : index
    %879 = vector.load %arg3[%c0_381, %c2_382, %c0_383, %c33_384] : memref<1x4x4x290xf32, #tpu.memory_space<vmem>>, vector<1x1x2x256xf32>
    %880 = vector.shape_cast %879 : vector<1x1x2x256xf32> to vector<2x256xf32>
    %c0_385 = arith.constant 0 : index
    %c3_386 = arith.constant 3 : index
    %c0_387 = arith.constant 0 : index
    %c33_388 = arith.constant 33 : index
    %881 = vector.load %arg3[%c0_385, %c3_386, %c0_387, %c33_388] : memref<1x4x4x290xf32, #tpu.memory_space<vmem>>, vector<1x1x2x256xf32>
    %882 = vector.shape_cast %881 : vector<1x1x2x256xf32> to vector<2x256xf32>
    %883 = vector.broadcast %877 : f32 to vector<2x256xf32>
    %884 = arith.mulf %883, %880 : vector<2x256xf32>
    %885 = arith.addf %870, %884 : vector<2x256xf32>
    %886 = vector.broadcast %878 : f32 to vector<2x256xf32>
    %887 = arith.mulf %886, %882 : vector<2x256xf32>
    %888 = arith.subf %885, %887 : vector<2x256xf32>
    %889 = vector.broadcast %877 : f32 to vector<2x256xf32>
    %890 = arith.mulf %889, %882 : vector<2x256xf32>
    %891 = arith.addf %876, %890 : vector<2x256xf32>
    %892 = vector.broadcast %878 : f32 to vector<2x256xf32>
    %893 = arith.mulf %892, %880 : vector<2x256xf32>
    %894 = arith.addf %891, %893 : vector<2x256xf32>
    %c76 = arith.constant 76 : index
    %895 = memref.load %arg1[%c76] : memref<108xf32, #tpu.memory_space<smem>>
    %c103 = arith.constant 103 : index
    %896 = memref.load %arg1[%c103] : memref<108xf32, #tpu.memory_space<smem>>
    %c0_389 = arith.constant 0 : index
    %c2_390 = arith.constant 2 : index
    %c1_391 = arith.constant 1 : index
    %c33_392 = arith.constant 33 : index
    %897 = vector.load %arg3[%c0_389, %c2_390, %c1_391, %c33_392] : memref<1x4x4x290xf32, #tpu.memory_space<vmem>>, vector<1x1x2x256xf32>
    %898 = vector.shape_cast %897 : vector<1x1x2x256xf32> to vector<2x256xf32>
    %c0_393 = arith.constant 0 : index
    %c3_394 = arith.constant 3 : index
    %c1_395 = arith.constant 1 : index
    %c33_396 = arith.constant 33 : index
    %899 = vector.load %arg3[%c0_393, %c3_394, %c1_395, %c33_396] : memref<1x4x4x290xf32, #tpu.memory_space<vmem>>, vector<1x1x2x256xf32>
    %900 = vector.shape_cast %899 : vector<1x1x2x256xf32> to vector<2x256xf32>
    %901 = vector.broadcast %895 : f32 to vector<2x256xf32>
    %902 = arith.mulf %901, %898 : vector<2x256xf32>
    %903 = arith.addf %888, %902 : vector<2x256xf32>
    %904 = vector.broadcast %896 : f32 to vector<2x256xf32>
    %905 = arith.mulf %904, %900 : vector<2x256xf32>
    %906 = arith.subf %903, %905 : vector<2x256xf32>
    %907 = vector.broadcast %895 : f32 to vector<2x256xf32>
    %908 = arith.mulf %907, %900 : vector<2x256xf32>
    %909 = arith.addf %894, %908 : vector<2x256xf32>
    %910 = vector.broadcast %896 : f32 to vector<2x256xf32>
    %911 = arith.mulf %910, %898 : vector<2x256xf32>
    %912 = arith.addf %909, %911 : vector<2x256xf32>
    %c77 = arith.constant 77 : index
    %913 = memref.load %arg1[%c77] : memref<108xf32, #tpu.memory_space<smem>>
    %c104 = arith.constant 104 : index
    %914 = memref.load %arg1[%c104] : memref<108xf32, #tpu.memory_space<smem>>
    %c0_397 = arith.constant 0 : index
    %c2_398 = arith.constant 2 : index
    %c2_399 = arith.constant 2 : index
    %c33_400 = arith.constant 33 : index
    %915 = vector.load %arg3[%c0_397, %c2_398, %c2_399, %c33_400] : memref<1x4x4x290xf32, #tpu.memory_space<vmem>>, vector<1x1x2x256xf32>
    %916 = vector.shape_cast %915 : vector<1x1x2x256xf32> to vector<2x256xf32>
    %c0_401 = arith.constant 0 : index
    %c3_402 = arith.constant 3 : index
    %c2_403 = arith.constant 2 : index
    %c33_404 = arith.constant 33 : index
    %917 = vector.load %arg3[%c0_401, %c3_402, %c2_403, %c33_404] : memref<1x4x4x290xf32, #tpu.memory_space<vmem>>, vector<1x1x2x256xf32>
    %918 = vector.shape_cast %917 : vector<1x1x2x256xf32> to vector<2x256xf32>
    %919 = vector.broadcast %913 : f32 to vector<2x256xf32>
    %920 = arith.mulf %919, %916 : vector<2x256xf32>
    %921 = arith.addf %906, %920 : vector<2x256xf32>
    %922 = vector.broadcast %914 : f32 to vector<2x256xf32>
    %923 = arith.mulf %922, %918 : vector<2x256xf32>
    %924 = arith.subf %921, %923 : vector<2x256xf32>
    %925 = vector.broadcast %913 : f32 to vector<2x256xf32>
    %926 = arith.mulf %925, %918 : vector<2x256xf32>
    %927 = arith.addf %912, %926 : vector<2x256xf32>
    %928 = vector.broadcast %914 : f32 to vector<2x256xf32>
    %929 = arith.mulf %928, %916 : vector<2x256xf32>
    %930 = arith.addf %927, %929 : vector<2x256xf32>
    %931 = arith.addf %818, %924 : vector<2x256xf32>
    %932 = arith.addf %820, %930 : vector<2x256xf32>
    %cst_405 = arith.constant 0.000000e+00 : f32
    %933 = vector.broadcast %cst_405 : f32 to vector<2x256xf32>
    %cst_406 = arith.constant 0.000000e+00 : f32
    %934 = vector.broadcast %cst_406 : f32 to vector<2x256xf32>
    %c24 = arith.constant 24 : index
    %935 = memref.load %arg1[%c24] : memref<108xf32, #tpu.memory_space<smem>>
    %c51 = arith.constant 51 : index
    %936 = memref.load %arg1[%c51] : memref<108xf32, #tpu.memory_space<smem>>
    %c0_407 = arith.constant 0 : index
    %c0_408 = arith.constant 0 : index
    %c0_409 = arith.constant 0 : index
    %c34_410 = arith.constant 34 : index
    %937 = vector.load %arg3[%c0_407, %c0_408, %c0_409, %c34_410] : memref<1x4x4x290xf32, #tpu.memory_space<vmem>>, vector<1x1x2x256xf32>
    %938 = vector.shape_cast %937 : vector<1x1x2x256xf32> to vector<2x256xf32>
    %c0_411 = arith.constant 0 : index
    %c1_412 = arith.constant 1 : index
    %c0_413 = arith.constant 0 : index
    %c34_414 = arith.constant 34 : index
    %939 = vector.load %arg3[%c0_411, %c1_412, %c0_413, %c34_414] : memref<1x4x4x290xf32, #tpu.memory_space<vmem>>, vector<1x1x2x256xf32>
    %940 = vector.shape_cast %939 : vector<1x1x2x256xf32> to vector<2x256xf32>
    %941 = vector.broadcast %935 : f32 to vector<2x256xf32>
    %942 = arith.mulf %941, %938 : vector<2x256xf32>
    %943 = arith.addf %933, %942 : vector<2x256xf32>
    %944 = vector.broadcast %936 : f32 to vector<2x256xf32>
    %945 = arith.mulf %944, %940 : vector<2x256xf32>
    %946 = arith.subf %943, %945 : vector<2x256xf32>
    %947 = vector.broadcast %935 : f32 to vector<2x256xf32>
    %948 = arith.mulf %947, %940 : vector<2x256xf32>
    %949 = arith.addf %934, %948 : vector<2x256xf32>
    %950 = vector.broadcast %936 : f32 to vector<2x256xf32>
    %951 = arith.mulf %950, %938 : vector<2x256xf32>
    %952 = arith.addf %949, %951 : vector<2x256xf32>
    %c25 = arith.constant 25 : index
    %953 = memref.load %arg1[%c25] : memref<108xf32, #tpu.memory_space<smem>>
    %c52 = arith.constant 52 : index
    %954 = memref.load %arg1[%c52] : memref<108xf32, #tpu.memory_space<smem>>
    %c0_415 = arith.constant 0 : index
    %c0_416 = arith.constant 0 : index
    %c1_417 = arith.constant 1 : index
    %c34_418 = arith.constant 34 : index
    %955 = vector.load %arg3[%c0_415, %c0_416, %c1_417, %c34_418] : memref<1x4x4x290xf32, #tpu.memory_space<vmem>>, vector<1x1x2x256xf32>
    %956 = vector.shape_cast %955 : vector<1x1x2x256xf32> to vector<2x256xf32>
    %c0_419 = arith.constant 0 : index
    %c1_420 = arith.constant 1 : index
    %c1_421 = arith.constant 1 : index
    %c34_422 = arith.constant 34 : index
    %957 = vector.load %arg3[%c0_419, %c1_420, %c1_421, %c34_422] : memref<1x4x4x290xf32, #tpu.memory_space<vmem>>, vector<1x1x2x256xf32>
    %958 = vector.shape_cast %957 : vector<1x1x2x256xf32> to vector<2x256xf32>
    %959 = vector.broadcast %953 : f32 to vector<2x256xf32>
    %960 = arith.mulf %959, %956 : vector<2x256xf32>
    %961 = arith.addf %946, %960 : vector<2x256xf32>
    %962 = vector.broadcast %954 : f32 to vector<2x256xf32>
    %963 = arith.mulf %962, %958 : vector<2x256xf32>
    %964 = arith.subf %961, %963 : vector<2x256xf32>
    %965 = vector.broadcast %953 : f32 to vector<2x256xf32>
    %966 = arith.mulf %965, %958 : vector<2x256xf32>
    %967 = arith.addf %952, %966 : vector<2x256xf32>
    %968 = vector.broadcast %954 : f32 to vector<2x256xf32>
    %969 = arith.mulf %968, %956 : vector<2x256xf32>
    %970 = arith.addf %967, %969 : vector<2x256xf32>
    %c26 = arith.constant 26 : index
    %971 = memref.load %arg1[%c26] : memref<108xf32, #tpu.memory_space<smem>>
    %c53 = arith.constant 53 : index
    %972 = memref.load %arg1[%c53] : memref<108xf32, #tpu.memory_space<smem>>
    %c0_423 = arith.constant 0 : index
    %c0_424 = arith.constant 0 : index
    %c2_425 = arith.constant 2 : index
    %c34_426 = arith.constant 34 : index
    %973 = vector.load %arg3[%c0_423, %c0_424, %c2_425, %c34_426] : memref<1x4x4x290xf32, #tpu.memory_space<vmem>>, vector<1x1x2x256xf32>
    %974 = vector.shape_cast %973 : vector<1x1x2x256xf32> to vector<2x256xf32>
    %c0_427 = arith.constant 0 : index
    %c1_428 = arith.constant 1 : index
    %c2_429 = arith.constant 2 : index
    %c34_430 = arith.constant 34 : index
    %975 = vector.load %arg3[%c0_427, %c1_428, %c2_429, %c34_430] : memref<1x4x4x290xf32, #tpu.memory_space<vmem>>, vector<1x1x2x256xf32>
    %976 = vector.shape_cast %975 : vector<1x1x2x256xf32> to vector<2x256xf32>
    %977 = vector.broadcast %971 : f32 to vector<2x256xf32>
    %978 = arith.mulf %977, %974 : vector<2x256xf32>
    %979 = arith.addf %964, %978 : vector<2x256xf32>
    %980 = vector.broadcast %972 : f32 to vector<2x256xf32>
    %981 = arith.mulf %980, %976 : vector<2x256xf32>
    %982 = arith.subf %979, %981 : vector<2x256xf32>
    %983 = vector.broadcast %971 : f32 to vector<2x256xf32>
    %984 = arith.mulf %983, %976 : vector<2x256xf32>
    %985 = arith.addf %970, %984 : vector<2x256xf32>
    %986 = vector.broadcast %972 : f32 to vector<2x256xf32>
    %987 = arith.mulf %986, %974 : vector<2x256xf32>
    %988 = arith.addf %985, %987 : vector<2x256xf32>
    %c78 = arith.constant 78 : index
    %989 = memref.load %arg1[%c78] : memref<108xf32, #tpu.memory_space<smem>>
    %c105 = arith.constant 105 : index
    %990 = memref.load %arg1[%c105] : memref<108xf32, #tpu.memory_space<smem>>
    %c0_431 = arith.constant 0 : index
    %c2_432 = arith.constant 2 : index
    %c0_433 = arith.constant 0 : index
    %c34_434 = arith.constant 34 : index
    %991 = vector.load %arg3[%c0_431, %c2_432, %c0_433, %c34_434] : memref<1x4x4x290xf32, #tpu.memory_space<vmem>>, vector<1x1x2x256xf32>
    %992 = vector.shape_cast %991 : vector<1x1x2x256xf32> to vector<2x256xf32>
    %c0_435 = arith.constant 0 : index
    %c3_436 = arith.constant 3 : index
    %c0_437 = arith.constant 0 : index
    %c34_438 = arith.constant 34 : index
    %993 = vector.load %arg3[%c0_435, %c3_436, %c0_437, %c34_438] : memref<1x4x4x290xf32, #tpu.memory_space<vmem>>, vector<1x1x2x256xf32>
    %994 = vector.shape_cast %993 : vector<1x1x2x256xf32> to vector<2x256xf32>
    %995 = vector.broadcast %989 : f32 to vector<2x256xf32>
    %996 = arith.mulf %995, %992 : vector<2x256xf32>
    %997 = arith.addf %982, %996 : vector<2x256xf32>
    %998 = vector.broadcast %990 : f32 to vector<2x256xf32>
    %999 = arith.mulf %998, %994 : vector<2x256xf32>
    %1000 = arith.subf %997, %999 : vector<2x256xf32>
    %1001 = vector.broadcast %989 : f32 to vector<2x256xf32>
    %1002 = arith.mulf %1001, %994 : vector<2x256xf32>
    %1003 = arith.addf %988, %1002 : vector<2x256xf32>
    %1004 = vector.broadcast %990 : f32 to vector<2x256xf32>
    %1005 = arith.mulf %1004, %992 : vector<2x256xf32>
    %1006 = arith.addf %1003, %1005 : vector<2x256xf32>
    %c79 = arith.constant 79 : index
    %1007 = memref.load %arg1[%c79] : memref<108xf32, #tpu.memory_space<smem>>
    %c106 = arith.constant 106 : index
    %1008 = memref.load %arg1[%c106] : memref<108xf32, #tpu.memory_space<smem>>
    %c0_439 = arith.constant 0 : index
    %c2_440 = arith.constant 2 : index
    %c1_441 = arith.constant 1 : index
    %c34_442 = arith.constant 34 : index
    %1009 = vector.load %arg3[%c0_439, %c2_440, %c1_441, %c34_442] : memref<1x4x4x290xf32, #tpu.memory_space<vmem>>, vector<1x1x2x256xf32>
    %1010 = vector.shape_cast %1009 : vector<1x1x2x256xf32> to vector<2x256xf32>
    %c0_443 = arith.constant 0 : index
    %c3_444 = arith.constant 3 : index
    %c1_445 = arith.constant 1 : index
    %c34_446 = arith.constant 34 : index
    %1011 = vector.load %arg3[%c0_443, %c3_444, %c1_445, %c34_446] : memref<1x4x4x290xf32, #tpu.memory_space<vmem>>, vector<1x1x2x256xf32>
    %1012 = vector.shape_cast %1011 : vector<1x1x2x256xf32> to vector<2x256xf32>
    %1013 = vector.broadcast %1007 : f32 to vector<2x256xf32>
    %1014 = arith.mulf %1013, %1010 : vector<2x256xf32>
    %1015 = arith.addf %1000, %1014 : vector<2x256xf32>
    %1016 = vector.broadcast %1008 : f32 to vector<2x256xf32>
    %1017 = arith.mulf %1016, %1012 : vector<2x256xf32>
    %1018 = arith.subf %1015, %1017 : vector<2x256xf32>
    %1019 = vector.broadcast %1007 : f32 to vector<2x256xf32>
    %1020 = arith.mulf %1019, %1012 : vector<2x256xf32>
    %1021 = arith.addf %1006, %1020 : vector<2x256xf32>
    %1022 = vector.broadcast %1008 : f32 to vector<2x256xf32>
    %1023 = arith.mulf %1022, %1010 : vector<2x256xf32>
    %1024 = arith.addf %1021, %1023 : vector<2x256xf32>
    %c80 = arith.constant 80 : index
    %1025 = memref.load %arg1[%c80] : memref<108xf32, #tpu.memory_space<smem>>
    %c107 = arith.constant 107 : index
    %1026 = memref.load %arg1[%c107] : memref<108xf32, #tpu.memory_space<smem>>
    %c0_447 = arith.constant 0 : index
    %c2_448 = arith.constant 2 : index
    %c2_449 = arith.constant 2 : index
    %c34_450 = arith.constant 34 : index
    %1027 = vector.load %arg3[%c0_447, %c2_448, %c2_449, %c34_450] : memref<1x4x4x290xf32, #tpu.memory_space<vmem>>, vector<1x1x2x256xf32>
    %1028 = vector.shape_cast %1027 : vector<1x1x2x256xf32> to vector<2x256xf32>
    %c0_451 = arith.constant 0 : index
    %c3_452 = arith.constant 3 : index
    %c2_453 = arith.constant 2 : index
    %c34_454 = arith.constant 34 : index
    %1029 = vector.load %arg3[%c0_451, %c3_452, %c2_453, %c34_454] : memref<1x4x4x290xf32, #tpu.memory_space<vmem>>, vector<1x1x2x256xf32>
    %1030 = vector.shape_cast %1029 : vector<1x1x2x256xf32> to vector<2x256xf32>
    %1031 = vector.broadcast %1025 : f32 to vector<2x256xf32>
    %1032 = arith.mulf %1031, %1028 : vector<2x256xf32>
    %1033 = arith.addf %1018, %1032 : vector<2x256xf32>
    %1034 = vector.broadcast %1026 : f32 to vector<2x256xf32>
    %1035 = arith.mulf %1034, %1030 : vector<2x256xf32>
    %1036 = arith.subf %1033, %1035 : vector<2x256xf32>
    %1037 = vector.broadcast %1025 : f32 to vector<2x256xf32>
    %1038 = arith.mulf %1037, %1030 : vector<2x256xf32>
    %1039 = arith.addf %1024, %1038 : vector<2x256xf32>
    %1040 = vector.broadcast %1026 : f32 to vector<2x256xf32>
    %1041 = arith.mulf %1040, %1028 : vector<2x256xf32>
    %1042 = arith.addf %1039, %1041 : vector<2x256xf32>
    %1043 = arith.mulf %24, %1036 : vector<2x256xf32>
    %1044 = arith.addf %931, %1043 : vector<2x256xf32>
    %1045 = arith.mulf %24, %1042 : vector<2x256xf32>
    %1046 = arith.addf %932, %1045 : vector<2x256xf32>
    %c0_455 = arith.constant 0 : index
    %1047 = memref.load %arg2[%c0_455] : memref<2xf32, #tpu.memory_space<smem>>
    %1048 = vector.broadcast %1047 : f32 to vector<2x256xf32>
    %1049 = arith.addf %1044, %1048 : vector<2x256xf32>
    %c0_456 = arith.constant 0 : index
    %c0_457 = arith.constant 0 : index
    %c0_458 = arith.constant 0 : index
    %c0_459 = arith.constant 0 : index
    %1050 = vector.load %arg4[%c0_456, %c0_457, %c0_458, %c0_459] : memref<2x1x2x256xf32, #tpu.memory_space<vmem>>, vector<1x1x2x256xf32>
    %1051 = vector.shape_cast %1050 : vector<1x1x2x256xf32> to vector<2x256xf32>
    %1052 = vector.shape_cast %1049 : vector<2x256xf32> to vector<1x1x2x256xf32>
    tpu.vector_store %arg4[%c0_456, %c0_457, %c0_458, %c0_459], %1052 {strides = array<i32>} : memref<2x1x2x256xf32, #tpu.memory_space<vmem>>, vector<1x1x2x256xf32>,
    %c1_460 = arith.constant 1 : index
    %1053 = memref.load %arg2[%c1_460] : memref<2xf32, #tpu.memory_space<smem>>
    %1054 = vector.broadcast %1053 : f32 to vector<2x256xf32>
    %1055 = arith.addf %1046, %1054 : vector<2x256xf32>
    %c1_461 = arith.constant 1 : index
    %c0_462 = arith.constant 0 : index
    %c0_463 = arith.constant 0 : index
    %c0_464 = arith.constant 0 : index
    %1056 = vector.load %arg4[%c1_461, %c0_462, %c0_463, %c0_464] : memref<2x1x2x256xf32, #tpu.memory_space<vmem>>, vector<1x1x2x256xf32>
    %1057 = vector.shape_cast %1056 : vector<1x1x2x256xf32> to vector<2x256xf32>
    %1058 = vector.shape_cast %1055 : vector<2x256xf32> to vector<1x1x2x256xf32>
    tpu.vector_store %arg4[%c1_461, %c0_462, %c0_463, %c0_464], %1058 {strides = array<i32>} : memref<2x1x2x256xf32, #tpu.memory_space<vmem>>, vector<1x1x2x256xf32>,
    return
  }
  func.func @transform_0(%arg0: i32) -> i32 {
    %c0_i32 = arith.constant 0 : i32
    %c0_i32_0 = arith.constant 0 : i32
    return %c0_i32 : i32
  }
  func.func @transform_1(%arg0: i32) -> i32 {
    %c0_i32 = arith.constant 0 : i32
    %c0_i32_0 = arith.constant 0 : i32
    return %c0_i32 : i32
  }
  func.func @transform_2(%arg0: i32) -> (i32, i32, i32, i32) {
    %c0_i32 = arith.constant 0 : i32
    %c0_i32_0 = arith.constant 0 : i32
    %c0_i32_1 = arith.constant 0 : i32
    %c0_i32_2 = arith.constant 0 : i32
    return %arg0, %c0_i32, %c0_i32_0, %c0_i32_1 : i32, i32, i32, i32
  }
  func.func @transform_3(%arg0: i32) -> (i32, i32, i32, i32) {
    %c0_i32 = arith.constant 0 : i32
    %c0_i32_0 = arith.constant 0 : i32
    %c0_i32_1 = arith.constant 0 : i32
    %c0_i32_2 = arith.constant 0 : i32
    return %c0_i32, %arg0, %c0_i32_0, %c0_i32_1 : i32, i32, i32, i32
  }
}

</mosaic_0001>

<bundles_post_ra>
// kernel: tpu_custom_call.1
= control target key start
LH: loop header
LB: loop body
LE: loop exit
PB: predicated region body
PF: predicated region fallthrough
CT: control target
= control target key end

     0   :  { %8 = vsyncpa [#allocation5], 0  ;;  %s6056_s0 = inlined_call_operand.hbm [shape: f32[108], index: 0, kind: input, shape index: {}]   ;;  %s6057_s1 = inlined_call_operand.vmem [shape: f32[2], index: 1, kind: input, shape index: {}]   ;;  %s6058_s2 = inlined_call_operand.hbm [shape: f32[2,4,4,290], index: 2, kind: input, shape index: {}]   ;;  %s6059_s3 = inlined_call_operand.hbm [shape: f32[2,2,2,256], index: 3, kind: output, shape index: {}]  }
   0x1   :  { %9 = vsyncpa [#allocation6], 0 }
   0x2   :  { %10 = vsyncpa [#allocation3], 0 }
   0x3   :  { %12 = vsyncpa [#allocation3 + $0x1], 0 }
   0x4   :  { %13 = vsyncpa [#allocation4], 0 }
   0x5   :  { %15 = vsyncpa [#allocation4 + $0x1], 0  ;;  %s3818_s12 = smov 0   ;;  %s3820_s13 = smov 0  }
   0x6   :  { %s3822_s14 = smov 0   ;;  %s3824_s15 = smov 0  }
   0x7 LB: > { %s3839_s16 = sadd.s32 4294967295, %s3778_s15   ;;  %s3006_s17 = sadd.s32 4294967294, %s3778_s15   ;;  %s3778_s15 = sphi %s3824_s15, %s6119_s15   ;;  %s3774_s14 = sphi %s3822_s14, %s6118_s14   ;;  %s3770_s13 = sphi %s3820_s13, %s6117_s13   ;;  %s3766_s12 = sphi %s3818_s12, %s6116_s12  }
   0x8   : > { %s3843_s18 = sadd.s32 1, %s3778_s15   ;;  %s70_s19 = sadd.s32 1, %s3774_s14 }
   0x9   : > { %s67_s20 = ssub.s32 %s3778_s15, %s3843_s18  ;;  %p77_p0 = scmp.ne.s32.totalorder %s3774_s14, %s3770_s13 }
   0xa   : > { %p68_p1 = scmp.eq.s32.totalorder %s67_s20, 0  ;;  %p78_p2 = scmp.eq.s32.totalorder %s3778_s15, 0 }
   0xb   : > { %p83_p3 = scmp.ne.s32.totalorder %s3770_s13, %s3766_s12  ;;  %p6060_p4 = scmp.eq.s32.totalorder %s3839_s16, 0 }
   0xc   : > { %s3855_s21 = scalar_select %p68_p1, %s3774_s14, %s70_s19  }
   0xd   : > { %p3857_p5 = por %p78_p2, %p77_p0  ;;  %p3863_p6 = por %p6060_p4, %p83_p3 }
   0xe   : > { %p107_p7 = scmp.eq.s32.totalorder %s3839_s16, 1  ;;  %p113_p8 = scmp.eq.s32.totalorder %s3006_s17, 1 }
   0xf   : > { %s6075_s23 = scalar_select %p3863_p6, 1, 0 }
  0x10   : > { %p3007_p9 = scmp.ge.s32.totalorder %s3778_s15, 1  ;;  %p120_p10 = scmp.lt.s32.totalorder %s3778_s15, 3 }
  0x11   : > { %p3870_p11 = por %p107_p7, %p77_p0  ;;  %p3874_p12 = por %p113_p8, %p83_p3 }
  0x12   : > { %p3878_p13 = pnand %p3007_p9, %p120_p10  ;;  %p3594_p4 = scmp.lt.s32.totalorder %s3778_s15, 2 }
  0x13   : > { %s6076_s24 = scalar_select %p3870_p11, 1, 0 }
  0x14   : > { %s6077_s25 = scalar_select %p3874_p12, 1, 0 }
  0x15   : > { %p3577_p2 = pneg %p3878_p13  ;;  %s142_s29 = sshll.u32 %s6057_s1, 4  ;;  %s143_s29 = int_to_ptr.vmem [resolvable:$true] %s142_s29 }
  0x16   : > { %p6079_p0 = scmp.eq.s32.totalorder %s3839_s16, 0  ;;  %p3897_p3 = pnand %p3594_p4, %p3857_p5 }
  0x17   : > { %s153_s5 = sand.u32 1, %s3774_s14   ;;  %s3646_s8 = scalar_lea.hbm %s6056_s0, 16 }
  0x18   : > { %p3891_p7 = pnand %p3577_p2, %p6079_p0  ;;  %p3647_p8 = scmp.ne.s32.totalorder %s6056_s0, %s3646_s8 }
  0x19   : > { %p3653_p4 = scmp.lt.u32.totalorder %s3646_s8, %s6056_s0 }
  0x1a   : > { %p3648_p9 = pneg %p3891_p7 }
  0x1c   : > { %p3649_p10 = pnand %p3648_p9, %p3647_p8 }
  0x1e   : > { %p3650_p2 = pneg %p3649_p10 }
  0x20   : > { %p3655_p5 = pnand %p3653_p4, %p3650_p2 }
  0x22   : > { %3658 = shalt.err (!%p3655_p5)
}
  0x23   : > { %s3780_s19 = smov [#allocation2]   ;;  %s3659_s27 = scalar_lea.vmem %s143_s29, 16 }
  0x24   : > { %3580 = dma.hbm_to_smem (!%p3891_p7), %s6056_s0, 16, %s3780_s19, [#allocation5]  }
  0x25   : > { %p3660_p0 = scmp.ne.s32.totalorder %s143_s29, %s3659_s27  ;;  %p3667_p11 = scmp.lt.s32.totalorder %s143_s29, %s143_s29 }
  0x26   : > { %p3668_p8 = scmp.lt.s32.totalorder %s3659_s27, %s3659_s27 }
  0x27   : > { %p3662_p1 = pnand %p3660_p0, %p3648_p9 }
  0x28   : > { %p3669_p10 = por %p3668_p8, %p3667_p11 }
  0x29   : > { %p3663_p12 = pneg %p3662_p1 }
  0x2b   : > { %p3670_p6 = pnand %p3669_p10, %p3663_p12 }
  0x2d   : > { %3673 = shalt.err (!%p3670_p6)
}
  0x2e   : > { %s3781_s28 = smov [#allocation7]   ;;  %s3562_s6 = smul.u32 48, %s153_s5 }
  0x2f   : > { %3583 = dma.vmem_to_smem (!%p3891_p7), %s143_s29, 16, %s3781_s28, [#allocation6]  }
  0x30   : > { %s3563_s7 = smul.u32 768, %s3778_s15  ;;  %s157_s11 = scalar_lea.vmem [#allocation8], %s3562_s6 }
  0x31   : > { %s164_s17 = sshll.u32 %s157_s11, 4  ;;  %s3928_s30 = scalar_lea.sflag [#allocation3], %s153_s5  ;;  %s3926_s17 = int_to_ptr.vmem [resolvable:$true] %s164_s17 }
  0x32   : > { %s3924_s10 = scalar_lea.hbm %s6058_s2, %s3563_s7  ;;  %p3676_p11 = pneg %p3897_p3 }
  0x33   : > { %s3674_s19 = scalar_lea.hbm %s3924_s10, 768  ;;  %s3679_s22 = scalar_lea.hbm %s6058_s2, 1536 }
  0x34   : > { %p3675_p6 = scmp.ne.s32.totalorder %s3924_s10, %s3674_s19  ;;  %p3680_p7 = scmp.lt.u32.totalorder %s3924_s10, %s6058_s2 }
  0x35   : > { %p3681_p9 = scmp.lt.u32.totalorder %s3679_s22, %s3674_s19  ;;  %p3683_p4 = scmp.lt.u32.totalorder %s3674_s19, %s3924_s10 }
  0x36   : > { %p3677_p12 = pnand %p3676_p11, %p3675_p6 }
  0x37   : > { %p3682_p2 = por %p3681_p9, %p3680_p7 }
  0x38   : > { %p3678_p1 = pneg %p3677_p12 }
  0x39   : > { %p3684_p5 = por %p3683_p4, %p3682_p2 }
  0x3b   : > { %p3685_p0 = pnand %p3684_p5, %p3678_p1 }
  0x3d   : > { %3688 = shalt.err (!%p3685_p0)
}
  0x3e   : > { %s3689_s5 = scalar_lea.vmem %s3926_s17, 768  ;;  %s3782_s6 = smov [#allocation8]  }
  0x3f   : > { %p3690_p8 = scmp.ne.s32.totalorder %s3926_s17, %s3689_s5  ;;  %s3694_s7 = sshll.u32 %s3782_s6, 4  ;;  %s3695_s7 = int_to_ptr.vmem [resolvable:$false] %s3694_s7 }
  0x40   : > { %s3696_s8 = scalar_lea.vmem %s3695_s7, 1536  ;;  %p3697_p12 = scmp.lt.s32.totalorder %s3926_s17, %s3695_s7 }
  0x41   : > { %p3692_p10 = pnand %p3690_p8, %p3676_p11  ;;  %p3698_p7 = scmp.lt.s32.totalorder %s3696_s8, %s3689_s5 }
  0x43   : > { %p3693_p6 = pneg %p3692_p10  ;;  %p3699_p9 = por %p3698_p7, %p3697_p12 }
  0x45   : > { %p3700_p2 = pnand %p3699_p9, %p3693_p6 }
  0x47   : > { %3703 = shalt.err (!%p3700_p2)
}
  0x48   : > { %s3783_s9 = smov 192   ;;  %s3784_s11 = smov 12  }
  0x49   : > { %3587 = dma.hbm_to_vmem [thread:$0]  (!%p3897_p3), %s3924_s10, 768, %s3926_s17, %s3928_s30, %s3783_s9, %s3783_s9, %s3784_s11  }
  0x4a   : > { %176 = sbr.rel (%p3878_p13) target bundleno = 529 (0x211), region = 32 }
  0x51   : > { %p6082_p11 = scmp.eq.s32.totalorder %s3839_s16, 0 }
  0x53   : > { %3749 = dma.done.wait (%p6082_p11), [#allocation5], 16   ;;  %p6083_p1 = pmov %p6082_p11 }
  0x55   : > { %3751 = vsyncadd (%p6083_p1), [#allocation5], 4294967280  ;;  %p6084_p4 = pmov %p6083_p1 }
  0x56   : > { %p6085_p5 = pmov %p6083_p1 }
  0x57   : > { %3753 = dma.done.wait (%p6084_p4), [#allocation6], 16  }
  0x58   : > { %3755 = vsyncadd (%p6085_p5), [#allocation6], 4294967280  ;;  %s3967_s19 = sand.u32 1, %s3770_s13   ;;  %p6086_p13 = scmp.ne.s32.totalorder %s6075_s23, 0 }
  0x59   : > { %s3564_s26 = smul.u32 48, %s3967_s19  ;;  %s187_s4 = scalar_lea.sflag [#allocation3], %s3967_s19 }
  0x5b   : > { %s3971_s10 = scalar_lea.vmem [#allocation8], %s3564_s26 }
  0x5c   : > { %3757 = dma.done.wait (%p6086_p13), %s187_s4, 768  }
  0x5d   : > { %3759 = vsyncadd (%p6086_p13), %s187_s4, 4294966528 }
  0x5e   : > { %195 = sfence }
  0x5f   : > { %s3056_s17 = sld [smem:[#allocation2 + $0x3]]  ;;  %s3057_s30 = sld [smem:[#allocation2 + $0x1e]]  ;;  %v421_v0 = vld [vmem:[%s3971_s10 + $0x8] sm:$0x3]  ;;  %v3059_v1 = vld [vmem:[%s3971_s10 + $0x14] sm:$0x3] }
  0x60   : > { %s3060_s29 = sld [smem:[#allocation2 + $0x4]]  ;;  %s3061_s20 = sld [smem:[#allocation2 + $0x1f]]  ;;  %v3982_v2 = vld [vmem:[%s3971_s10 + $0x8] sm:$0x6]  ;;  %v3063_v5 = vld [vmem:[%s3971_s10 + $0x14] sm:$0x6] }
  0x61   : > { %s3072_s22 = sld [smem:[#allocation2 + $0x5]]  ;;  %s3073_s27 = sld [smem:[#allocation2 + $0x20]]  ;;  %v4000_v8 = vld [vmem:[%s3971_s10 + $0x8] sm:$0xc]  ;;  %v3075_v11 = vld [vmem:[%s3971_s10 + $0x14] sm:$0xc] }
  0x62   : > { %s3979_s28 = sld [smem:[#allocation2 + $0x39]]  ;;  %s3984_s23 = sld [smem:[#allocation2 + $0x54]]  ;;  %v4025_v24 = vld [vmem:[%s3971_s10 + $0x20] sm:$0x3]  ;;  %v3089_v29 = vld [vmem:[%s3971_s10 + $0x2c] sm:$0x3] }
  0x63   : > { %s3986_s5 = sld [smem:[#allocation2 + $0x3a]]  ;;  %s3993_s6 = sld [smem:[#allocation2 + $0x55]]  ;;  %v4028_v25 = vld [vmem:[%s3971_s10 + $0x20] sm:$0x6]  ;;  %v3095_v31 = vld [vmem:[%s3971_s10 + $0x2c] sm:$0x6] }
  0x64   : > { %s3995_s7 = sld [smem:[#allocation2 + $0x3b]]  ;;  %s4002_s8 = sld [smem:[#allocation2 + $0x56]]  ;;  %v4040_v32 = vld [vmem:[%s3971_s10 + $0x20] sm:$0xc]  ;;  %v3109_v37 = vld [vmem:[%s3971_s10 + $0x2c] sm:$0xc] }
  0x65   : > { %v3988_v3 = vstv %s3056_s17  ;;  %v3990_v4 = vstv %s3057_s30  ;;  %v420_v38 = vld [vmem:[%s3971_s10] sm:$0x33]  ;;  %v3058_v47 = vld [vmem:[%s3971_s10 + $0xc] sm:$0x33]  ;;  %s4106_s9 = sld [smem:[#allocation2 + $0x6]]  ;;  %s4114_s11 = sld [smem:[#allocation2 + $0x21]] }
  0x66   : > { %v426_v6 = vmul.f32 %v3988_v3, %v421_v0  ;;  %v431_v7 = vmul.f32 %v3059_v1, %v3990_v4  ;;  %v448_v9 = vstv %s3060_s29  ;;  %v4004_v10 = vstv %s3061_s20  ;;  %v4074_v52 = vld [vmem:[%s3971_s10] sm:$0x66]  ;;  %v3062_v57 = vld [vmem:[%s3971_s10 + $0xc] sm:$0x66]  ;;  %s4122_s26 = sld [smem:[#allocation2 + $0x7]]  ;;  %s4124_s4 = sld [smem:[#allocation2 + $0x22]] }
  0x67   : > { %v4007_v12 = vstv %s3072_s22  ;;  %v450_v14 = vmul.f32 %v448_v9, %v3982_v2  ;;  %v463_v15 = vmul.f32 %v3063_v5, %v4004_v10  ;;  %v4011_v16 = vmul.f32 %v3063_v5, %v448_v9  ;;  %v500_v58 = vld [vmem:[%s3971_s10] sm:$0xcc]  ;;  %v3074_v63 = vld [vmem:[%s3971_s10 + $0xc] sm:$0xcc]  ;;  %s4135_s17 = sld [smem:[#allocation2 + $0x8]]  ;;  %s4137_s30 = sld [smem:[#allocation2 + $0x23]] }
  0x68   : > { %v433_v13 = vsub.f32 %v426_v6, %v431_v7  ;;  %v506_v17 = vmul.f32 %v4007_v12, %v4000_v8  ;;  %v4015_v18 = vstv %s3073_s27  ;;  %v4018_v19 = vmul.f32 %v3075_v11, %v4007_v12  ;;  %s4151_s29 = sld [smem:[#allocation2 + $0x3c]]  ;;  %s4155_s20 = sld [smem:[#allocation2 + $0x3d]]  ;;  %v4274_v61 = vld [vmem:[%s3971_s10 + $0x8] sm:$0x3] }
  0x69   : > { %v4021_v20 = vmul.f32 %v3059_v1, %v3988_v3  ;;  %v3065_v21 = vrot.slane %v450_v14, 9  ;;  %v3067_v22 = vrot.slane %v463_v15, 9  ;;  %v519_v23 = vmul.f32 %v3075_v11, %v4015_v18  ;;  %v3086_v15 = vld [vmem:[%s3971_s10 + $0x18] sm:$0x33]  ;;  %s4167_s22 = sld [smem:[#allocation2 + $0x57]]  ;;  %s4172_s27 = sld [smem:[#allocation2 + $0x58]] }
  0x6a   : > { %v4031_v26 = vmul.f32 %v3990_v4, %v421_v0  ;;  %v3069_v27 = vrot.slane %v4011_v16, 9  ;;  %v3077_v28 = vrot.slane %v506_v17, 10  ;;  %v4036_v30 = vstv %s3979_s28  ;;  %s3785_s28 = smov 127   ;;  %p6113_p0 = scmp.ne.s32.totalorder %s6076_s24, 0 }
  0x6b   : > { %v460_v33 = vadd.f32 %v3065_v21, %v433_v13  ;;  %v3079_v34 = vrot.slane %v519_v23, 10  ;;  %v4044_v36 = vstv %s3984_s23  ;;  %v584_v39 = vstv %s3986_s5  ;;  %s4184_s23 = sld [smem:[#allocation2 + $0x3e]]  ;;  %s4198_s5 = sld [smem:[#allocation2 + $0x59]] }
  0x6c   : > { %v4050_v40 = vstv %s3993_s6  ;;  %v4053_v41 = vstv %s3995_s7  ;;  %v4056_v42 = vstv %s4002_s8  ;;  %v586_v44 = vmul.f32 %v4028_v25, %v584_v39  ;;  %s4364_s6 = sld [smem:[#allocation2 + $0x9]]  ;;  %s4379_s7 = sld [smem:[#allocation2 + $0x24]] }
  0x6d   : > { %v473_v43 = vsub.f32 %v460_v33, %v3067_v22  ;;  %v599_v45 = vmul.f32 %v3095_v31, %v4050_v40  ;;  %v4060_v46 = vmul.f32 %v3095_v31, %v584_v39  ;;  %v562_v48 = vmul.f32 %v4025_v24, %v4036_v30  ;;  %s4387_s8 = sld [smem:[#allocation2 + $0xa]] }
  0x6e   : > { %v4067_v49 = vmul.f32 %v4040_v32, %v4053_v41  ;;  %v4070_v50 = vmul.f32 %v3109_v37, %v4056_v42  ;;  %v425_v51 = vmul.f32 %v3988_v3, %v420_v38  ;;  %v567_v54 = vmul.f32 %v3089_v29, %v4044_v36 }
  0x6f   : > { %v516_v53 = vadd.f32 %v3077_v28, %v473_v43  ;;  %v4078_v55 = vmul.f32 %v3089_v29, %v4036_v30  ;;  %v4081_v56 = vmul.f32 %v3109_v37, %v4053_v41  ;;  %v3097_v59 = vrot.slane %v586_v44, 9  ;;  %v3092_v28 = vld [vmem:[%s3971_s10 + $0x18] sm:$0x66]  ;;  %v3094_v29 = vld [vmem:[%s3971_s10 + $0x24] sm:$0x66] }
  0x70   : > { %v3099_v60 = vrot.slane %v599_v45, 9  ;;  %v430_v62 = vmul.f32 %v3058_v47, %v3990_v4  ;;  %v3111_v1 = vrot.slane %v4067_v49, 10  ;;  %v3113_v5 = vrot.slane %v4070_v50, 10  ;;  %v4104_v37 = vld [vmem:[%s3971_s10 + $0x18] sm:$0xcc] }
  0x71   : > { %v529_v0 = vsub.f32 %v516_v53, %v3079_v34  ;;  %v449_v6 = vmul.f32 %v448_v9, %v4074_v52  ;;  %v462_v11 = vmul.f32 %v3062_v57, %v4004_v10  ;;  %v474_v13 = vmul.f32 %v3062_v57, %v448_v9  ;;  %v3088_v49 = vld [vmem:[%s3971_s10 + $0x24] sm:$0x33]  ;;  %v3108_v50 = vld [vmem:[%s3971_s10 + $0x24] sm:$0xcc] }
  0x72   : > { %v432_v7 = vsub.f32 %v425_v51, %v430_v62  ;;  %v505_v14 = vmul.f32 %v4007_v12, %v500_v58  ;;  %v518_v23 = vmul.f32 %v3074_v63, %v4015_v18  ;;  %v434_v31 = vmul.f32 %v3058_v47, %v3988_v3 }
  0x73   : > { %v564_v17 = vadd.f32 %v562_v48, %v529_v0  ;;  %v3064_v22 = vrot.slane %v449_v6, 9  ;;  %v438_v33 = vmul.f32 %v3990_v4, %v420_v38  ;;  %v3066_v34 = vrot.slane %v462_v11, 9 }
  0x74   : > { %v4101_v9 = vmul.f32 %v3074_v63, %v4007_v12  ;;  %v3068_v45 = vrot.slane %v474_v13, 9  ;;  %v3076_v48 = vrot.slane %v505_v14, 10  ;;  %v3078_v51 = vrot.slane %v518_v23, 10 }
  0x75   : > { %v569_v43 = vsub.f32 %v564_v17, %v567_v54  ;;  %v459_v44 = vadd.f32 %v3064_v22, %v432_v7  ;;  %v561_v53 = vmul.f32 %v3086_v15, %v4036_v30  ;;  %v585_v3 = vmul.f32 %v3092_v28, %v584_v39 }
  0x76   : > { %v4112_v4 = vmul.f32 %v3094_v29, %v4050_v40  ;;  %v4116_v47 = vmul.f32 %v3094_v29, %v584_v39  ;;  %v4120_v54 = vmul.f32 %v4104_v37, %v4053_v41  ;;  %v3080_v57 = vrot.slane %v4101_v9, 10  ;;  %v4149_v29 = vld [vmem:[%s3971_s10 + $0xc] sm:$0x33] }
  0x77   : > { %v596_v12 = vadd.f32 %v3097_v59, %v569_v43  ;;  %v472_v38 = vsub.f32 %v459_v44, %v3066_v34  ;;  %v566_v62 = vmul.f32 %v3088_v49, %v4044_v36  ;;  %v4129_v63 = vmul.f32 %v3108_v50, %v4056_v42  ;;  %v4162_v44 = vld [vmem:[%s3971_s10] sm:$0x66] }
  0x78   : > { %v4132_v59 = vmul.f32 %v3108_v50, %v4053_v41  ;;  %v570_v6 = vmul.f32 %v3088_v49, %v4036_v30  ;;  %v3096_v7 = vrot.slane %v585_v3, 9  ;;  %v3098_v11 = vrot.slane %v4112_v4, 9  ;;  %v4144_v41 = vld [vmem:[%s3971_s10] sm:$0x33] }
  0x79   : > { %v609_v39 = vsub.f32 %v596_v12, %v3099_v60  ;;  %v515_v0 = vadd.f32 %v3076_v48, %v472_v38  ;;  %v3100_v13 = vrot.slane %v4116_v47, 9  ;;  %v440_v14 = vadd.f32 %v438_v33, %v434_v31  ;;  %v4165_v48 = vld [vmem:[%s3971_s10 + $0xc] sm:$0x66] }
  0x7a   : > { %v486_v17 = vmul.f32 %v4004_v10, %v4074_v52  ;;  %v3110_v22 = vrot.slane %v4120_v54, 10  ;;  %v542_v23 = vmul.f32 %v4015_v18, %v500_v58  ;;  %v3112_v31 = vrot.slane %v4129_v63, 10  ;;  %v4193_v54 = vld [vmem:[%s3971_s10] sm:$0xcc] }
  0x7b   : > { %v652_v60 = vadd.f32 %v3111_v1, %v609_v39  ;;  %v528_v30 = vsub.f32 %v515_v0, %v3078_v51  ;;  %v3114_v33 = vrot.slane %v4132_v59, 10  ;;  %v484_v52 = vadd.f32 %v3068_v45, %v440_v14 }
  0x7c   : > { %v3070_v34 = vrot.slane %v486_v17, 9  ;;  %v574_v43 = vmul.f32 %v3086_v15, %v4044_v36  ;;  %v4159_v58 = vstv %s4106_s9  ;;  %v3082_v45 = vrot.slane %v542_v23, 10  ;;  %s4389_s9 = sld [smem:[#allocation2 + $0x25]] }
  0x7d   : > { %v665_v1 = vsub.f32 %v652_v60, %v3113_v5  ;;  %v563_v9 = vadd.f32 %v561_v53, %v528_v30  ;;  %v622_v50 = vmul.f32 %v3092_v28, %v4050_v40  ;;  %v728_v5 = vmul.f32 %v4159_v58, %v4144_v41 }
  0x7e   : > { %v496_v49 = vadd.f32 %v3070_v34, %v484_v52  ;;  %v4176_v51 = vstv %s4114_s11  ;;  %v4179_v53 = vstv %s4122_s26  ;;  %v4182_v3 = vstv %s4124_s4  ;;  %v4215_v34 = vld [vmem:[%s3971_s10 + $0x18] sm:$0x66]  ;;  %s3786_s11 = smov 126   ;;  %s4398_s26 = sld [smem:[#allocation2 + $0xb]] }
  0x7f   : > { %697 = vrot.lane.b32.xlu1 %v665_v1, %s3785_s28  ;;  %v568_v15 = vsub.f32 %v563_v9, %v566_v62  ;;  %v733_v4 = vmul.f32 %v4149_v29, %v4176_v51  ;;  %v752_v12 = vmul.f32 %v4179_v53, %v4162_v44  ;;  %v765_v38 = vmul.f32 %v4165_v48, %v4182_v3  ;;  %v4196_v62 = vld [vmem:[%s3971_s10 + $0xc] sm:$0xcc]  ;;  %s4400_s4 = sld [smem:[#allocation2 + $0x26]] }
  0x80   : > { %v540_v28 = vadd.f32 %v3080_v57, %v496_v49  ;;  %v4202_v57 = vmul.f32 %v4104_v37, %v4056_v42  ;;  %v4205_v39 = vstv %s4135_s17  ;;  %v4208_v0 = vstv %s4137_s30  ;;  %v4218_v49 = vld [vmem:[%s3971_s10 + $0x18] sm:$0x33]  ;;  %s4430_s17 = sld [smem:[#allocation2 + $0x3f]]  ;;  %s4438_s30 = sld [smem:[#allocation2 + $0x5a]] }
  0x81   : > { %v595_v63 = vadd.f32 %v3096_v7, %v568_v15  ;;  %v735_v17 = vsub.f32 %v728_v5, %v733_v4  ;;  %v3126_v60 = vrot.slane %v752_v12, 9  ;;  %v3128_v30 = vrot.slane %v765_v38, 9  ;;  %v4224_v5 = vld [vmem:[%s3971_s10 + $0x24] sm:$0x66]  ;;  %v4233_v12 = vld [vmem:[%s3971_s10 + $0x18] sm:$0xcc] }
  0x82   : > { %v552_v14 = vadd.f32 %v3082_v45, %v540_v28  ;;  %v3102_v52 = vrot.slane %v622_v50, 9  ;;  %v808_v7 = vmul.f32 %v4205_v39, %v4193_v54  ;;  %v821_v37 = vmul.f32 %v4196_v62, %v4208_v0 }
  0x83   : > { %v608_v23 = vsub.f32 %v595_v63, %v3098_v11  ;;  %v762_v9 = vadd.f32 %v3126_v60, %v735_v17  ;;  %v4221_v45 = vstv %s4151_s29  ;;  %v4227_v11 = vstv %s4155_s20  ;;  %v4236_v63 = vld [vmem:[%s3971_s10 + $0x24] sm:$0x33]  ;;  %s4440_s29 = sld [smem:[#allocation2 + $0x40]]  ;;  %s4454_s20 = sld [smem:[#allocation2 + $0x5b]] }
  0x84   : > { %v572_v1 = vadd.f32 %v570_v6, %v552_v14  ;;  %v3138_v15 = vrot.slane %v808_v7, 10  ;;  %v3140_v28 = vrot.slane %v821_v37, 10  ;;  %v4230_v4 = vstv %s4167_s22  ;;  %v4255_v37 = vld [vmem:[%s3971_s10 + $0x24] sm:$0xcc]  ;;  %s4456_s22 = sld [smem:[#allocation2 + $0x41]] }
  0x85   : > { %v651_v50 = vadd.f32 %v3110_v22, %v608_v23  ;;  %v775_v38 = vsub.f32 %v762_v9, %v3128_v30  ;;  %v888_v14 = vmul.f32 %v4215_v34, %v4227_v11  ;;  %v4241_v17 = vstv %s4172_s27  ;;  %s4469_s27 = sld [smem:[#allocation2 + $0x5c]] }
  0x86   : > { %v576_v6 = vadd.f32 %v574_v43, %v572_v1  ;;  %v864_v22 = vmul.f32 %v4218_v49, %v4221_v45  ;;  %v901_v23 = vmul.f32 %v4224_v5, %v4241_v17  ;;  %v4250_v7 = vstv %s4184_s23  ;;  %s3787_s23 = smov 112  }
  0x87   : > { %v4243_v60 = vsub.f32 %v651_v50, %v3112_v31  ;;  %v818_v30 = vadd.f32 %v3138_v15, %v775_v38  ;;  %v944_v31 = vmul.f32 %v4233_v12, %v4250_v7  ;;  %v4260_v1 = vstv %s4198_s5  ;;  %s4694_s5 = sld [smem:[#allocation2 + $0xc]] }
  0x88   : > { %v620_v43 = vadd.f32 %v3100_v13, %v576_v6  ;;  %v3116_v9 = vrot.slane %v4202_v57, 10  ;;  %v869_v50 = vmul.f32 %v4236_v63, %v4230_v4  ;;  %v3158_v21 = vrot.slane %v888_v14, 9  ;;  %v4277_v57 = vld [vmem:[%s3971_s10 + $0x14] sm:$0x3]  ;;  %v4498_v13 = vld [vmem:[%s3971_s10 + $0x24] sm:$0x66] }
  0x89   : > { %6087 = vst [vmem:[#allocation14_spill] sm:$0xff] %v4243_v60  ;;  %693 = vrot.lane.b32.xlu0 %v4243_v60, %s3785_s28  ;;  %v441_v47 = vadd.f32 %v4031_v26, %v4021_v20  ;;  %v831_v6 = vsub.f32 %v818_v30, %v3140_v28  ;;  %v487_v38 = vmul.f32 %v4004_v10, %v3982_v2  ;;  %v3160_v35 = vrot.slane %v901_v23, 9  ;;  %v4291_v23 = vld [vmem:[%s3971_s10 + $0x14] sm:$0x6] }
  0x8a   : > { %v632_v15 = vadd.f32 %v3102_v52, %v620_v43  ;;  %v957_v14 = vmul.f32 %v4255_v37, %v4260_v1  ;;  %v543_v26 = vmul.f32 %v4015_v18, %v4000_v8  ;;  %v3172_v10 = vrot.slane %v944_v31, 10  ;;  %v4288_v43 = vld [vmem:[%s3971_s10 + $0x8] sm:$0x6]  ;;  %6095 = vst [vmem:[#allocation19_spill] sm:$0xff] %v4498_v13 }
  0x8b   : > { %v485_v20 = vadd.f32 %v3069_v27, %v441_v47  ;;  %v866_v2 = vadd.f32 %v864_v22, %v831_v6  ;;  %v3071_v28 = vrot.slane %v487_v38, 9  ;;  %v4295_v16 = vmul.f32 %v4028_v25, %v4050_v40  ;;  %v4302_v27 = vld [vmem:[%s3971_s10 + $0x8] sm:$0xc]  ;;  %v4311_v25 = vld [vmem:[%s3971_s10 + $0x14] sm:$0xc] }
  0x8c   : > { %v676_v52 = vadd.f32 %v3114_v33, %v632_v15  ;;  %v3083_v30 = vrot.slane %v543_v26, 10  ;;  %v729_v8 = vmul.f32 %v4159_v58, %v4274_v61  ;;  %v734_v18 = vmul.f32 %v4277_v57, %v4176_v51  ;;  %v4332_v26 = vld [vmem:[%s3971_s10 + $0x20] sm:$0x6] }
  0x8d   : > { %v871_v33 = vsub.f32 %v866_v2, %v869_v50  ;;  %v497_v22 = vadd.f32 %v3071_v28, %v485_v20  ;;  %v4308_v31 = vmul.f32 %v4040_v32, %v4056_v42  ;;  %v3174_v40 = vrot.slane %v957_v14, 10  ;;  %v4329_v20 = vld [vmem:[%s3971_s10 + $0x2c] sm:$0x3] }
  0x8e   : > { %v4304_v59 = vadd.f32 %v3116_v9, %v676_v52  ;;  %v736_v47 = vsub.f32 %v729_v8, %v734_v18  ;;  %v753_v15 = vmul.f32 %v4179_v53, %v4288_v43  ;;  %v766_v6 = vmul.f32 %v4291_v23, %v4182_v3  ;;  %v4318_v9 = vld [vmem:[%s3971_s10 + $0x20] sm:$0x3] }
  0x8f   : > { %v898_v50 = vadd.f32 %v3158_v21, %v871_v33  ;;  %v6089_v32 = vrot.slane %v4018_v19, 10  ;;  %v575_v38 = vmul.f32 %v4025_v24, %v4044_v36  ;;  %v809_v14 = vmul.f32 %v4205_v39, %v4302_v27  ;;  %v4338_v19 = vld [vmem:[%s3971_s10 + $0x2c] sm:$0x6]  ;;  %v4344_v33 = vld [vmem:[%s3971_s10 + $0x20] sm:$0xc] }
  0x90   : > { %6088 = vst [vmem:[#allocation15_spill] sm:$0xff] %v4304_v59  ;;  %709 = vrot.lane.b32.xlu1 %v4304_v59, %s3785_s28  ;;  %v3103_v52 = vrot.slane %v4295_v16, 9  ;;  %v3127_v2 = vrot.slane %v753_v15, 9  ;;  %v3129_v28 = vrot.slane %v766_v6, 9  ;;  %v822_v21 = vmul.f32 %v4311_v25, %v4208_v0 }
  0x91   : > { %v541_v42 = vadd.f32 %v6089_v32, %v497_v22  ;;  %v911_v8 = vsub.f32 %v898_v50, %v3160_v35  ;;  %v3117_v24 = vrot.slane %v4308_v31, 10  ;;  %v865_v36 = vmul.f32 %v4318_v9, %v4221_v45  ;;  %v4347_v22 = vld [vmem:[%s3971_s10 + $0x2c] sm:$0xc] }
  0x92   : > { %v763_v32 = vadd.f32 %v3127_v2, %v736_v47  ;;  %v3139_v16 = vrot.slane %v809_v14, 10  ;;  %v4351_v15 = vmul.f32 %v4329_v20, %v4230_v4  ;;  %v4355_v6 = vmul.f32 %v4332_v26, %v4227_v11 }
  0x93   : > { %v553_v18 = vadd.f32 %v3083_v30, %v541_v42  ;;  %v954_v35 = vadd.f32 %v3172_v10, %v911_v8  ;;  %v4360_v31 = vmul.f32 %v4338_v19, %v4241_v17  ;;  %v737_v50 = vmul.f32 %v4149_v29, %v4159_v58 }
  0x94   : > { %v776_v47 = vsub.f32 %v763_v32, %v3129_v28  ;;  %v3141_v42 = vrot.slane %v822_v21, 10  ;;  %v4368_v14 = vmul.f32 %v4344_v33, %v4250_v7  ;;  %v4372_v10 = vmul.f32 %v4347_v22, %v4260_v1 }
  0x95   : > { %v573_v30 = vadd.f32 %v4078_v55, %v553_v18  ;;  %v4374_v55 = vsub.f32 %v954_v35, %v3174_v40  ;;  %v3159_v8 = vrot.slane %v4355_v6, 9  ;;  %v741_v29 = vmul.f32 %v4176_v51, %v4144_v41 }
  0x96   : > { %v819_v28 = vadd.f32 %v3139_v16, %v776_v47  ;;  %v777_v21 = vmul.f32 %v4165_v48, %v4179_v53  ;;  %v789_v18 = vmul.f32 %v4182_v3, %v4162_v44  ;;  %v833_v32 = vmul.f32 %v4196_v62, %v4205_v39 }
  0x97   : > { %6090 = vst [vmem:[#allocation16_spill] sm:$0xff] %v4374_v55  ;;  %v577_v2 = vadd.f32 %v575_v38, %v573_v30  ;;  %996 = vrot.lane.b32.xlu0 %v4374_v55, %s3786_s11  ;;  %v6091_v41 = vrot.slane %v4060_v46, 9  ;;  %v3161_v38 = vrot.slane %v4360_v31, 9  ;;  %v743_v48 = vadd.f32 %v741_v29, %v737_v50  ;;  %v4411_v29 = vld [vmem:[%s3971_s10] sm:$0x33] }
  0x98   : > { %v845_v44 = vmul.f32 %v4208_v0, %v4193_v54  ;;  %v832_v62 = vsub.f32 %v819_v28, %v3141_v42  ;;  %v3173_v16 = vrot.slane %v4368_v14, 10  ;;  %v3130_v6 = vrot.slane %v777_v21, 9 }
  0x99   : > { %v621_v40 = vadd.f32 %v6091_v41, %v577_v2  ;;  %v3132_v46 = vrot.slane %v789_v18, 9  ;;  %v3175_v30 = vrot.slane %v4372_v10, 10  ;;  %v873_v31 = vmul.f32 %v4236_v63, %v4221_v45  ;;  %v4428_v10 = vld [vmem:[%s3971_s10] sm:$0x66] }
  0x9a   : > { %v4408_v54 = vmul.f32 %v4224_v5, %v4227_v11  ;;  %v867_v50 = vadd.f32 %v865_v36, %v832_v62  ;;  %v787_v47 = vadd.f32 %v3130_v6, %v743_v48  ;;  %v3142_v42 = vrot.slane %v833_v32, 10  ;;  %v4422_v5 = vld [vmem:[%s3971_s10 + $0xc] sm:$0x33]  ;;  %v4467_v62 = vld [vmem:[%s3971_s10 + $0xc] sm:$0xcc] }
  0x9b   : > { %v633_v35 = vadd.f32 %v3103_v52, %v621_v40  ;;  %v3144_v2 = vrot.slane %v845_v44, 10  ;;  %v6092_v14 = vrot.slane %v4081_v56, 10  ;;  %v877_v52 = vmul.f32 %v4218_v49, %v4230_v4  ;;  %v4452_v40 = vld [vmem:[%s3971_s10 + $0xc] sm:$0x66]  ;;  %v4464_v44 = vld [vmem:[%s3971_s10] sm:$0xcc] }
  0x9c   : > { %v4419_v63 = vmul.f32 %v4215_v34, %v4241_v17  ;;  %v4425_v36 = vstv %s4364_s6  ;;  %v872_v56 = vsub.f32 %v867_v50, %v4351_v15  ;;  %v799_v21 = vadd.f32 %v3132_v46, %v787_v47  ;;  %6093 = vst [vmem:[#allocation17_spill] sm:$0xff] %v4464_v44  ;;  %s4696_s6 = sld [smem:[#allocation2 + $0x27]] }
  0x9d   : > { %v677_v28 = vadd.f32 %v6092_v14, %v633_v35  ;;  %v3162_v49 = vrot.slane %v4408_v54, 9  ;;  %v4436_v34 = vmul.f32 %v4255_v37, %v4250_v7  ;;  %v4444_v32 = vmul.f32 %v4233_v12, %v4260_v1 }
  0x9e   : > { %v1035_v15 = vmul.f32 %v4425_v36, %v4411_v29  ;;  %v4449_v41 = vstv %s4379_s7  ;;  %v899_v37 = vadd.f32 %v3159_v8, %v872_v56  ;;  %v4461_v12 = vstv %s4387_s8  ;;  %s4702_s7 = sld [smem:[#allocation2 + $0xd]]  ;;  %s4705_s8 = sld [smem:[#allocation2 + $0x28]] }
  0x9f   : > { %v689_v18 = vadd.f32 %v3117_v24, %v677_v28  ;;  %v843_v24 = vadd.f32 %v3142_v42, %v799_v21  ;;  %v1040_v48 = vmul.f32 %v4422_v5, %v4449_v41  ;;  %v1059_v6 = vmul.f32 %v4461_v12, %v4428_v10 }
  0xa0   : > { %v4475_v46 = vstv %s4389_s9  ;;  %v4478_v8 = vstv %s4398_s26  ;;  %v4481_v35 = vstv %s4400_s4  ;;  %v912_v54 = vsub.f32 %v899_v37, %v3161_v38  ;;  %v4492_v37 = vld [vmem:[%s3971_s10 + $0x18] sm:$0x66]  ;;  %s4707_s9 = sld [smem:[#allocation2 + $0xe]]  ;;  %s4725_s26 = sld [smem:[#allocation2 + $0x29]] }
  0xa1   : > { %713 = vrot.lane.b32.xlu1 %v689_v18, %s3785_s28  ;;  %v855_v50 = vadd.f32 %v3144_v2, %v843_v24  ;;  %v1042_v47 = vsub.f32 %v1035_v15, %v1040_v48  ;;  %v1072_v42 = vmul.f32 %v4452_v40, %v4475_v46  ;;  %v3164_v14 = vrot.slane %v4419_v63, 9  ;;  %6094 = vst [vmem:[#allocation18_spill] sm:$0xff] %v4492_v37  ;;  %s4745_s4 = sld [smem:[#allocation2 + $0x42]] }
  0xa2   : > { %v3188_v28 = vrot.slane %v1059_v6, 9  ;;  %v1115_v56 = vmul.f32 %v4478_v8, %v4464_v44  ;;  %v1128_v21 = vmul.f32 %v4467_v62, %v4481_v35  ;;  %v955_v38 = vadd.f32 %v3173_v16, %v912_v54 }
  0xa3   : > { %v875_v2 = vadd.f32 %v873_v31, %v855_v50  ;;  %v3176_v18 = vrot.slane %v4436_v34, 10  ;;  %v3190_v15 = vrot.slane %v1072_v42, 9  ;;  %v4495_v6 = vstv %s4430_s17  ;;  %v4501_v31 = vld [vmem:[%s3971_s10 + $0x18] sm:$0x33]  ;;  %v4504_v34 = vld [vmem:[%s3971_s10 + $0x24] sm:$0x33] }
  0xa4   : > { %v1069_v63 = vadd.f32 %v3188_v28, %v1042_v47  ;;  %v3200_v24 = vrot.slane %v1115_v56, 10  ;;  %v3202_v48 = vrot.slane %v1128_v21, 10  ;;  %v968_v55 = vsub.f32 %v955_v38, %v3175_v30  ;;  %6096 = vst [vmem:[#allocation20_spill] sm:$0xff] %v4501_v31  ;;  %v4518_v56 = vld [vmem:[%s3971_s10 + $0x18] sm:$0xcc]  ;;  %s4751_s17 = sld [smem:[#allocation2 + $0x5d]] }
  0xa5   : > { %v879_v16 = vadd.f32 %v877_v52, %v875_v2  ;;  %v4507_v54 = vstv %s4438_s30  ;;  %v4510_v50 = vstv %s4440_s29  ;;  %v4515_v28 = vstv %s4454_s20  ;;  %6097 = vst [vmem:[#allocation21_spill] sm:$0xff] %v4518_v56  ;;  %v4521_v21 = vld [vmem:[%s3971_s10 + $0x24] sm:$0xcc]  ;;  %s4753_s30 = sld [smem:[#allocation2 + $0x43]]  ;;  %s4766_s29 = sld [smem:[#allocation2 + $0x5e]] }
  0xa6   : > { %v1082_v42 = vsub.f32 %v1069_v63, %v3190_v15  ;;  %v1195_v47 = vmul.f32 %v4492_v37, %v4510_v50  ;;  %6098 = vst [vmem:[#allocation22_spill] sm:$0xff] %v4521_v21  ;;  %v4524_v30 = vstv %s4456_s22  ;;  %1000 = vrot.lane.b32.xlu0 %v968_v55, %s3786_s11  ;;  %v3178_v38 = vrot.slane %v4444_v32, 10  ;;  %s4775_s20 = sld [smem:[#allocation2 + $0x44]]  ;;  %s4777_s22 = sld [smem:[#allocation2 + $0x5f]] }
  0xa7   : > { %v923_v52 = vadd.f32 %v3162_v49, %v879_v16  ;;  %v1208_v2 = vmul.f32 %v4498_v13, %v4515_v28  ;;  %v4531_v15 = vstv %s4469_s27  ;;  %v1171_v60 = vmul.f32 %v4501_v31, %v4495_v6  ;;  %s4939_s27 = sld [smem:[#allocation2 + $0x2a]] }
  0xa8   : > { %v1125_v63 = vadd.f32 %v3200_v24, %v1082_v42  ;;  %v1176_v59 = vmul.f32 %v4504_v34, %v4507_v54  ;;  %v738_v37 = vmul.f32 %v4277_v57, %v4159_v58  ;;  %v1251_v55 = vmul.f32 %v4518_v56, %v4524_v30 }
  0xa9   : > { %v935_v44 = vadd.f32 %v3164_v14, %v923_v52  ;;  %v4543_v49 = vmul.f32 %v4521_v21, %v4531_v15  ;;  %v742_v32 = vmul.f32 %v4176_v51, %v4274_v61  ;;  %v3220_v16 = vrot.slane %v1195_v47, 9  ;;  %v4556_v51 = vld [vmem:[%s3971_s10 + $0x8] sm:$0x3] }
  0xaa   : > { %v1138_v24 = vsub.f32 %v1125_v63, %v3202_v48  ;;  %v778_v42 = vmul.f32 %v4291_v23, %v4179_v53  ;;  %v790_v58 = vmul.f32 %v4182_v3, %v4288_v43  ;;  %v3222_v14 = vrot.slane %v1208_v2, 9  ;;  %v4559_v53 = vld [vmem:[%s3971_s10 + $0x14] sm:$0x3]  ;;  %v4610_v2 = vld [vmem:[%s3971_s10 + $0x2c] sm:$0x3] }
  0xab   : > { %v979_v57 = vadd.f32 %v3176_v18, %v935_v44  ;;  %v744_v52 = vadd.f32 %v742_v32, %v738_v37  ;;  %v834_v56 = vmul.f32 %v4311_v25, %v4205_v39  ;;  %v846_v61 = vmul.f32 %v4208_v0, %v4302_v27  ;;  %v4569_v27 = vld [vmem:[%s3971_s10 + $0x8] sm:$0x6]  ;;  %v4620_v32 = vld [vmem:[%s3971_s10 + $0x2c] sm:$0x6] }
  0xac   : > { %v1173_v21 = vadd.f32 %v1171_v60, %v1138_v24  ;;  %v3131_v31 = vrot.slane %v778_v42, 9  ;;  %v3133_v13 = vrot.slane %v790_v58, 9  ;;  %v3234_v43 = vrot.slane %v1251_v55, 10 }
  0xad   : > { %v4561_v3 = vadd.f32 %v3178_v38, %v979_v57  ;;  %v3236_v23 = vrot.slane %v4543_v49, 10  ;;  %v874_v39 = vmul.f32 %v4329_v20, %v4221_v45  ;;  %v3143_v44 = vrot.slane %v834_v56, 10  ;;  %v4589_v20 = vld [vmem:[%s3971_s10 + $0x8] sm:$0xc]  ;;  %v4624_v57 = vld [vmem:[%s3971_s10 + $0x20] sm:$0xc] }
  0xae   : > { %v1178_v60 = vsub.f32 %v1173_v21, %v1176_v59  ;;  %v788_v25 = vadd.f32 %v3131_v31, %v744_v52  ;;  %v914_v0 = vmul.f32 %v4338_v19, %v4227_v11  ;;  %v4575_v18 = vmul.f32 %v4332_v26, %v4241_v17  ;;  %v4586_v11 = vld [vmem:[%s3971_s10 + $0x14] sm:$0x6] }
  0xaf   : > { %1014 = vrot.lane.b32.xlu1 %v4561_v3, %s3786_s11  ;;  %v4579_v37 = vmul.f32 %v4347_v22, %v4250_v7  ;;  %v1036_v45 = vmul.f32 %v4425_v36, %v4556_v51  ;;  %v1041_v59 = vmul.f32 %v4559_v53, %v4449_v41  ;;  %v3145_v26 = vrot.slane %v846_v61, 10  ;;  %v4596_v22 = vld [vmem:[%s3971_s10 + $0x14] sm:$0xc] }
  0xb0   : > { %v1205_v19 = vadd.f32 %v3220_v16, %v1178_v60  ;;  %v800_v17 = vadd.f32 %v3133_v13, %v788_v25  ;;  %v4593_v7 = vmul.f32 %v4344_v33, %v4260_v1  ;;  %v878_v48 = vmul.f32 %v4318_v9, %v4230_v4  ;;  %v4607_v33 = vld [vmem:[%s3971_s10 + $0x20] sm:$0x3]  ;;  %v4631_v25 = vld [vmem:[%s3971_s10 + $0x2c] sm:$0xc] }
  0xb1   : > { %v3163_v31 = vrot.slane %v914_v0, 9  ;;  %v1043_v47 = vsub.f32 %v1036_v45, %v1041_v59  ;;  %v1060_v56 = vmul.f32 %v4461_v12, %v4569_v27  ;;  %v1073_v13 = vmul.f32 %v4586_v11, %v4475_v46  ;;  %v4613_v4 = vld [vmem:[%s3971_s10 + $0x20] sm:$0x6] }
  0xb2   : > { %v1218_v21 = vsub.f32 %v1205_v19, %v3222_v14  ;;  %v844_v38 = vadd.f32 %v3143_v44, %v800_v17  ;;  %v1116_v1 = vmul.f32 %v4478_v8, %v4589_v20  ;;  %v3165_v9 = vrot.slane %v4575_v18, 9 }
  0xb3   : > { %v3177_v63 = vrot.slane %v4579_v37, 10  ;;  %v3189_v55 = vrot.slane %v1060_v56, 9  ;;  %v1129_v49 = vmul.f32 %v4596_v22, %v4481_v35  ;;  %v3179_v42 = vrot.slane %v4593_v7, 10 }
  0xb4   : > { %v1261_v24 = vadd.f32 %v3234_v43, %v1218_v21  ;;  %v856_v16 = vadd.f32 %v3145_v26, %v844_v38  ;;  %v3191_v58 = vrot.slane %v1073_v13, 9  ;;  %v3201_v52 = vrot.slane %v1116_v1, 10  ;;  %v6099_v13 = vld [vmem:[#allocation17_spill] sm:$0xff] }
  0xb5   : > { %v1070_v14 = vadd.f32 %v3189_v55, %v1043_v47  ;;  %v1172_v61 = vmul.f32 %v4607_v33, %v4495_v6  ;;  %v1196_v60 = vmul.f32 %v4613_v4, %v4510_v50  ;;  %v1177_v43 = vmul.f32 %v4610_v2, %v4507_v54 }
  0xb6   : > { %v4633_v44 = vsub.f32 %v1261_v24, %v3236_v23  ;;  %v876_v0 = vadd.f32 %v874_v39, %v856_v16  ;;  %v1209_v18 = vmul.f32 %v4620_v32, %v4515_v28  ;;  %v3203_v45 = vrot.slane %v1129_v49, 10 }
  0xb7   : > { %v1083_v37 = vsub.f32 %v1070_v14, %v3191_v58  ;;  %v4641_v59 = vmul.f32 %v4624_v57, %v4524_v30  ;;  %v1044_v19 = vmul.f32 %v4422_v5, %v4425_v36  ;;  %v3221_v39 = vrot.slane %v1196_v60, 9  ;;  %v6100_v58 = vld [vmem:[#allocation19_spill] sm:$0xff] }
  0xb8   : > { %1303 = vrot.lane.b32.xlu0 %v4633_v44, %s3787_s23  ;;  %v880_v23 = vadd.f32 %v878_v48, %v876_v0  ;;  %v4649_v17 = vmul.f32 %v4631_v25, %v4531_v15  ;;  %v1048_v26 = vmul.f32 %v4449_v41, %v4411_v29  ;;  %v1084_v47 = vmul.f32 %v4452_v40, %v4461_v12 }
  0xb9   : > { %v1126_v7 = vadd.f32 %v3201_v52, %v1083_v37  ;;  %v1096_v5 = vmul.f32 %v4475_v46, %v4428_v10  ;;  %v1140_v56 = vmul.f32 %v4467_v62, %v4478_v8  ;;  %v3223_v48 = vrot.slane %v1209_v18, 9  ;;  %v6101_v18 = vld [vmem:[#allocation20_spill] sm:$0xff] }
  0xba   : > { %v924_v21 = vadd.f32 %v3163_v31, %v880_v23  ;;  %v1050_v38 = vadd.f32 %v1048_v26, %v1044_v19  ;;  %v1152_v1 = vmul.f32 %v4481_v35, %v6099_v13  ;;  %v3235_v49 = vrot.slane %v4641_v59, 10 }
  0xbb   : > { %v1139_v55 = vsub.f32 %v1126_v7, %v3203_v45  ;;  %v3192_v29 = vrot.slane %v1084_v47, 9  ;;  %v3194_v24 = vrot.slane %v1096_v5, 9  ;;  %v3237_v40 = vrot.slane %v4649_v17, 10  ;;  %v6102_v45 = vld [vmem:[#allocation18_spill] sm:$0xff] }
  0xbc   : > { %v936_v16 = vadd.f32 %v3165_v9, %v924_v21  ;;  %v1180_v10 = vmul.f32 %v4504_v34, %v4495_v6  ;;  %v4667_v62 = vmul.f32 %v6100_v58, %v4510_v50  ;;  %v3204_v52 = vrot.slane %v1140_v56, 10 }
  0xbd   : > { %v1174_v31 = vadd.f32 %v1172_v61, %v1139_v55  ;;  %v1094_v14 = vadd.f32 %v3192_v29, %v1050_v38  ;;  %v3206_v60 = vrot.slane %v1152_v1, 10  ;;  %v1184_v37 = vmul.f32 %v6101_v18, %v4507_v54  ;;  %v6103_v61 = vld [vmem:[#allocation22_spill] sm:$0xff] }
  0xbe   : > { %v980_v0 = vadd.f32 %v3177_v63, %v936_v16  ;;  %v4673_v9 = vmul.f32 %v6102_v45, %v4515_v28  ;;  %v1045_v59 = vmul.f32 %v4559_v53, %v4425_v36  ;;  %v3224_v23 = vrot.slane %v4667_v62, 9  ;;  %v6104_v63 = vld [vmem:[#allocation21_spill] sm:$0xff]  ;;  %v4723_v1 = vld [vmem:[%s3971_s10] sm:$0x33]  ;;  %v4764_v62 = vld [vmem:[%s3971_s10] sm:$0xcc] }
  0xbf   : > { %v1179_v34 = vsub.f32 %v1174_v31, %v1177_v43  ;;  %v1106_v19 = vadd.f32 %v3194_v24, %v1094_v14  ;;  %v4680_v17 = vmul.f32 %v6103_v61, %v4524_v30  ;;  %v4684_v7 = vmul.f32 %v6104_v63, %v4531_v15  ;;  %v4743_v16 = vld [vmem:[%s3971_s10 + $0xc] sm:$0x66] }
  0xc0   : > { %v992_v26 = vadd.f32 %v3179_v42, %v980_v0  ;;  %v1049_v47 = vmul.f32 %v4449_v41, %v4556_v51  ;;  %v1085_v5 = vmul.f32 %v4586_v11, %v4461_v12  ;;  %v1097_v43 = vmul.f32 %v4475_v46, %v4569_v27  ;;  %v3260_v45 = vld [vmem:[%s3971_s10 + $0xc] sm:$0xcc] }
  0xc1   : > { %v1206_v36 = vadd.f32 %v3221_v39, %v1179_v34  ;;  %v1150_v53 = vadd.f32 %v3204_v52, %v1106_v19  ;;  %v1141_v56 = vmul.f32 %v4596_v22, %v4478_v8  ;;  %v3226_v42 = vrot.slane %v4673_v9, 9  ;;  %v6108_v63 = vld [vmem:[#allocation16_spill] sm:$0xff] }
  0xc2   : > { %1018 = vrot.lane.b32.xlu1 %v992_v26, %s3786_s11  ;;  %v1051_v41 = vadd.f32 %v1049_v47, %v1045_v59  ;;  %v3193_v51 = vrot.slane %v1085_v5, 9  ;;  %v1153_v12 = vmul.f32 %v4481_v35, %v4589_v20  ;;  %v3238_v8 = vrot.slane %v4680_v17, 10  ;;  %v6106_v17 = vld [vmem:[#allocation14_spill] sm:$0xff] }
  0xc3   : > { %v1219_v46 = vsub.f32 %v1206_v36, %v3223_v48  ;;  %v1162_v27 = vadd.f32 %v3206_v60, %v1150_v53  ;;  %v3195_v11 = vrot.slane %v1097_v43, 9  ;;  %v3240_v22 = vrot.slane %v4684_v7, 10 }
  0xc4   : > { %v1095_v39 = vadd.f32 %v3193_v51, %v1051_v41  ;;  %v3205_v21 = vrot.slane %v1141_v56, 10  ;;  %v4712_v35 = vmul.f32 %v4620_v32, %v4510_v50  ;;  %v4716_v38 = vmul.f32 %v4613_v4, %v4515_v28  ;;  %v4737_v28 = vld [vmem:[%s3971_s10] sm:$0x66] }
  0xc5   : > { %v1262_v20 = vadd.f32 %v3235_v49, %v1219_v46  ;;  %v1182_v48 = vadd.f32 %v1180_v10, %v1162_v27  ;;  %v4720_v13 = vmul.f32 %v4631_v25, %v4524_v30  ;;  %v3207_v29 = vrot.slane %v1153_v12, 10  ;;  %v4734_v49 = vld [vmem:[%s3971_s10 + $0xc] sm:$0x33]  ;;  %v4806_v46 = vld [vmem:[%s3971_s10 + $0x18] sm:$0x33] }
  0xc6   : > { %v1107_v55 = vadd.f32 %v3195_v11, %v1095_v39  ;;  %v1181_v50 = vmul.f32 %v4610_v2, %v4495_v6  ;;  %v4731_v32 = vmul.f32 %v4624_v57, %v4531_v15  ;;  %v1185_v25 = vmul.f32 %v4607_v33, %v4507_v54  ;;  %v6105_v57 = vld [vmem:[#allocation15_spill] sm:$0xff] }
  0xc7   : > { %v1275_v30 = vsub.f32 %v1262_v20, %v3237_v40  ;;  %v1186_v4 = vadd.f32 %v1184_v37, %v1182_v48  ;;  %v3225_v24 = vrot.slane %v4712_v35, 9  ;;  %v3227_v15 = vrot.slane %v4716_v38, 9  ;;  %v3274_v27 = vld [vmem:[%s3971_s10 + $0x24] sm:$0x33] }
  0xc8   : > { %v1151_v6 = vadd.f32 %v3205_v21, %v1107_v55  ;;  %v3239_v2 = vrot.slane %v4720_v13, 10  ;;  %v708_v40 = vcombine.high %v6105_v57, %v6105_v57  ;;  %v3241_v33 = vrot.slane %v4731_v32, 10  ;;  %v3280_v21 = vld [vmem:[%s3971_s10 + $0x24] sm:$0x66] }
  0xc9   : > { %1307 = vrot.lane.b32.xlu0 %v1275_v30, %s3787_s23  ;;  %v1230_v54 = vadd.f32 %v3224_v23, %v1186_v4  ;;  %v4758_v10 = vstv %s4694_s5  ;;  %v4761_v58 = vstv %s4696_s6  ;;  %v4773_v60 = vstv %s4702_s7  ;;  %s4947_s5 = sld [smem:[#allocation2 + $0x2b]]  ;;  %s4949_s6 = sld [smem:[#allocation2 + $0x11]] }
  0xca   : > { %v1163_v31 = vadd.f32 %v3207_v29, %v1151_v6  ;;  %v1342_v14 = vmul.f32 %v4758_v10, %v4723_v1  ;;  %v1347_v52 = vmul.f32 %v4734_v49, %v4761_v58  ;;  %v1366_v18 = vmul.f32 %v4773_v60, %v4737_v28  ;;  %v3294_v29 = vld [vmem:[%s3971_s10 + $0x24] sm:$0xcc]  ;;  %s4954_s7 = sld [smem:[#allocation2 + $0x2c]] }
  0xcb   : > { %v1242_v0 = vadd.f32 %v3226_v42, %v1230_v54  ;;  %v4782_v37 = vstv %s4705_s8  ;;  %v4786_v9 = vstv %s4707_s9  ;;  %v6107_v26 = vcombine.high %v6106_v17, %v6106_v17  ;;  %v3278_v42 = vld [vmem:[%s3971_s10 + $0x18] sm:$0x66]  ;;  %v4860_v17 = vld [vmem:[%s3971_s10 + $0x8] sm:$0x3]  ;;  %s4982_s8 = sld [smem:[#allocation2 + $0x45]]  ;;  %s4984_s9 = sld [smem:[#allocation2 + $0x60]] }
  0xcc   : > { %v1183_v59 = vadd.f32 %v1181_v50, %v1163_v31  ;;  %v1349_v34 = vsub.f32 %v1342_v14, %v1347_v52  ;;  %v1379_v19 = vmul.f32 %v4743_v16, %v4782_v37  ;;  %v1422_v23 = vmul.f32 %v4786_v9, %v4764_v62 }
  0xcd   : > { %v1286_v61 = vadd.f32 %v3238_v8, %v1242_v0  ;;  %695 = vrot.lane.b32.xlu0 %v6107_v26, %s3785_s28  ;;  %v995_v7 = vcombine.high %v6108_v63, %v6108_v63  ;;  %v3250_v47 = vrot.slane %v1366_v18, 9  ;;  %v4799_v5 = vstv %s4725_s26  ;;  %v3275_v63 = vld [vmem:[%s3971_s10 + $0x2c] sm:$0x3]  ;;  %s4997_s26 = sld [smem:[#allocation2 + $0x46]] }
  0xce   : > { %v1187_v36 = vadd.f32 %v1185_v25, %v1183_v59  ;;  %v1013_v53 = vcombine.high %v4561_v3, %v4561_v3  ;;  %v3252_v43 = vrot.slane %v1379_v19, 9  ;;  %v1435_v56 = vmul.f32 %v3260_v45, %v4799_v5 }
  0xcf   : > { %v1298_v41 = vadd.f32 %v3240_v22, %v1286_v61  ;;  %v1376_v51 = vadd.f32 %v3250_v47, %v1349_v34  ;;  %v3262_v12 = vrot.slane %v1422_v23, 10  ;;  %v4810_v8 = vstv %s4745_s4  ;;  %v3292_v22 = vld [vmem:[%s3971_s10 + $0x18] sm:$0xcc]  ;;  %s4999_s4 = sld [smem:[#allocation2 + $0x61]] }
  0xd0   : > { %v1231_v11 = vadd.f32 %v3225_v24, %v1187_v36  ;;  %v1302_v3 = vcombine.high %v4633_v44, %v4633_v44  ;;  %v4815_v39 = vstv %s4751_s17  ;;  %v4819_v35 = vstv %s4753_s30  ;;  %s5010_s17 = sld [smem:[#allocation2 + $0x47]]  ;;  %s5023_s30 = sld [smem:[#allocation2 + $0x62]] }
  0xd1   : > { %1321 = vrot.lane.b32.xlu1 %v1298_v41, %s3787_s23  ;;  %711 = vrot.lane.b32.xlu0 %v708_v40, %s3785_s28  ;;  %v1389_v20 = vsub.f32 %v1376_v51, %v3252_v43  ;;  %v3264_v48 = vrot.slane %v1435_v56, 10  ;;  %v1502_v38 = vmul.f32 %v3278_v42, %v4819_v35  ;;  %v4826_v55 = vstv %s4766_s29  ;;  %v3249_v43 = vld [vmem:[%s3971_s10 + $0x14] sm:$0x6]  ;;  %s4923_s28 = sld [smem:[#allocation2 + $0xf]]  ;;  %s5134_s29 = sld [smem:[#allocation2 + $0x12]] }
  0xd2   : > { %v1243_v50 = vadd.f32 %v3227_v15, %v1231_v11  ;;  %v1478_v30 = vmul.f32 %v4806_v46, %v4810_v8  ;;  %v4832_v4 = vstv %s4775_s20  ;;  %v4835_v25 = vstv %s4777_s22  ;;  %v1418_v11 = vld [vmem:[%s3971_s10 + $0x8] sm:$0xc]  ;;  %s3789_s20 = smov 110   ;;  %s5147_s22 = sld [smem:[#allocation2 + $0x2d]] }
  0xd3   : > { %v1432_v24 = vadd.f32 %v3262_v12, %v1389_v20  ;;  %v1483_v6 = vmul.f32 %v3274_v27, %v4815_v39  ;;  %v1515_v57 = vmul.f32 %v3280_v21, %v4826_v55  ;;  %v1558_v40 = vmul.f32 %v3292_v22, %v4832_v4 }
  0xd4   : > { %v1287_v54 = vadd.f32 %v3239_v2, %v1243_v50  ;;  %v4843_v31 = vmul.f32 %v3294_v29, %v4835_v25  ;;  %v1351_v15 = vmul.f32 %v4734_v49, %v4758_v10  ;;  %v1355_v14 = vmul.f32 %v4761_v58, %v4723_v1 }
  0xd5   : > { %1016 = vrot.lane.b32.xlu0 %v1013_v53, %s3786_s11  ;;  %v1320_v52 = vcombine.high %v1298_v41, %v1298_v41  ;;  %v1445_v0 = vsub.f32 %v1432_v24, %v3264_v48  ;;  %v3282_v18 = vrot.slane %v1502_v38, 9  ;;  %v1391_v13 = vmul.f32 %v4743_v16, %v4773_v60  ;;  %v1362_v53 = vld [vmem:[%s3971_s10 + $0x8] sm:$0x6]  ;;  %v3261_v38 = vld [vmem:[%s3971_s10 + $0x14] sm:$0xc] }
  0xd6   : > { %v1299_v2 = vadd.f32 %v3241_v33, %v1287_v54  ;;  %v1357_v59 = vadd.f32 %v1355_v14, %v1351_v15  ;;  %v1403_v34 = vmul.f32 %v4782_v37, %v4737_v28  ;;  %v1447_v49 = vmul.f32 %v3260_v45, %v4786_v9  ;;  %v3245_v45 = vld [vmem:[%s3971_s10 + $0x14] sm:$0x3]  ;;  %v3281_v14 = vld [vmem:[%s3971_s10 + $0x2c] sm:$0x6] }
  0xd7   : > { %v1480_v19 = vadd.f32 %v1478_v30, %v1445_v0  ;;  %v3284_v1 = vrot.slane %v1515_v57, 9  ;;  %v3254_v23 = vrot.slane %v1391_v13, 9  ;;  %v1459_v61 = vmul.f32 %v4799_v5, %v4764_v62 }
  0xd8   : > { %1325 = vrot.lane.b32.xlu1 %v1299_v2, %s3787_s23  ;;  %v3296_v32 = vrot.slane %v1558_v40, 10  ;;  %v3298_v16 = vrot.slane %v4843_v31, 10  ;;  %v3256_v33 = vrot.slane %v1403_v34, 9  ;;  %v4865_v28 = vmul.f32 %v3280_v21, %v4819_v35  ;;  %v4897_v40 = vld [vmem:[%s3971_s10 + $0x20] sm:$0x3] }
  0xd9   : > { %1323 = vrot.lane.b32.xlu0 %v1320_v52, %s3787_s23  ;;  %v1485_v26 = vsub.f32 %v1480_v19, %v1483_v6  ;;  %v1401_v47 = vadd.f32 %v3254_v23, %v1357_v59  ;;  %v3266_v36 = vrot.slane %v1447_v49, 10  ;;  %v1487_v62 = vmul.f32 %v3274_v27, %v4810_v8  ;;  %v4907_v2 = vld [vmem:[%s3971_s10 + $0x20] sm:$0xc] }
  0xda   : > { %v3268_v56 = vrot.slane %v1459_v61, 10  ;;  %v4873_v41 = vmul.f32 %v3278_v42, %v4826_v55  ;;  %v4876_v51 = vmul.f32 %v3294_v29, %v4832_v4  ;;  %v1343_v12 = vmul.f32 %v4758_v10, %v4860_v17 }
  0xdb   : > { %v1512_v21 = vadd.f32 %v3282_v18, %v1485_v26  ;;  %v1413_v20 = vadd.f32 %v3256_v33, %v1401_v47  ;;  %v4882_v27 = vmul.f32 %v3292_v22, %v4835_v25  ;;  %v1348_v48 = vmul.f32 %v3245_v45, %v4761_v58 }
  0xdc   : > { %998 = vrot.lane.b32.xlu1 %v995_v7, %s3786_s11  ;;  %v1491_v42 = vmul.f32 %v4806_v46, %v4815_v39  ;;  %v3286_v29 = vrot.slane %v4865_v28, 9  ;;  %v1367_v50 = vmul.f32 %v4773_v60, %v1362_v53  ;;  %v1380_v30 = vmul.f32 %v3249_v43, %v4782_v37  ;;  %v3279_v7 = vld [vmem:[%s3971_s10 + $0x20] sm:$0x6]  ;;  %s3788_s11 = smov 111  }
  0xdd   : > { %v1525_v22 = vsub.f32 %v1512_v21, %v3284_v1  ;;  %v1457_v24 = vadd.f32 %v3266_v36, %v1413_v20  ;;  %v1350_v6 = vsub.f32 %v1343_v12, %v1348_v48  ;;  %v1423_v57 = vmul.f32 %v4786_v9, %v1418_v11  ;;  %v3295_v1 = vld [vmem:[%s3971_s10 + $0x2c] sm:$0xc] }
  0xde   : > { %v3288_v54 = vrot.slane %v4873_v41, 9  ;;  %v3251_v46 = vrot.slane %v1367_v50, 9  ;;  %v3253_v31 = vrot.slane %v1380_v30, 9  ;;  %v1436_v15 = vmul.f32 %v3261_v38, %v4799_v5 }
  0xdf   : > { %v1568_v52 = vadd.f32 %v3296_v32, %v1525_v22  ;;  %v1469_v0 = vadd.f32 %v3268_v56, %v1457_v24  ;;  %v3300_v18 = vrot.slane %v4876_v51, 10  ;;  %v3302_v13 = vrot.slane %v4882_v27, 10  ;;  %v4966_v24 = vld [vmem:[%s3971_s10 + $0xc] sm:$0x33] }
  0xe0   : > { %1305 = vrot.lane.b32.xlu1 %v1302_v3, %s3787_s23  ;;  %v1377_v59 = vadd.f32 %v3251_v46, %v1350_v6  ;;  %v3263_v34 = vrot.slane %v1423_v57, 10  ;;  %v1479_v49 = vmul.f32 %v4897_v40, %v4810_v8  ;;  %v4916_v19 = vmul.f32 %v3279_v7, %v4819_v35  ;;  %s4941_s23 = sld [smem:[#allocation2 + $0x10]]  ;;  %v4980_v46 = vld [vmem:[%s3971_s10 + $0xc] sm:$0x66] }
  0xe1   : > { %v1581_v23 = vsub.f32 %v1568_v52, %v3298_v16  ;;  %v1489_v61 = vadd.f32 %v1487_v62, %v1469_v0  ;;  %v1484_v32 = vmul.f32 %v3275_v63, %v4815_v39  ;;  %v4921_v33 = vmul.f32 %v3281_v14, %v4826_v55 }
  0xe2   : > { %v1390_v44 = vsub.f32 %v1377_v59, %v3253_v31  ;;  %v3265_v3 = vrot.slane %v1436_v15, 10  ;;  %v4927_v28 = vmul.f32 %v4907_v2, %v4832_v4  ;;  %v1352_v26 = vmul.f32 %v3245_v45, %v4758_v10 }
  0xe3   : > { %v1609_v47 = vcombine.high %v1581_v23, %v1581_v23  ;;  %1610 = vrot.lane.b32.xlu0 %v1581_v23, %s3788_s11  ;;  %v1493_v16 = vadd.f32 %v1491_v42, %v1489_v61  ;;  %v3283_v36 = vrot.slane %v4916_v19, 9  ;;  %v4933_v62 = vmul.f32 %v3295_v1, %v4835_v25 }
  0xe4   : > { %v1433_v56 = vadd.f32 %v3263_v34, %v1390_v44  ;;  %v1356_v41 = vmul.f32 %v4761_v58, %v4860_v17  ;;  %v1392_v51 = vmul.f32 %v3249_v43, %v4773_v60  ;;  %v1404_v12 = vmul.f32 %v4782_v37, %v1362_v53 }
  0xe5   : > { %1612 = vrot.lane.b32.xlu1 %v1609_v47, %s3788_s11  ;;  %v1537_v10 = vadd.f32 %v3286_v29, %v1493_v16  ;;  %v3285_v45 = vrot.slane %v4921_v33, 9  ;;  %v1448_v21 = vmul.f32 %v3261_v38, %v4786_v9  ;;  %v1460_v20 = vmul.f32 %v4799_v5, %v1418_v11  ;;  %v4960_v29 = vld [vmem:[%s3971_s10] sm:$0x33] }
  0xe6   : > { %v1446_v58 = vsub.f32 %v1433_v56, %v3265_v3  ;;  %v1358_v60 = vadd.f32 %v1356_v41, %v1352_v26  ;;  %v3255_v17 = vrot.slane %v1392_v51, 9  ;;  %v3257_v37 = vrot.slane %v1404_v12, 9  ;;  %v3334_v41 = vld [vmem:[%s3971_s10 + $0x18] sm:$0x33]  ;;  %v3336_v51 = vld [vmem:[%s3971_s10 + $0x24] sm:$0x33] }
  0xe7   : > { %v1549_v53 = vadd.f32 %v3288_v54, %v1537_v10  ;;  %v3297_v43 = vrot.slane %v4927_v28, 10  ;;  %v3299_v48 = vrot.slane %v4933_v62, 10  ;;  %v1488_v9 = vmul.f32 %v3275_v63, %v4810_v8  ;;  %v4972_v8 = vld [vmem:[%s3971_s10] sm:$0x66] }
  0xe8   : > { %v1481_v5 = vadd.f32 %v1479_v49, %v1446_v58  ;;  %v1402_v11 = vadd.f32 %v3255_v17, %v1358_v60  ;;  %v3267_v38 = vrot.slane %v1448_v21, 10  ;;  %v4957_v42 = vmul.f32 %v3281_v14, %v4819_v35  ;;  %v5008_v14 = vld [vmem:[%s3971_s10] sm:$0xcc]  ;;  %v3354_v17 = vld [vmem:[%s3971_s10 + $0x18] sm:$0xcc] }
  0xe9   : > { %v1593_v50 = vadd.f32 %v3300_v18, %v1549_v53  ;;  %v3269_v30 = vrot.slane %v1460_v20, 10  ;;  %v4963_v22 = vmul.f32 %v3279_v7, %v4826_v55  ;;  %v4969_v6 = vstv %s4923_s28  ;;  %v3342_v20 = vld [vmem:[%s3971_s10 + $0x24] sm:$0x66]  ;;  %s5152_s28 = sld [smem:[#allocation2 + $0x13]] }
  0xea   : > { %v1486_v57 = vsub.f32 %v1481_v5, %v1484_v32  ;;  %v1414_v63 = vadd.f32 %v3257_v37, %v1402_v11  ;;  %v1492_v35 = vmul.f32 %v4897_v40, %v4815_v39  ;;  %v4977_v54 = vmul.f32 %v3295_v1, %v4832_v4 }
  0xeb   : > { %v4988_v55 = vadd.f32 %v3302_v13, %v1593_v50  ;;  %v3287_v7 = vrot.slane %v4957_v42, 9  ;;  %v4993_v39 = vmul.f32 %v4907_v2, %v4835_v25  ;;  %v1645_v4 = vmul.f32 %v4969_v6, %v4960_v29  ;;  %v3322_v13 = vld [vmem:[%s3971_s10 + $0xc] sm:$0xcc] }
  0xec   : > { %v1513_v40 = vadd.f32 %v3283_v36, %v1486_v57  ;;  %v1458_v27 = vadd.f32 %v3267_v38, %v1414_v63  ;;  %v5002_v31 = vstv %s4939_s27  ;;  %v5005_v15 = vstv %s4941_s23  ;;  %v3340_v36 = vld [vmem:[%s3971_s10 + $0x18] sm:$0x66]  ;;  %s5158_s27 = sld [smem:[#allocation2 + $0x14]]  ;;  %s5165_s23 = sld [smem:[#allocation2 + $0x2f]] }
  0xed   : > { %1626 = vrot.lane.b32.xlu1 %v4988_v55, %s3788_s11  ;;  %v3289_v25 = vrot.slane %v4963_v22, 9  ;;  %v1650_v52 = vmul.f32 %v4966_v24, %v5002_v31  ;;  %v1669_v0 = vmul.f32 %v5005_v15, %v4972_v8  ;;  %v5020_v18 = vstv %s4947_s5  ;;  %s5185_s5 = sld [smem:[#allocation2 + $0x48]] }
  0xee   : > { %v1526_v2 = vsub.f32 %v1513_v40, %v3285_v45  ;;  %v1470_v59 = vadd.f32 %v3269_v30, %v1458_v27  ;;  %v1682_v34 = vmul.f32 %v4980_v46, %v5020_v18  ;;  %v5028_v49 = vstv %s4949_s6  ;;  %s5194_s6 = sld [smem:[#allocation2 + $0x63]] }
  0xef   : > { %v1652_v19 = vsub.f32 %v1645_v4, %v1650_v52  ;;  %v3312_v1 = vrot.slane %v1669_v0, 9  ;;  %v1725_v23 = vmul.f32 %v5028_v49, %v5008_v14  ;;  %v5033_v61 = vstv %s4954_s7  ;;  %s5196_s7 = sld [smem:[#allocation2 + $0x49]] }
  0xf0   : > { %v1569_v32 = vadd.f32 %v3297_v43, %v1526_v2  ;;  %v1490_v33 = vadd.f32 %v1488_v9, %v1470_v59  ;;  %v3314_v44 = vrot.slane %v1682_v34, 9  ;;  %v1738_v3 = vmul.f32 %v3322_v13, %v5033_v61  ;;  %v3307_v34 = vld [vmem:[%s3971_s10 + $0x14] sm:$0x3] }
  0xf1   : > { %v3301_v28 = vrot.slane %v4977_v54, 10  ;;  %v3303_v26 = vrot.slane %v4993_v39, 10  ;;  %v1679_v47 = vadd.f32 %v3312_v1, %v1652_v19  ;;  %v3324_v16 = vrot.slane %v1725_v23, 10 }
  0xf2   : > { %v1582_v62 = vsub.f32 %v1569_v32, %v3299_v48  ;;  %v1494_v56 = vadd.f32 %v1492_v35, %v1490_v33  ;;  %v5042_v12 = vstv %s4982_s8  ;;  %v5045_v10 = vstv %s4984_s9  ;;  %v3356_v48 = vld [vmem:[%s3971_s10 + $0x24] sm:$0xcc]  ;;  %s5210_s8 = sld [smem:[#allocation2 + $0x64]]  ;;  %s5220_s9 = sld [smem:[#allocation2 + $0x4a]] }
  0xf3   : > { %v1692_v45 = vsub.f32 %v1679_v47, %v3314_v44  ;;  %v3326_v21 = vrot.slane %v1738_v3, 10  ;;  %v5049_v58 = vstv %s4997_s26  ;;  %v5052_v60 = vstv %s4999_s4  ;;  %v1665_v44 = vld [vmem:[%s3971_s10 + $0x8] sm:$0x6]  ;;  %s5222_s26 = sld [smem:[#allocation2 + $0x65]] }
  0xf4   : > { %1614 = vrot.lane.b32.xlu0 %v1582_v62, %s3788_s11  ;;  %v1538_v37 = vadd.f32 %v3287_v7, %v1494_v56  ;;  %v1625_v53 = vcombine.high %v4988_v55, %v4988_v55  ;;  %v1805_v43 = vmul.f32 %v3340_v36, %v5049_v58  ;;  %v5061_v9 = vstv %s5010_s17  ;;  %v1721_v62 = vld [vmem:[%s3971_s10 + $0x8] sm:$0xc]  ;;  %v3323_v56 = vld [vmem:[%s3971_s10 + $0x14] sm:$0xc]  ;;  %s5338_s4 = sld [smem:[#allocation2 + $0x15]]  ;;  %s3790_s17 = smov 96  }
  0xf5   : > { %v1735_v5 = vadd.f32 %v3324_v16, %v1692_v45  ;;  %v1781_v11 = vmul.f32 %v3334_v41, %v5042_v12  ;;  %v5065_v38 = vstv %s5023_s30  ;;  %v1654_v42 = vmul.f32 %v4966_v24, %v4969_v6  ;;  %v3311_v16 = vld [vmem:[%s3971_s10 + $0x14] sm:$0x6]  ;;  %s5352_s30 = sld [smem:[#allocation2 + $0x30]] }
  0xf6   : > { %v1550_v50 = vadd.f32 %v3289_v25, %v1538_v37  ;;  %v1786_v30 = vmul.f32 %v3336_v51, %v5045_v10  ;;  %v1818_v22 = vmul.f32 %v3342_v20, %v5052_v60  ;;  %v1861_v57 = vmul.f32 %v3354_v17, %v5061_v9 }
  0xf7   : > { %v1748_v63 = vsub.f32 %v1735_v5, %v3326_v21  ;;  %v1874_v35 = vmul.f32 %v3356_v48, %v5065_v38  ;;  %v1658_v54 = vmul.f32 %v5002_v31, %v4960_v29  ;;  %v1694_v55 = vmul.f32 %v4980_v46, %v5005_v15  ;;  %v5084_v29 = vld [vmem:[%s3971_s10 + $0x8] sm:$0x3]  ;;  %v5109_v5 = vld [vmem:[%s3971_s10 + $0x20] sm:$0x3] }
  0xf8   : > { %v1594_v7 = vadd.f32 %v3301_v28, %v1550_v50  ;;  %1628 = vrot.lane.b32.xlu0 %v1625_v53, %s3788_s11  ;;  %v3344_v24 = vrot.slane %v1805_v43, 9  ;;  %v1706_v39 = vmul.f32 %v5020_v18, %v4972_v8  ;;  %v1750_v4 = vmul.f32 %v3322_v13, %v5028_v49 }
  0xf9   : > { %v1783_v40 = vadd.f32 %v1781_v11, %v1748_v63  ;;  %v1660_v27 = vadd.f32 %v1658_v54, %v1654_v42  ;;  %v3316_v25 = vrot.slane %v1694_v55, 9  ;;  %v1762_v52 = vmul.f32 %v5033_v61, %v5008_v14  ;;  %v3341_v11 = vld [vmem:[%s3971_s10 + $0x20] sm:$0x6]  ;;  %v3337_v63 = vld [vmem:[%s3971_s10 + $0x2c] sm:$0x3] }
  0xfa   : > { %v1606_v0 = vadd.f32 %v3303_v26, %v1594_v7  ;;  %v3346_v46 = vrot.slane %v1818_v22, 9  ;;  %v3358_v2 = vrot.slane %v1861_v57, 10  ;;  %v3318_v59 = vrot.slane %v1706_v39, 9  ;;  %v3355_v39 = vld [vmem:[%s3971_s10 + $0x20] sm:$0xc] }
  0xfb   : > { %v1788_v19 = vsub.f32 %v1783_v40, %v1786_v30  ;;  %v3360_v8 = vrot.slane %v1874_v35, 10  ;;  %v1704_v13 = vadd.f32 %v3316_v25, %v1660_v27  ;;  %v3328_v1 = vrot.slane %v1750_v4, 10  ;;  %v3343_v35 = vld [vmem:[%s3971_s10 + $0x2c] sm:$0x6] }
  0xfc   : > { %1630 = vrot.lane.b32.xlu1 %v1606_v0, %s3788_s11  ;;  %v3330_v23 = vrot.slane %v1762_v52, 10  ;;  %v1830_v14 = vmul.f32 %v3342_v20, %v5049_v58  ;;  %v5090_v32 = vmul.f32 %v3340_v36, %v5052_v60  ;;  %v5093_v33 = vmul.f32 %v3356_v48, %v5061_v9  ;;  %v3357_v52 = vld [vmem:[%s3971_s10 + $0x2c] sm:$0xc]  ;;  %s5156_s11 = sld [smem:[#allocation2 + $0x2e]] }
  0xfd   : > { %v1815_v3 = vadd.f32 %v3344_v24, %v1788_v19  ;;  %v1716_v28 = vadd.f32 %v3318_v59, %v1704_v13  ;;  %v1646_v26 = vmul.f32 %v4969_v6, %v5084_v29  ;;  %v1651_v47 = vmul.f32 %v3307_v34, %v5002_v31 }
  0xfe   : > { %v1790_v45 = vmul.f32 %v3336_v51, %v5042_v12  ;;  %v1794_v36 = vmul.f32 %v3334_v41, %v5045_v10  ;;  %v3348_v21 = vrot.slane %v1830_v14, 9  ;;  %v5105_v20 = vmul.f32 %v3354_v17, %v5065_v38 }
  0xff   : > { %v1828_v37 = vsub.f32 %v1815_v3, %v3346_v46  ;;  %v1760_v53 = vadd.f32 %v3328_v1, %v1716_v28  ;;  %v1653_v43 = vsub.f32 %v1646_v26, %v1651_v47  ;;  %v1670_v48 = vmul.f32 %v5005_v15, %v1665_v44 }
 0x100   : > { %v3350_v42 = vrot.slane %v5090_v32, 9  ;;  %v1683_v51 = vmul.f32 %v3311_v16, %v5020_v18  ;;  %v1726_v41 = vmul.f32 %v5028_v49, %v1721_v62  ;;  %v1739_v50 = vmul.f32 %v3323_v56, %v5033_v61 }
 0x101   : > { %v1871_v17 = vadd.f32 %v3358_v2, %v1828_v37  ;;  %v1772_v30 = vadd.f32 %v3330_v23, %v1760_v53  ;;  %v3362_v22 = vrot.slane %v5093_v33, 10  ;;  %v3313_v57 = vrot.slane %v1670_v48, 9  ;;  %v5172_v37 = vld [vmem:[%s3971_s10] sm:$0x33]  ;;  %v5175_v53 = vld [vmem:[%s3971_s10 + $0xc] sm:$0x33] }
 0x102   : > { %v3364_v54 = vrot.slane %v5105_v20, 10  ;;  %v3315_v55 = vrot.slane %v1683_v51, 9  ;;  %v1782_v7 = vmul.f32 %v5109_v5, %v5042_v12  ;;  %v5123_v24 = vmul.f32 %v3341_v11, %v5049_v58  ;;  %v5183_v51 = vld [vmem:[%s3971_s10] sm:$0x66] }
 0x103   : > { %v1884_v4 = vsub.f32 %v1871_v17, %v3360_v8  ;;  %v1792_v40 = vadd.f32 %v1790_v45, %v1772_v30  ;;  %v1680_v27 = vadd.f32 %v3313_v57, %v1653_v43  ;;  %v3325_v25 = vrot.slane %v1726_v41, 10  ;;  %v3372_v30 = vld [vmem:[%s3971_s10 + $0xc] sm:$0x66] }
 0x104   : > { %v3327_v0 = vrot.slane %v1739_v50, 10  ;;  %v5128_v46 = vmul.f32 %v3337_v63, %v5045_v10  ;;  %v5131_v2 = vmul.f32 %v3343_v35, %v5052_v60  ;;  %v1655_v59 = vmul.f32 %v3307_v34, %v4969_v6 }
 0x105   : > { %v1912_v19 = vcombine.high %v1884_v4, %v1884_v4  ;;  %1913 = vrot.lane.b32.xlu0 %v1884_v4, %s3789_s20  ;;  %v1796_v8 = vadd.f32 %v1794_v36, %v1792_v40  ;;  %v1693_v13 = vsub.f32 %v1680_v27, %v3315_v55  ;;  %v5138_v1 = vmul.f32 %v3355_v39, %v5061_v9 }
 0x106   : > { %v3345_v23 = vrot.slane %v5123_v24, 9  ;;  %v5142_v14 = vmul.f32 %v3357_v52, %v5065_v38  ;;  %v1659_v32 = vmul.f32 %v5002_v31, %v5084_v29  ;;  %v1695_v6 = vmul.f32 %v3311_v16, %v5005_v15 }
 0x107   : > { %1915 = vrot.lane.b32.xlu1 %v1912_v19, %s3789_s20  ;;  %v1840_v34 = vadd.f32 %v3348_v21, %v1796_v8  ;;  %v1736_v33 = vadd.f32 %v3325_v25, %v1693_v13  ;;  %v1707_v3 = vmul.f32 %v5020_v18, %v1665_v44  ;;  %v1751_v28 = vmul.f32 %v3323_v56, %v5028_v49 }
 0x108   : > { %v3347_v26 = vrot.slane %v5131_v2, 9  ;;  %v1661_v47 = vadd.f32 %v1659_v32, %v1655_v59  ;;  %v3317_v45 = vrot.slane %v1695_v6, 9  ;;  %v1763_v31 = vmul.f32 %v5033_v61, %v1721_v62  ;;  %v5245_v32 = vld [vmem:[%s3971_s10 + $0x18] sm:$0x33] }
 0x109   : > { %v1852_v15 = vadd.f32 %v3350_v42, %v1840_v34  ;;  %v1749_v29 = vsub.f32 %v1736_v33, %v3327_v0  ;;  %v3359_v18 = vrot.slane %v5138_v1, 10  ;;  %v3319_v49 = vrot.slane %v1707_v3, 9  ;;  %v3402_v6 = vld [vmem:[%s3971_s10 + $0x18] sm:$0x66]  ;;  %v3398_v33 = vld [vmem:[%s3971_s10 + $0x24] sm:$0x33] }
 0x10a   : > { %v3361_v44 = vrot.slane %v5142_v14, 10  ;;  %v1705_v16 = vadd.f32 %v3317_v45, %v1661_v47  ;;  %v3329_v56 = vrot.slane %v1751_v28, 10  ;;  %v5163_v36 = vmul.f32 %v3343_v35, %v5049_v58 }
 0x10b   : > { %v1896_v61 = vadd.f32 %v3362_v22, %v1852_v15  ;;  %v1784_v62 = vadd.f32 %v1782_v7, %v1749_v29  ;;  %v1791_v21 = vmul.f32 %v3337_v63, %v5042_v12  ;;  %v5169_v20 = vmul.f32 %v3341_v11, %v5052_v60  ;;  %v5208_v22 = vld [vmem:[%s3971_s10] sm:$0xcc]  ;;  %v3384_v7 = vld [vmem:[%s3971_s10 + $0xc] sm:$0xcc] }
 0x10c   : > { %v1717_v43 = vadd.f32 %v3319_v49, %v1705_v16  ;;  %v3331_v48 = vrot.slane %v1763_v31, 10  ;;  %v1795_v58 = vmul.f32 %v5109_v5, %v5045_v10  ;;  %v5180_v42 = vstv %s5134_s29  ;;  %v3404_v15 = vld [vmem:[%s3971_s10 + $0x24] sm:$0x66]  ;;  %s5354_s29 = sld [smem:[#allocation2 + $0x16]] }
 0x10d   : > { %v5187_v12 = vadd.f32 %v3364_v54, %v1896_v61  ;;  %v1789_v60 = vsub.f32 %v1784_v62, %v5128_v46  ;;  %v3349_v11 = vrot.slane %v5163_v36, 9  ;;  %v5192_v41 = vmul.f32 %v3357_v52, %v5061_v9  ;;  %v3418_v16 = vld [vmem:[%s3971_s10 + $0x24] sm:$0xcc] }
 0x10e   : > { %v1761_v10 = vadd.f32 %v3329_v56, %v1717_v43  ;;  %v5199_v5 = vmul.f32 %v3355_v39, %v5065_v38  ;;  %v1952_v50 = vmul.f32 %v5180_v42, %v5172_v37  ;;  %v5204_v17 = vstv %s5147_s22  ;;  %s5363_s22 = sld [smem:[#allocation2 + $0x17]] }
 0x10f   : > { %1931 = vrot.lane.b32.xlu1 %v5187_v12, %s3789_s20  ;;  %v1816_v9 = vadd.f32 %v3345_v23, %v1789_v60  ;;  %v3351_v57 = vrot.slane %v5169_v20, 9  ;;  %v1957_v38 = vmul.f32 %v5175_v53, %v5204_v17  ;;  %v5218_v63 = vstv %s5152_s28  ;;  %s5367_s28 = sld [smem:[#allocation2 + $0x32]] }
 0x110   : > { %v1773_v35 = vadd.f32 %v3331_v48, %v1761_v10  ;;  %v1976_v54 = vmul.f32 %v5218_v63, %v5183_v51  ;;  %v5227_v55 = vstv %s5156_s11  ;;  %v5231_v24 = vstv %s5158_s27  ;;  %s5388_s11 = sld [smem:[#allocation2 + $0x4b]]  ;;  %s5397_s27 = sld [smem:[#allocation2 + $0x66]] }
 0x111   : > { %v1829_v39 = vsub.f32 %v1816_v9, %v3347_v26  ;;  %v1959_v4 = vsub.f32 %v1952_v50, %v1957_v38  ;;  %v1989_v40 = vmul.f32 %v3372_v30, %v5227_v55  ;;  %v2032_v27 = vmul.f32 %v5231_v24, %v5208_v22 }
 0x112   : > { %v1793_v25 = vadd.f32 %v1791_v21, %v1773_v35  ;;  %v3363_v52 = vrot.slane %v5192_v41, 10  ;;  %v3374_v0 = vrot.slane %v1976_v54, 9  ;;  %v5238_v46 = vstv %s5165_s23  ;;  %v5290_v35 = vld [vmem:[%s3971_s10 + $0x8] sm:$0x3]  ;;  %s5399_s23 = sld [smem:[#allocation2 + $0x4c]] }
 0x113   : > { %v1872_v2 = vadd.f32 %v3359_v18, %v1829_v39  ;;  %v3365_v59 = vrot.slane %v5199_v5, 10  ;;  %v3376_v19 = vrot.slane %v1989_v40, 9  ;;  %v2045_v8 = vmul.f32 %v3384_v7, %v5238_v46  ;;  %v3416_v18 = vld [vmem:[%s3971_s10 + $0x18] sm:$0xcc]  ;;  %v3369_v40 = vld [vmem:[%s3971_s10 + $0x14] sm:$0x3] }
 0x114   : > { %v1797_v13 = vadd.f32 %v1795_v58, %v1793_v25  ;;  %v1930_v1 = vcombine.high %v5187_v12, %v5187_v12  ;;  %v1986_v23 = vadd.f32 %v3374_v0, %v1959_v4  ;;  %v3386_v14 = vrot.slane %v2032_v27, 10  ;;  %v1972_v0 = vld [vmem:[%s3971_s10 + $0x8] sm:$0x6] }
 0x115   : > { %v1885_v34 = vsub.f32 %v1872_v2, %v3361_v44  ;;  %v5250_v3 = vstv %s5185_s5  ;;  %v5253_v28 = vstv %s5194_s6  ;;  %v5256_v26 = vstv %s5196_s7  ;;  %s5410_s5 = sld [smem:[#allocation2 + $0x67]]  ;;  %s5412_s6 = sld [smem:[#allocation2 + $0x4d]] }
 0x116   : > { %v1841_v47 = vadd.f32 %v3349_v11, %v1797_v13  ;;  %v1999_v45 = vsub.f32 %v1986_v23, %v3376_v19  ;;  %v3388_v31 = vrot.slane %v2045_v8, 10  ;;  %v5260_v29 = vstv %s5210_s8  ;;  %v3373_v8 = vld [vmem:[%s3971_s10 + $0x14] sm:$0x6]  ;;  %v2028_v13 = vld [vmem:[%s3971_s10 + $0x8] sm:$0xc]  ;;  %s5432_s7 = sld [smem:[#allocation2 + $0x68]] }
 0x117   : > { %1917 = vrot.lane.b32.xlu0 %v1885_v34, %s3789_s20  ;;  %v2112_v49 = vmul.f32 %v3402_v6, %v5256_v26  ;;  %v5267_v44 = vstv %s5220_s9  ;;  %v5270_v56 = vstv %s5222_s26  ;;  %v1961_v36 = vmul.f32 %v5175_v53, %v5180_v42  ;;  %s5545_s8 = sld [smem:[#allocation2 + $0x18]]  ;;  %s3791_s9 = smov 95  }
 0x118   : > { %v1853_v61 = vadd.f32 %v3351_v57, %v1841_v47  ;;  %v2042_v62 = vadd.f32 %v3386_v14, %v1999_v45  ;;  %v2088_v21 = vmul.f32 %v5245_v32, %v5250_v3  ;;  %v2093_v20 = vmul.f32 %v3398_v33, %v5253_v28  ;;  %s5557_s26 = sld [smem:[#allocation2 + $0x33]] }
 0x119   : > { %v2125_v43 = vmul.f32 %v3404_v15, %v5260_v29  ;;  %v2168_v48 = vmul.f32 %v3416_v18, %v5267_v44  ;;  %v1965_v58 = vmul.f32 %v5204_v17, %v5172_v37  ;;  %v2001_v12 = vmul.f32 %v3372_v30, %v5218_v63 }
 0x11a   : > { %v1897_v60 = vadd.f32 %v3363_v52, %v1853_v61  ;;  %v2055_v11 = vsub.f32 %v2042_v62, %v3388_v31  ;;  %v2181_v53 = vmul.f32 %v3418_v16, %v5270_v56  ;;  %v2013_v41 = vmul.f32 %v5227_v55, %v5183_v51  ;;  %v3403_v61 = vld [vmem:[%s3971_s10 + $0x20] sm:$0x6] }
 0x11b   : > { %1933 = vrot.lane.b32.xlu0 %v1930_v1, %s3789_s20  ;;  %v3406_v10 = vrot.slane %v2112_v49, 9  ;;  %v1967_v5 = vadd.f32 %v1965_v58, %v1961_v36  ;;  %v3378_v50 = vrot.slane %v2001_v12, 9  ;;  %v2057_v9 = vmul.f32 %v3384_v7, %v5231_v24 }
 0x11c   : > { %v1909_v57 = vadd.f32 %v3365_v59, %v1897_v60  ;;  %v2090_v37 = vadd.f32 %v2088_v21, %v2055_v11  ;;  %v3380_v38 = vrot.slane %v2013_v41, 9  ;;  %v2069_v30 = vmul.f32 %v5238_v46, %v5208_v22 }
 0x11d   : > { %v3408_v54 = vrot.slane %v2125_v43, 9  ;;  %v3420_v51 = vrot.slane %v2168_v48, 10  ;;  %v2011_v39 = vadd.f32 %v3378_v50, %v1967_v5  ;;  %v3390_v4 = vrot.slane %v2057_v9, 10  ;;  %v3399_v43 = vld [vmem:[%s3971_s10 + $0x2c] sm:$0x3] }
 0x11e   : > { %1935 = vrot.lane.b32.xlu1 %v1909_v57, %s3789_s20  ;;  %v2095_v7 = vsub.f32 %v2090_v37, %v2093_v20  ;;  %v3422_v27 = vrot.slane %v2181_v53, 10  ;;  %v2097_v25 = vmul.f32 %v3398_v33, %v5250_v3  ;;  %v2137_v52 = vmul.f32 %v3404_v15, %v5256_v26  ;;  %v3385_v33 = vld [vmem:[%s3971_s10 + $0x14] sm:$0xc]  ;;  %v3405_v48 = vld [vmem:[%s3971_s10 + $0x2c] sm:$0x6]  ;;  %s5361_s20 = sld [smem:[#allocation2 + $0x31]] }
 0x11f   : > { %v2023_v22 = vadd.f32 %v3380_v38, %v2011_v39  ;;  %v3392_v2 = vrot.slane %v2069_v30, 10  ;;  %v5298_v59 = vmul.f32 %v3402_v6, %v5260_v29  ;;  %v1953_v19 = vmul.f32 %v5180_v42, %v5290_v35  ;;  %v3417_v50 = vld [vmem:[%s3971_s10 + $0x20] sm:$0xc]  ;;  %v3419_v9 = vld [vmem:[%s3971_s10 + $0x2c] sm:$0xc] }
 0x120   : > { %v2122_v1 = vadd.f32 %v3406_v10, %v2095_v7  ;;  %v5305_v23 = vmul.f32 %v3418_v16, %v5267_v44  ;;  %v5308_v14 = vmul.f32 %v3416_v18, %v5270_v56  ;;  %v1958_v34 = vmul.f32 %v3369_v40, %v5204_v17  ;;  %v5318_v18 = vld [vmem:[%s3971_s10 + $0x20] sm:$0x3] }
 0x121   : > { %v2067_v6 = vadd.f32 %v3390_v4, %v2023_v22  ;;  %v2101_v47 = vmul.f32 %v5245_v32, %v5253_v28  ;;  %v3410_v45 = vrot.slane %v2137_v52, 9  ;;  %v1977_v31 = vmul.f32 %v5218_v63, %v1972_v0 }
 0x122   : > { %v2135_v15 = vsub.f32 %v2122_v1, %v3408_v54  ;;  %v1960_v49 = vsub.f32 %v1953_v19, %v1958_v34  ;;  %v1990_v16 = vmul.f32 %v3373_v8, %v5227_v55  ;;  %v2033_v36 = vmul.f32 %v5231_v24, %v2028_v13 }
 0x123   : > { %v2079_v62 = vadd.f32 %v3392_v2, %v2067_v6  ;;  %v3412_v21 = vrot.slane %v5298_v59, 9  ;;  %v3375_v20 = vrot.slane %v1977_v31, 9  ;;  %v2046_v32 = vmul.f32 %v3385_v33, %v5238_v46  ;;  %v5373_v6 = vld [vmem:[%s3971_s10] sm:$0x33] }
 0x124   : > { %v2178_v58 = vadd.f32 %v3420_v51, %v2135_v15  ;;  %v3424_v12 = vrot.slane %v5305_v23, 10  ;;  %v3426_v60 = vrot.slane %v5308_v14, 10  ;;  %v3377_v11 = vrot.slane %v1990_v16, 9  ;;  %v5386_v16 = vld [vmem:[%s3971_s10] sm:$0x66] }
 0x125   : > { %v2099_v53 = vadd.f32 %v2097_v25, %v2079_v62  ;;  %v1987_v41 = vadd.f32 %v3375_v20, %v1960_v49  ;;  %v3387_v10 = vrot.slane %v2033_v36, 10  ;;  %v5328_v5 = vmul.f32 %v3403_v61, %v5256_v26  ;;  %v5395_v20 = vld [vmem:[%s3971_s10 + $0xc] sm:$0x66] }
 0x126   : > { %v2191_v57 = vsub.f32 %v2178_v58, %v3422_v27  ;;  %v2089_v37 = vmul.f32 %v5318_v18, %v5250_v3  ;;  %v2094_v38 = vmul.f32 %v3399_v43, %v5253_v28  ;;  %v5336_v30 = vmul.f32 %v3405_v48, %v5260_v29 }
 0x127   : > { %v2103_v54 = vadd.f32 %v2101_v47, %v2099_v53  ;;  %v2000_v51 = vsub.f32 %v1987_v41, %v3377_v11  ;;  %v3389_v39 = vrot.slane %v2046_v32, 10  ;;  %v1962_v4 = vmul.f32 %v3369_v40, %v5180_v42  ;;  %v5376_v47 = vld [vmem:[%s3971_s10 + $0xc] sm:$0x33] }
 0x128   : > { %v2219_v7 = vcombine.high %v2191_v57, %v2191_v57  ;;  %2220 = vrot.lane.b32.xlu0 %v2191_v57, %s3790_s17  ;;  %v3407_v27 = vrot.slane %v5328_v5, 9  ;;  %v5344_v25 = vmul.f32 %v3417_v50, %v5267_v44  ;;  %v5347_v52 = vmul.f32 %v3419_v9, %v5270_v56  ;;  %v3446_v5 = vld [vmem:[%s3971_s10 + $0xc] sm:$0xcc] }
 0x129   : > { %v2147_v22 = vadd.f32 %v3410_v45, %v2103_v54  ;;  %v2043_v2 = vadd.f32 %v3387_v10, %v2000_v51  ;;  %v1966_v59 = vmul.f32 %v5204_v17, %v5290_v35  ;;  %v2002_v19 = vmul.f32 %v3373_v8, %v5218_v63 }
 0x12a   : > { %2222 = vrot.lane.b32.xlu1 %v2219_v7, %s3790_s17  ;;  %v3409_v42 = vrot.slane %v5336_v30, 9  ;;  %v2014_v40 = vmul.f32 %v5227_v55, %v1972_v0  ;;  %v2058_v1 = vmul.f32 %v3385_v33, %v5231_v24  ;;  %v2070_v23 = vmul.f32 %v5238_v46, %v2028_v13 }
 0x12b   : > { %v2159_v17 = vadd.f32 %v3412_v21, %v2147_v22  ;;  %v2056_v63 = vsub.f32 %v2043_v2, %v3389_v39  ;;  %v1968_v35 = vadd.f32 %v1966_v59, %v1962_v4  ;;  %v3379_v8 = vrot.slane %v2002_v19, 9 }
 0x12c   : > { %v3421_v14 = vrot.slane %v5344_v25, 10  ;;  %v3423_v55 = vrot.slane %v5347_v52, 10  ;;  %v3381_v0 = vrot.slane %v2014_v40, 9  ;;  %v3391_v24 = vrot.slane %v2058_v1, 10  ;;  %v3464_v52 = vld [vmem:[%s3971_s10 + $0x18] sm:$0x66] }
 0x12d   : > { %v2203_v46 = vadd.f32 %v3424_v12, %v2159_v17  ;;  %v2091_v13 = vadd.f32 %v2089_v37, %v2056_v63  ;;  %v2012_v34 = vadd.f32 %v3379_v8, %v1968_v35  ;;  %v5370_v33 = vmul.f32 %v3405_v48, %v5256_v26  ;;  %v3478_v40 = vld [vmem:[%s3971_s10 + $0x18] sm:$0xcc] }
 0x12e   : > { %v3393_v45 = vrot.slane %v2070_v23, 10  ;;  %v2098_v31 = vmul.f32 %v3399_v43, %v5250_v3  ;;  %v5380_v15 = vmul.f32 %v3403_v61, %v5260_v29  ;;  %v5383_v49 = vstv %s5338_s4  ;;  %s5561_s4 = sld [smem:[#allocation2 + $0x19]] }
 0x12f   : > { %v5390_v36 = vadd.f32 %v3426_v60, %v2203_v46  ;;  %v2096_v26 = vsub.f32 %v2091_v13, %v2094_v38  ;;  %v2024_v62 = vadd.f32 %v3381_v0, %v2012_v34  ;;  %v2102_v21 = vmul.f32 %v5318_v18, %v5253_v28 }
 0x130   : > { %v3411_v3 = vrot.slane %v5370_v33, 9  ;;  %v5403_v29 = vmul.f32 %v3419_v9, %v5267_v44  ;;  %v5406_v61 = vmul.f32 %v3417_v50, %v5270_v56  ;;  %v2259_v28 = vmul.f32 %v5383_v49, %v5373_v6  ;;  %v2334_v56 = vld [vmem:[%s3971_s10] sm:$0xcc] }
 0x131   : > { %2238 = vrot.lane.b32.xlu1 %v5390_v36, %s3790_s17  ;;  %v2123_v18 = vadd.f32 %v3407_v27, %v2096_v26  ;;  %v2068_v32 = vadd.f32 %v3391_v24, %v2024_v62  ;;  %v3413_v43 = vrot.slane %v5380_v15, 9  ;;  %v5418_v44 = vstv %s5352_s30  ;;  %v5449_v27 = vld [vmem:[%s3971_s10 + $0x18] sm:$0x33]  ;;  %v3480_v24 = vld [vmem:[%s3971_s10 + $0x24] sm:$0xcc]  ;;  %s5568_s30 = sld [smem:[#allocation2 + $0x1a]] }
 0x132   : > { %v2264_v48 = vmul.f32 %v5376_v47, %v5418_v44  ;;  %v5424_v58 = vstv %s5354_s29  ;;  %v5427_v12 = vstv %s5361_s20  ;;  %v5430_v60 = vstv %s5363_s22  ;;  %s5575_s29 = sld [smem:[#allocation2 + $0x35]]  ;;  %s5595_s20 = sld [smem:[#allocation2 + $0x4e]] }
 0x133   : > { %v2136_v11 = vsub.f32 %v2123_v18, %v3409_v42  ;;  %v2080_v53 = vadd.f32 %v3393_v45, %v2068_v32  ;;  %v2283_v41 = vmul.f32 %v5424_v58, %v5386_v16  ;;  %v2296_v10 = vmul.f32 %v5395_v20, %v5427_v12  ;;  %v3466_v42 = vld [vmem:[%s3971_s10 + $0x24] sm:$0x66]  ;;  %s5604_s22 = sld [smem:[#allocation2 + $0x69]] }
 0x134   : > { %v3425_v50 = vrot.slane %v5403_v29, 10  ;;  %v2266_v9 = vsub.f32 %v2259_v28, %v2264_v48  ;;  %v2339_v57 = vmul.f32 %v5430_v60, %v2334_v56  ;;  %v5442_v37 = vstv %s5367_s28  ;;  %s5606_s28 = sld [smem:[#allocation2 + $0x4f]] }
 0x135   : > { %v2179_v38 = vadd.f32 %v3421_v14, %v2136_v11  ;;  %v2100_v30 = vadd.f32 %v2098_v31, %v2080_v53  ;;  %v3436_v54 = vrot.slane %v2283_v41, 9  ;;  %v3438_v51 = vrot.slane %v2296_v10, 9  ;;  %v2255_v41 = vld [vmem:[%s3971_s10 + $0x8] sm:$0x3]  ;;  %v3431_v10 = vld [vmem:[%s3971_s10 + $0x14] sm:$0x3] }
 0x136   : > { %v3427_v39 = vrot.slane %v5406_v61, 10  ;;  %v2237_v4 = vcombine.high %v5390_v36, %v5390_v36  ;;  %v2352_v7 = vmul.f32 %v3446_v5, %v5442_v37  ;;  %v5452_v25 = vstv %s5388_s11  ;;  %s5620_s11 = sld [smem:[#allocation2 + $0x6a]] }
 0x137   : > { %v2192_v22 = vsub.f32 %v2179_v38, %v3423_v55  ;;  %v2104_v2 = vadd.f32 %v2102_v21, %v2100_v30  ;;  %v2293_v59 = vadd.f32 %v3436_v54, %v2266_v9  ;;  %v3448_v19 = vrot.slane %v2339_v57, 10  ;;  %v3460_v55 = vld [vmem:[%s3971_s10 + $0x24] sm:$0x33] }
 0x138   : > { %v5458_v1 = vstv %s5397_s27  ;;  %v5461_v23 = vstv %s5399_s23  ;;  %v5464_v17 = vstv %s5410_s5  ;;  %v5467_v63 = vstv %s5412_s6  ;;  %s5630_s27 = sld [smem:[#allocation2 + $0x50]]  ;;  %s5632_s23 = sld [smem:[#allocation2 + $0x6b]] }
 0x139   : > { %2224 = vrot.lane.b32.xlu0 %v2192_v22, %s3790_s17  ;;  %v2148_v35 = vadd.f32 %v3411_v3, %v2104_v2  ;;  %v2306_v8 = vsub.f32 %v2293_v59, %v3438_v51  ;;  %v3450_v14 = vrot.slane %v2352_v7, 10  ;;  %v2419_v0 = vmul.f32 %v3464_v52, %v5461_v23  ;;  %v2279_v54 = vld [vmem:[%s3971_s10 + $0x8] sm:$0x6]  ;;  %v3435_v51 = vld [vmem:[%s3971_s10 + $0x14] sm:$0x6]  ;;  %s3792_s5 = smov 94  }
 0x13a   : > { %v2432_v46 = vmul.f32 %v3466_v42, %v5464_v17  ;;  %v5475_v13 = vstv %s5432_s7  ;;  %v2268_v34 = vmul.f32 %v5376_v47, %v5383_v49  ;;  %v2272_v33 = vmul.f32 %v5418_v44, %v5373_v6  ;;  %v2335_v2 = vld [vmem:[%s3971_s10 + $0x8] sm:$0xc]  ;;  %v3447_v59 = vld [vmem:[%s3971_s10 + $0x14] sm:$0xc]  ;;  %s253_s6 = sld [smem:[#allocation2]]  ;;  %s3020_s7 = sld [smem:[#allocation2 + $0x1b]] }
 0x13b   : > { %v2160_v45 = vadd.f32 %v3413_v43, %v2148_v35  ;;  %v2349_v31 = vadd.f32 %v3448_v19, %v2306_v8  ;;  %v2395_v15 = vmul.f32 %v5449_v27, %v5452_v25  ;;  %v2475_v36 = vmul.f32 %v3478_v40, %v5467_v63 }
 0x13c   : > { %v2400_v26 = vmul.f32 %v3460_v55, %v5458_v1  ;;  %v5486_v62 = vmul.f32 %v3480_v24, %v5475_v13  ;;  %v2274_v21 = vadd.f32 %v2272_v33, %v2268_v34  ;;  %v2308_v47 = vmul.f32 %v5395_v20, %v5424_v58 }
 0x13d   : > { %v2204_v3 = vadd.f32 %v3425_v50, %v2160_v45  ;;  %2240 = vrot.lane.b32.xlu0 %v2237_v4, %s3790_s17  ;;  %v2362_v6 = vsub.f32 %v2349_v31, %v3450_v14  ;;  %v2320_v29 = vmul.f32 %v5427_v12, %v5386_v16  ;;  %v2364_v61 = vmul.f32 %v3446_v5, %v5430_v60 }
 0x13e   : > { %v3468_v28 = vrot.slane %v2419_v0, 9  ;;  %v3470_v18 = vrot.slane %v2432_v46, 9  ;;  %v3440_v32 = vrot.slane %v2308_v47, 9  ;;  %v2376_v43 = vmul.f32 %v5442_v37, %v2334_v56  ;;  %v3465_v46 = vld [vmem:[%s3971_s10 + $0x20] sm:$0x6] }
 0x13f   : > { %v2216_v48 = vadd.f32 %v3427_v39, %v2204_v3  ;;  %v2397_v11 = vadd.f32 %v2395_v15, %v2362_v6  ;;  %v3482_v53 = vrot.slane %v2475_v36, 10  ;;  %v3442_v20 = vrot.slane %v2320_v29, 9  ;;  %v3479_v29 = vld [vmem:[%s3971_s10 + $0x20] sm:$0xc] }
 0x140   : > { %v3484_v50 = vrot.slane %v5486_v62, 10  ;;  %v2318_v16 = vadd.f32 %v3440_v32, %v2274_v21  ;;  %v3452_v9 = vrot.slane %v2364_v61, 10  ;;  %v2444_v5 = vmul.f32 %v3466_v42, %v5461_v23  ;;  %v3467_v62 = vld [vmem:[%s3971_s10 + $0x2c] sm:$0x6] }
 0x141   : > { %2242 = vrot.lane.b32.xlu1 %v2216_v48, %s3790_s17  ;;  %v2402_v57 = vsub.f32 %v2397_v11, %v2400_v26  ;;  %v3454_v56 = vrot.slane %v2376_v43, 10  ;;  %v2404_v38 = vmul.f32 %v3460_v55, %v5452_v25  ;;  %v5502_v30 = vmul.f32 %v3464_v52, %v5464_v17  ;;  %v3481_v43 = vld [vmem:[%s3971_s10 + $0x2c] sm:$0xc]  ;;  %s5566_s17 = sld [smem:[#allocation2 + $0x34]] }
 0x142   : > { %v2330_v39 = vadd.f32 %v3442_v20, %v2318_v16  ;;  %v5507_v4 = vmul.f32 %v3480_v24, %v5467_v63  ;;  %v2260_v7 = vmul.f32 %v5383_v49, %v2255_v41  ;;  %v2265_v22 = vmul.f32 %v3431_v10, %v5418_v44  ;;  %v5521_v24 = vld [vmem:[%s3971_s10 + $0x20] sm:$0x3] }
 0x143   : > { %v2429_v19 = vadd.f32 %v3468_v28, %v2402_v57  ;;  %v2408_v52 = vmul.f32 %v5449_v27, %v5458_v1  ;;  %v3472_v42 = vrot.slane %v2444_v5, 9  ;;  %v5516_v35 = vmul.f32 %v3478_v40, %v5475_v13  ;;  %v3461_v40 = vld [vmem:[%s3971_s10 + $0x2c] sm:$0x3] }
 0x144   : > { %v2374_v8 = vadd.f32 %v3452_v9, %v2330_v39  ;;  %v2267_v14 = vsub.f32 %v2260_v7, %v2265_v22  ;;  %v2284_v55 = vmul.f32 %v5424_v58, %v2279_v54  ;;  %v2297_v0 = vmul.f32 %v3435_v51, %v5427_v12 }
 0x145   : > { %v2442_v34 = vsub.f32 %v2429_v19, %v3470_v18  ;;  %v3474_v33 = vrot.slane %v5502_v30, 9  ;;  %v2340_v27 = vmul.f32 %v5430_v60, %v2335_v2  ;;  %v2353_v45 = vmul.f32 %v3447_v59, %v5442_v37 }
 0x146   : > { %v2386_v31 = vadd.f32 %v3454_v56, %v2374_v8  ;;  %v3486_v15 = vrot.slane %v5507_v4, 10  ;;  %v3437_v36 = vrot.slane %v2284_v55, 9  ;;  %v3439_v26 = vrot.slane %v2297_v0, 9  ;;  %v5582_v8 = vld [vmem:[%s3971_s10] sm:$0x33] }
 0x147   : > { %v2485_v21 = vadd.f32 %v3482_v53, %v2442_v34  ;;  %v3488_v47 = vrot.slane %v5516_v35, 10  ;;  %v2396_v3 = vmul.f32 %v5521_v24, %v5452_v25  ;;  %v5534_v6 = vmul.f32 %v3465_v46, %v5461_v23 }
 0x148   : > { %v2406_v61 = vadd.f32 %v2404_v38, %v2386_v31  ;;  %v2294_v28 = vadd.f32 %v3437_v36, %v2267_v14  ;;  %v3449_v18 = vrot.slane %v2340_v27, 10  ;;  %v5538_v32 = vmul.f32 %v3461_v40, %v5458_v1  ;;  %v5585_v14 = vld [vmem:[%s3971_s10 + $0xc] sm:$0x33] }
 0x149   : > { %v2498_v48 = vsub.f32 %v2485_v21, %v3484_v50  ;;  %v3451_v11 = vrot.slane %v2353_v45, 10  ;;  %v5542_v53 = vmul.f32 %v3467_v62, %v5464_v17  ;;  %v2269_v20 = vmul.f32 %v3431_v10, %v5383_v49  ;;  %v3496_v31 = vld [vmem:[%s3971_s10 + $0xc] sm:$0x66] }
 0x14a   : > { %v2410_v16 = vadd.f32 %v2408_v52, %v2406_v61  ;;  %v2307_v9 = vsub.f32 %v2294_v28, %v3439_v26  ;;  %v3469_v5 = vrot.slane %v5534_v6, 9  ;;  %v5549_v57 = vmul.f32 %v3479_v29, %v5467_v63 }
 0x14b   : > { %v2526_v56 = vcombine.high %v2498_v48, %v2498_v48  ;;  %2527 = vrot.lane.b32.xlu0 %v2498_v48, %s3791_s9  ;;  %v5553_v50 = vmul.f32 %v3481_v43, %v5475_v13  ;;  %v2273_v38 = vmul.f32 %v5418_v44, %v2255_v41  ;;  %v2309_v49 = vmul.f32 %v3435_v51, %v5424_v58 }
 0x14c   : > { %v2454_v10 = vadd.f32 %v3472_v42, %v2410_v16  ;;  %v2350_v30 = vadd.f32 %v3449_v18, %v2307_v9  ;;  %v2321_v39 = vmul.f32 %v5427_v12, %v2279_v54  ;;  %v2365_v4 = vmul.f32 %v3447_v59, %v5430_v60 }
 0x14d   : > { %2529 = vrot.lane.b32.xlu1 %v2526_v56, %s3791_s9  ;;  %v3471_v7 = vrot.slane %v5542_v53, 9  ;;  %v2275_v22 = vadd.f32 %v2273_v38, %v2269_v20  ;;  %v3441_v19 = vrot.slane %v2309_v49, 9  ;;  %v2377_v44 = vmul.f32 %v5442_v37, %v2335_v2  ;;  %v5655_v38 = vld [vmem:[%s3971_s10 + $0x18] sm:$0x33] }
 0x14e   : > { %v2466_v58 = vadd.f32 %v3474_v33, %v2454_v10  ;;  %v2363_v12 = vsub.f32 %v2350_v30, %v3451_v11  ;;  %v3483_v60 = vrot.slane %v5549_v57, 10  ;;  %v3443_v41 = vrot.slane %v2321_v39, 9  ;;  %v5593_v33 = vld [vmem:[%s3971_s10] sm:$0x66]  ;;  %v3526_v49 = vld [vmem:[%s3971_s10 + $0x18] sm:$0x66] }
 0x14f   : > { %v3485_v54 = vrot.slane %v5553_v50, 10  ;;  %v2319_v51 = vadd.f32 %v3441_v19, %v2275_v22  ;;  %v3453_v59 = vrot.slane %v2365_v4, 10  ;;  %v5573_v52 = vmul.f32 %v3467_v62, %v5461_v23  ;;  %v3522_v30 = vld [vmem:[%s3971_s10 + $0x24] sm:$0x33] }
 0x150   : > { %v2510_v37 = vadd.f32 %v3486_v15, %v2466_v58  ;;  %v2398_v2 = vadd.f32 %v2396_v3, %v2363_v12  ;;  %v2405_v42 = vmul.f32 %v3461_v40, %v5452_v25  ;;  %v5579_v35 = vmul.f32 %v3465_v46, %v5464_v17  ;;  %v5618_v15 = vld [vmem:[%s3971_s10] sm:$0xcc]  ;;  %v3508_v3 = vld [vmem:[%s3971_s10 + $0xc] sm:$0xcc] }
 0x151   : > { %v2331_v55 = vadd.f32 %v3443_v41, %v2319_v51  ;;  %v3455_v0 = vrot.slane %v2377_v44, 10  ;;  %v2409_v23 = vmul.f32 %v5521_v24, %v5458_v1  ;;  %v5590_v34 = vstv %s5545_s8  ;;  %v3528_v58 = vld [vmem:[%s3971_s10 + $0x24] sm:$0x66]  ;;  %s3022_s8 = sld [smem:[#allocation2 + $0x1]] }
 0x152   : > { %v5597_v25 = vadd.f32 %v3488_v47, %v2510_v37  ;;  %v2403_v17 = vsub.f32 %v2398_v2, %v5538_v32  ;;  %v3473_v46 = vrot.slane %v5573_v52, 9  ;;  %v5602_v27 = vmul.f32 %v3481_v43, %v5467_v63  ;;  %v3542_v51 = vld [vmem:[%s3971_s10 + $0x24] sm:$0xcc] }
 0x153   : > { %v2375_v1 = vadd.f32 %v3453_v59, %v2331_v55  ;;  %v5609_v24 = vmul.f32 %v3479_v29, %v5475_v13  ;;  %v2562_v45 = vmul.f32 %v5590_v34, %v5582_v8  ;;  %v5614_v40 = vstv %s5557_s26  ;;  %s5805_s26 = sld [smem:[#allocation2 + $0x2]] }
 0x154   : > { %2543 = vrot.lane.b32.xlu1 %v5597_v25, %s3791_s9  ;;  %v2430_v63 = vadd.f32 %v3469_v5, %v2403_v17  ;;  %v3475_v36 = vrot.slane %v5579_v35, 9  ;;  %v2567_v13 = vmul.f32 %v5585_v14, %v5614_v40  ;;  %v5628_v26 = vstv %s5561_s4  ;;  %s5813_s4 = sld [smem:[#allocation2 + $0x1d]] }
 0x155   : > { %v2387_v62 = vadd.f32 %v3455_v0, %v2375_v1  ;;  %v2586_v21 = vmul.f32 %v5628_v26, %v5593_v33  ;;  %v5637_v47 = vstv %s5566_s17  ;;  %v5641_v6 = vstv %s5568_s30  ;;  %s5823_s17 = sld [smem:[#allocation2 + $0x36]]  ;;  %s5829_s30 = sld [smem:[#allocation2 + $0x51]] }
 0x156   : > { %v2443_v29 = vsub.f32 %v2430_v63, %v3471_v7  ;;  %v2569_v61 = vsub.f32 %v2562_v45, %v2567_v13  ;;  %v2599_v28 = vmul.f32 %v3496_v31, %v5637_v47  ;;  %v2642_v18 = vmul.f32 %v5641_v6, %v5618_v15 }
 0x157   : > { %v2407_v32 = vadd.f32 %v2405_v42, %v2387_v62  ;;  %v3487_v43 = vrot.slane %v5602_v27, 10  ;;  %v3498_v48 = vrot.slane %v2586_v21, 9  ;;  %v5648_v11 = vstv %s5575_s29  ;;  %v2558_v62 = vld [vmem:[%s3971_s10 + $0x8] sm:$0x3]  ;;  %s5831_s29 = sld [smem:[#allocation2 + $0x37]] }
 0x158   : > { %v2486_v53 = vadd.f32 %v3483_v60, %v2443_v29  ;;  %v3489_v20 = vrot.slane %v5609_v24, 10  ;;  %v3500_v16 = vrot.slane %v2599_v28, 9  ;;  %v2655_v9 = vmul.f32 %v3508_v3, %v5648_v11  ;;  %v3540_v60 = vld [vmem:[%s3971_s10 + $0x18] sm:$0xcc] }
 0x159   : > { %v2411_v5 = vadd.f32 %v2409_v23, %v2407_v32  ;;  %v2542_v57 = vcombine.high %v5597_v25, %v5597_v25  ;;  %v2596_v56 = vadd.f32 %v3498_v48, %v2569_v61  ;;  %v3510_v50 = vrot.slane %v2642_v18, 10 }
 0x15a   : > { %v2499_v10 = vsub.f32 %v2486_v53, %v3485_v54  ;;  %v5660_v39 = vstv %s5595_s20  ;;  %v5663_v4 = vstv %s5604_s22  ;;  %v5666_v7 = vstv %s5606_s28  ;;  %s5839_s20 = sld [smem:[#allocation2 + $0x52]]  ;;  %s5845_s22 = sld [smem:[#allocation2 + $0x38]] }
 0x15b   : > { %v2455_v22 = vadd.f32 %v3473_v46, %v2411_v5  ;;  %v2609_v19 = vsub.f32 %v2596_v56, %v3500_v16  ;;  %v3512_v44 = vrot.slane %v2655_v9, 10  ;;  %v5670_v12 = vstv %s5620_s11  ;;  %v2638_v16 = vld [vmem:[%s3971_s10 + $0x8] sm:$0xc]  ;;  %s5853_s28 = sld [smem:[#allocation2 + $0x53]]  ;;  %s5989_s11 = sld [smem:[#allocation7 + $0x1]] }
 0x15c   : > { %2531 = vrot.lane.b32.xlu0 %v2499_v10, %s3791_s9  ;;  %v2722_v41 = vmul.f32 %v3526_v49, %v5666_v7  ;;  %v5677_v54 = vstv %s5630_s27  ;;  %v5680_v59 = vstv %s5632_s23  ;;  %v2571_v52 = vmul.f32 %v5585_v14, %v5590_v34  ;;  %s3015_s27 = sshll.u32 %s3967_s19, 3 }
 0x15d   : > { %v2467_v37 = vadd.f32 %v3475_v36, %v2455_v22  ;;  %v2652_v2 = vadd.f32 %v3510_v50, %v2609_v19  ;;  %v2698_v42 = vmul.f32 %v5655_v38, %v5660_v39  ;;  %v2703_v35 = vmul.f32 %v3522_v30, %v5663_v4  ;;  %v3509_v50 = vld [vmem:[%s3971_s10 + $0x14] sm:$0xc]  ;;  %s213_s23 = scalar_lea.vmem [#allocation9], %s3015_s27 }
 0x15e   : > { %v2735_v55 = vmul.f32 %v3528_v58, %v5670_v12  ;;  %v2778_v0 = vmul.f32 %v3540_v60, %v5677_v54  ;;  %v2575_v23 = vmul.f32 %v5614_v40, %v5582_v8  ;;  %v2611_v25 = vmul.f32 %v3496_v31, %v5628_v26 }
 0x15f   : > { %v2511_v17 = vadd.f32 %v3487_v43, %v2467_v37  ;;  %v2665_v14 = vsub.f32 %v2652_v2, %v3512_v44  ;;  %v2791_v46 = vmul.f32 %v3542_v51, %v5680_v59  ;;  %v2623_v27 = vmul.f32 %v5637_v47, %v5593_v33  ;;  %v3493_v33 = vld [vmem:[%s3971_s10 + $0x14] sm:$0x3] }
 0x160   : > { %2545 = vrot.lane.b32.xlu0 %v2542_v57, %s3791_s9  ;;  %v3530_v1 = vrot.slane %v2722_v41, 9  ;;  %v2577_v24 = vadd.f32 %v2575_v23, %v2571_v52  ;;  %v3502_v45 = vrot.slane %v2611_v25, 9  ;;  %v2667_v63 = vmul.f32 %v3508_v3, %v5641_v6  ;;  %v2582_v3 = vld [vmem:[%s3971_s10 + $0x8] sm:$0x6] }
 0x161   : > { %v2523_v36 = vadd.f32 %v3489_v20, %v2511_v17  ;;  %v2700_v8 = vadd.f32 %v2698_v42, %v2665_v14  ;;  %v3504_v13 = vrot.slane %v2623_v27, 9  ;;  %v2679_v31 = vmul.f32 %v5648_v11, %v5618_v15  ;;  %v3497_v15 = vld [vmem:[%s3971_s10 + $0x14] sm:$0x6]  ;;  %v3523_v17 = vld [vmem:[%s3971_s10 + $0x2c] sm:$0x3]  ;;  %v5728_v27 = vpop.permute.xlu0 %693 }
 0x162   : > { %v2621_v21 = vadd.f32 %v3502_v45, %v2577_v24  ;;  %v3514_v29 = vrot.slane %v2667_v63, 10  ;;  %v3532_v28 = vrot.slane %v2735_v55, 9  ;;  %v3544_v18 = vrot.slane %v2778_v0, 10  ;;  %v3527_v14 = vld [vmem:[%s3971_s10 + $0x20] sm:$0x6] }
 0x163   : > { %2547 = vrot.lane.b32.xlu1 %v2523_v36, %s3791_s9  ;;  %v2705_v61 = vsub.f32 %v2700_v8, %v2703_v35  ;;  %v3546_v32 = vrot.slane %v2791_v46, 10  ;;  %v3516_v48 = vrot.slane %v2679_v31, 10  ;;  %v2707_v53 = vmul.f32 %v3522_v30, %v5660_v39  ;;  %v5722_v35 = vld [vmem:[%s3971_s10 + $0x20] sm:$0x3]  ;;  %v5726_v46 = vpop.permute.xlu1 %697  ;;  %s5800_s9 = sld [smem:[#allocation2 + $0x1c]] }
 0x164   : > { %v2633_v43 = vadd.f32 %v3504_v13, %v2621_v21  ;;  %v2563_v20 = vmul.f32 %v5590_v34, %v2558_v62  ;;  %v2747_v5 = vmul.f32 %v3528_v58, %v5666_v7  ;;  %v2759_v57 = vmul.f32 %v3526_v49, %v5670_v12  ;;  %v3529_v13 = vld [vmem:[%s3971_s10 + $0x2c] sm:$0x6] }
 0x165   : > { %v2732_v9 = vadd.f32 %v3530_v1, %v2705_v61  ;;  %v2568_v56 = vmul.f32 %v3493_v33, %v5614_v40  ;;  %v2803_v22 = vmul.f32 %v3542_v51, %v5677_v54  ;;  %v5713_v19 = vmul.f32 %v3540_v60, %v5680_v59 }
 0x166   : > { %v2677_v10 = vadd.f32 %v3514_v29, %v2633_v43  ;;  %v2587_v30 = vmul.f32 %v5628_v26, %v2582_v3  ;;  %v2600_v58 = vmul.f32 %v3497_v15, %v5637_v47  ;;  %v2643_v49 = vmul.f32 %v5641_v6, %v2638_v16  ;;  %v3541_v43 = vld [vmem:[%s3971_s10 + $0x20] sm:$0xc] }
 0x167   : > { %v2745_v44 = vsub.f32 %v2732_v9, %v3532_v28  ;;  %v2570_v41 = vsub.f32 %v2563_v20, %v2568_v56  ;;  %v2711_v37 = vmul.f32 %v5655_v38, %v5663_v4  ;;  %v2656_v51 = vmul.f32 %v3509_v50, %v5648_v11  ;;  %v3543_v56 = vld [vmem:[%s3971_s10 + $0x2c] sm:$0xc] }
 0x168   : > { %v2689_v52 = vadd.f32 %v3516_v48, %v2677_v10  ;;  %v3499_v2 = vrot.slane %v2587_v30, 9  ;;  %v3501_v60 = vrot.slane %v2600_v58, 9  ;;  %v3534_v0 = vrot.slane %v2747_v5, 9 }
 0x169   : > { %v2788_v42 = vadd.f32 %v3544_v18, %v2745_v44  ;;  %v3511_v25 = vrot.slane %v2643_v49, 10  ;;  %v3536_v38 = vrot.slane %v2759_v57, 9  ;;  %v3548_v24 = vrot.slane %v2803_v22, 10 }
 0x16a   : > { %v2709_v55 = vadd.f32 %v2707_v53, %v2689_v52  ;;  %v2597_v23 = vadd.f32 %v3499_v2, %v2570_v41  ;;  %v3550_v45 = vrot.slane %v5713_v19, 10  ;;  %v3513_v8 = vrot.slane %v2656_v51, 10  ;;  %v5747_v19 = vpop.permute.xlu1 %709 }
 0x16b   : > { %v2801_v1 = vsub.f32 %v2788_v42, %v3546_v32  ;;  %v2572_v31 = vmul.f32 %v3493_v33, %v5590_v34  ;;  %v2699_v29 = vmul.f32 %v5722_v35, %v5660_v39  ;;  %v2704_v61 = vmul.f32 %v3523_v17, %v5663_v4 }
 0x16c   : > { %v2713_v63 = vadd.f32 %v2711_v37, %v2709_v55  ;;  %v2610_v36 = vsub.f32 %v2597_v23, %v3501_v60  ;;  %v2723_v28 = vmul.f32 %v3527_v14, %v5666_v7  ;;  %v2576_v48 = vmul.f32 %v5614_v40, %v2558_v62  ;;  %v5749_v40 = vpop.permute.xlu0 %996 }
 0x16d   : > { %v2829_v21 = vcombine.high %v2801_v1, %v2801_v1  ;;  %2830 = vrot.lane.b32.xlu0 %v2801_v1, %s3792_s5  ;;  %v2612_v53 = vmul.f32 %v3497_v15, %v5628_v26  ;;  %v2736_v34 = vmul.f32 %v3529_v13, %v5670_v12  ;;  %v2624_v33 = vmul.f32 %v5637_v47, %v2582_v3 }
 0x16e   : > { %v2757_v18 = vadd.f32 %v3534_v0, %v2713_v63  ;;  %v2653_v32 = vadd.f32 %v3511_v25, %v2610_v36  ;;  %v2668_v20 = vmul.f32 %v3509_v50, %v5641_v6  ;;  %v2680_v9 = vmul.f32 %v5648_v11, %v2638_v16  ;;  %v5756_v42 = vpop.permute.xlu1 %713 }
 0x16f   : > { %2832 = vrot.lane.b32.xlu1 %v2829_v21, %s3792_s5  ;;  %v2578_v10 = vadd.f32 %v2576_v48, %v2572_v31  ;;  %v3503_v22 = vrot.slane %v2612_v53, 9  ;;  %v3531_v26 = vrot.slane %v2723_v28, 9  ;;  %v2779_v62 = vmul.f32 %v3541_v43, %v5677_v54 }
 0x170   : > { %v2769_v5 = vadd.f32 %v3536_v38, %v2757_v18  ;;  %v2666_v57 = vsub.f32 %v2653_v32, %v3513_v8  ;;  %v3505_v15 = vrot.slane %v2624_v33, 9  ;;  %v3515_v3 = vrot.slane %v2668_v20, 10  ;;  %v5758_v60 = vpop.permute.xlu0 %1000 }
 0x171   : > { %v2622_v47 = vadd.f32 %v3503_v22, %v2578_v10  ;;  %v3533_v6 = vrot.slane %v2736_v34, 9  ;;  %v2792_v11 = vmul.f32 %v3543_v56, %v5680_v59  ;;  %v3517_v58 = vrot.slane %v2680_v9, 10 }
 0x172   : > { %v2813_v30 = vadd.f32 %v3548_v24, %v2769_v5  ;;  %v2701_v44 = vadd.f32 %v2699_v29, %v2666_v57  ;;  %v3545_v49 = vrot.slane %v2779_v62, 10  ;;  %v2708_v2 = vmul.f32 %v3523_v17, %v5660_v39  ;;  %v5765_v8 = vpop.permute.xlu1 %1014  ;;  %v255_v57 = vld [vmem:[%s3971_s10] sm:$0x33] }
 0x173   : > { %v2634_v41 = vadd.f32 %v3505_v15, %v2622_v47  ;;  %v2748_v51 = vmul.f32 %v3529_v13, %v5666_v7  ;;  %v3547_v55 = vrot.slane %v2792_v11, 10  ;;  %v2712_v25 = vmul.f32 %v5722_v35, %v5663_v4 }
 0x174   : > { %v2825_v16 = vadd.f32 %v3550_v45, %v2813_v30  ;;  %v2706_v50 = vsub.f32 %v2701_v44, %v2704_v61  ;;  %v2760_v1 = vmul.f32 %v3527_v14, %v5670_v12  ;;  %v2804_v63 = vmul.f32 %v3543_v56, %v5677_v54  ;;  %v5767_v13 = vpop.permute.xlu0 %1303  ;;  %v3021_v56 = vld [vmem:[%s3971_s10 + $0xc] sm:$0x33] }
 0x175   : > { %v2678_v37 = vadd.f32 %v3515_v3, %v2634_v41  ;;  %v3535_v45 = vrot.slane %v2748_v51, 9  ;;  %v2816_v36 = vmul.f32 %v3541_v43, %v5680_v59  ;;  %v258_v10 = vstv %s253_s6  ;;  %s2909_s6 = sshll.u32 %s213_s23, 4  ;;  %s6012_s6 = int_to_ptr.vmem [resolvable:$true] %s2909_s6 }
 0x176   : > { %2848 = vrot.lane.b32.xlu1 %v2825_v16, %s3792_s5  ;;  %v2733_v52 = vadd.f32 %v3531_v26, %v2706_v50  ;;  %v3537_v7 = vrot.slane %v2760_v1, 9  ;;  %v3549_v4 = vrot.slane %v2804_v63, 10  ;;  %v2847_v35 = vcombine.high %v2825_v16, %v2825_v16  ;;  %v5771_v54 = vpop.permute.xlu1 %1018  ;;  %v270_v26 = vld [vmem:[%s3971_s10] sm:$0x66]  ;;  %v3031_v1 = vld [vmem:[%s3971_s10 + $0xc] sm:$0xcc] }
 0x177   : > { %v2690_v23 = vadd.f32 %v3517_v58, %v2678_v37  ;;  %v3551_v14 = vrot.slane %v2816_v36, 10  ;;  %v261_v22 = vstv %s3020_s7  ;;  %v272_v62 = vstv %s3022_s8 }
 0x178   : > { %v2746_v0 = vsub.f32 %v2733_v52, %v3533_v6  ;;  %v5773_v29 = vpop.permute.xlu0 %1307  ;;  %v259_v44 = vmul.f32 %v258_v10, %v255_v57  ;;  %v262_v47 = vmul.f32 %v3021_v56, %v261_v22  ;;  %v273_v3 = vmul.f32 %v272_v62, %v270_v26  ;;  %v3024_v6 = vld [vmem:[%s3971_s10 + $0xc] sm:$0x66]  ;;  %v300_v52 = vld [vmem:[%s3971_s10] sm:$0xcc] }
 0x179   : > { %v2710_v24 = vadd.f32 %v2708_v2, %v2690_v23  ;;  %v279_v11 = vstv %s5800_s9  ;;  %v302_v37 = vstv %s5805_s26  ;;  %v264_v2 = vmul.f32 %v3021_v56, %v258_v10  ;;  %v3038_v56 = vld [vmem:[%s3971_s10 + $0x18] sm:$0x33]  ;;  %s2896_s26 = scalar_lea.sflag [#allocation4], %s3967_s19 }
 0x17a   : > { %v2789_v38 = vadd.f32 %v3545_v49, %v2746_v0  ;;  %v5776_v59 = vpop.permute.xlu1 %1321  ;;  %v263_v16 = vsub.f32 %v259_v44, %v262_v47  ;;  %v3025_v50 = vrot.slane %v273_v3, 9  ;;  %v280_v41 = vmul.f32 %v3024_v6, %v279_v11  ;;  %v3039_v3 = vld [vmem:[%s3971_s10 + $0x24] sm:$0x33] }
 0x17b   : > { %v2714_v17 = vadd.f32 %v2712_v25, %v2710_v24  ;;  %v266_v51 = vmul.f32 %v261_v22, %v255_v57  ;;  %v303_v25 = vmul.f32 %v302_v37, %v300_v52  ;;  %v334_v10 = vstv %s5823_s17 }
 0x17c   : > { %v2802_v39 = vsub.f32 %v2789_v38, %v3547_v55  ;;  %v5778_v28 = vpop.permute.xlu0 %695  ;;  %v286_v55 = vmul.f32 %v3024_v6, %v272_v62  ;;  %v278_v0 = vadd.f32 %v3025_v50, %v263_v16  ;;  %v3026_v23 = vrot.slane %v280_v41, 9 }
 0x17d   : > { %v2758_v31 = vadd.f32 %v3535_v45, %v2714_v17  ;;  %v309_v38 = vstv %s5813_s4  ;;  %v267_v63 = vadd.f32 %v266_v51, %v264_v2  ;;  %v292_v17 = vmul.f32 %v279_v11, %v270_v26  ;;  %v3042_v11 = vld [vmem:[%s3971_s10 + $0x18] sm:$0x66]  ;;  %s3704_s4 = scalar_lea.vmem %s6012_s6, 128 }
 0x17e   : > { %2834 = vrot.lane.b32.xlu0 %v2802_v39, %s3792_s5  ;;  %v5780_v18 = vpop.permute.xlu1 %1325  ;;  %v3027_v39 = vrot.slane %v286_v55, 9  ;;  %v3032_v36 = vrot.slane %v303_v25, 10  ;;  %v322_v62 = vmul.f32 %v309_v38, %v300_v52  ;;  %v335_v47 = vmul.f32 %v3038_v56, %v334_v10  ;;  %p3705_p3 = scmp.ne.s32.totalorder %s6012_s6, %s3704_s4 }
 0x17f   : > { %v2770_v12 = vadd.f32 %v3537_v7, %v2758_v31  ;;  %v285_v7 = vsub.f32 %v278_v0, %v3026_v23  ;;  %v310_v31 = vmul.f32 %v3031_v1, %v309_v38  ;;  %v337_v6 = vstv %s5829_s30  ;;  %v3043_v0 = vld [vmem:[%s3971_s10 + $0x24] sm:$0x66] }
 0x180   : > { %v5782_v32 = vpop.permute.xlu0 %711  ;;  %v348_v16 = vstv %s5831_s29  ;;  %v3035_v2 = vrot.slane %v322_v62, 10  ;;  %v338_v55 = vmul.f32 %v3039_v3, %v337_v6  ;;  %v355_v23 = vstv %s5839_s20  ;;  %v3051_v62 = vld [vmem:[%s3971_s10 + $0x24] sm:$0xcc]  ;;  %p3706_p8 = pnand %p3705_p3, %p6113_p0 }
 0x181   : > { %v2814_v21 = vadd.f32 %v3549_v4, %v2770_v12  ;;  %v291_v4 = vadd.f32 %v3027_v39, %v267_v63  ;;  %v316_v12 = vmul.f32 %v3031_v1, %v302_v37  ;;  %v349_v52 = vmul.f32 %v3042_v11, %v348_v16 }
 0x182   : > { %2850 = vrot.lane.b32.xlu0 %v2847_v35, %s3792_s5  ;;  %v5784_v43 = vpop.permute.xlu1 %998  ;;  %v3028_v35 = vrot.slane %v292_v17, 9  ;;  %v340_v1 = vmul.f32 %v3039_v3, %v334_v10  ;;  %v356_v39 = vmul.f32 %v3043_v0, %v355_v23  ;;  %vm1002_vm1 = vcmask 1031168   ;;  %p3707_p10 = pneg %p3706_p8 }
 0x183   : > { %v2826_v61 = vadd.f32 %v3551_v14, %v2814_v21  ;;  %v308_v14 = vadd.f32 %v3032_v36, %v285_v7  ;;  %v3033_v21 = vrot.slane %v310_v31, 10  ;;  %v3034_v26 = vrot.slane %v316_v12, 10  ;;  %v3050_v36 = vld [vmem:[%s3971_s10 + $0x18] sm:$0xcc]  ;;  %s5965_s10 = sld [smem:[#allocation7]] }
 0x184   : > { %v5786_v48 = vpop.permute.xlu0 %1016  ;;  %v297_v22 = vadd.f32 %v3028_v35, %v291_v4  ;;  %v3044_v63 = vrot.slane %v349_v52, 9  ;;  %v378_v31 = vstv %s5845_s22  ;;  %v214_v4 = vlaneseq }
 0x185   : > { %2852 = vrot.lane.b32.xlu1 %v2826_v61, %s3792_s5  ;;  %v315_v44 = vsub.f32 %v308_v14, %v3033_v21  ;;  %v342_v12 = vmul.f32 %v3038_v56, %v337_v6  ;;  %v362_v14 = vmul.f32 %v3043_v0, %v348_v16  ;;  %v392_v16 = vmul.f32 %v3051_v62, %v378_v31  ;;  %s3561_s5 = sshll.u32 %s3839_s16, 6  ;;  %s3794_s16 = smov [#allocation9]  }
 0x186   : > { %v5788_v53 = vpop.permute.xlu1 %1305  ;;  %v321_v37 = vadd.f32 %v3034_v26, %v297_v22  ;;  %v3045_v22 = vrot.slane %v356_v39, 9  ;;  %v379_v26 = vmul.f32 %v3050_v36, %v378_v31  ;;  %v215_v10 = vand.u32 127, %v214_v4  ;;  %s6010_s9 = scalar_lea.hbm %s6059_s3, %s3561_s5  ;;  %s3708_s17 = sshll.u32 %s3794_s16, 4  ;;  %s3709_s17 = int_to_ptr.vmem [resolvable:$false] %s3708_s17 }
 0x187   : > { %v336_v51 = vadd.f32 %v335_v47, %v315_v44  ;;  %v385_v44 = vstv %s5853_s28  ;;  %vm699_vm3 = vcmask 1039360   ;;  %vm1309_vm4 = vcmask 916480   ;;  %s3710_s30 = scalar_lea.vmem %s3709_s17, 256  ;;  %p3711_p6 = scmp.lt.s32.totalorder %s6012_s6, %s3709_s17 }
 0x188   : > { %v5790_v34 = vpop.permute.xlu0 %1323  ;;  %v327_v25 = vadd.f32 %v3035_v2, %v321_v37  ;;  %v3046_v2 = vrot.slane %v362_v14, 9  ;;  %v3052_v52 = vrot.slane %v379_v26, 10  ;;  %v398_v4 = vmul.f32 %v3050_v36, %v385_v44  ;;  %p3712_p12 = scmp.lt.s32.totalorder %s3710_s30, %s3704_s4 }
 0x189   : > { %v339_v38 = vsub.f32 %v336_v51, %v338_v55  ;;  %v368_v51 = vmul.f32 %v3042_v11, %v355_v23  ;;  %v3793_v11 = vmov 0.0   ;;  %vm1919_vm7 = vcmask 900096  }
 0x18a   : > { %v5792_v33 = vpop.permute.xlu1 %1612  ;;  %v341_v35 = vadd.f32 %v340_v1, %v327_v25  ;;  %v216_v25 = vadd.s32 128, %v215_v10  ;;  %v3055_v26 = vrot.slane %v398_v4, 10  ;;  %vm1616_vm8 = vcmask 908288   ;;  %p3713_p7 = por %p3712_p12, %p3711_p6 }
 0x18b   : > { %v354_v21 = vadd.f32 %v3044_v63, %v339_v38  ;;  %v3047_v6 = vrot.slane %v368_v51, 9  ;;  %vm2226_vm9 = vcmask 785408   ;;  %vm2836_vm10 = vcmask 769024  }
 0x18c   : > { %v5794_v20 = vpop.permute.xlu0 %1610  ;;  %v343_v37 = vadd.f32 %v342_v12, %v341_v35  ;;  %v228_v39 = vand.u32 15, %v216_v25  ;;  %v3054_v12 = vrot.slane %v392_v16, 10  ;;  %v1021_v25 = vsel %vm1002_vm1, %v5786_v48, %v5771_v54  ;;  %p3714_p9 = pnand %p3713_p7, %p3707_p10 }
 0x18d   : > { %v361_v55 = vsub.f32 %v354_v21, %v3045_v22  ;;  %vm2533_vm11 = vcmask 777216  }
 0x18e   : > { %v5796_v9 = vpop.permute.xlu1 %1626  ;;  %v367_v56 = vadd.f32 %v3046_v2, %v343_v37  ;;  %vm242_vm5 = vcmp.ge.s32.totalorder %v228_v39, 1  ;;  %vm248_vm6 = vcmp.le.s32.totalorder %v228_v39, 14  ;;  %v701_v2 = vsel %vm699_vm3, %v5778_v28, %v5726_v46 }
 0x18f   : > { %v384_v0 = vadd.f32 %v3052_v52, %v361_v55  ;;  %v5889_v37 = vsel %vm242_vm5, 1.0, %v3793_v11  ;;  %v5895_v51 = vsel %vm248_vm6, 1.0, %v3793_v11  ;;  %v1004_v55 = vsel %vm1002_vm1, %v5784_v43, %v5758_v60 }
 0x190   : > { %v5798_v5 = vpop.permute.xlu0 %1614  ;;  %v373_v35 = vadd.f32 %v3047_v6, %v367_v56  ;;  %v716_v60 = vsel %vm699_vm3, %v5782_v32, %v5756_v42  ;;  %v1008_v6 = vmul.f32 %v5895_v51, %v1004_v55  ;;  %v1327_v42 = vsel %vm1309_vm4, %v5776_v59, %v5790_v34 }
 0x191   : > { %v1617_v59 = vsel %vm1616_vm8, %v5794_v20, %v5792_v33 }
 0x192   : > { %v5807_v15 = vpop.permute.xlu1 %1630 }
 0x193   : > { %6109 = vst [vmem:[#allocation17_spill] sm:$0xff] %v5807_v15  ;;  %v386_v15 = vmul.f32 %v3051_v62, %v385_v44  ;;  %v700_v44 = vsel %vm699_vm3, %v5728_v27, %v5778_v28  ;;  %v1020_v27 = vsel %vm1002_vm1, %v5765_v8, %v5786_v48  ;;  %v715_v28 = vsel %vm699_vm3, %v5747_v19, %v5782_v32 }
 0x194   : > { %v5809_v30 = vpop.permute.xlu0 %1628  ;;  %v1311_v48 = vsel %vm1309_vm4, %v5788_v53, %v5773_v29  ;;  %v1025_v19 = vmul.f32 %v5895_v51, %v1021_v25 }
 0x195   : > { %v3053_v1 = vrot.slane %v386_v15, 10  ;;  %v1003_v15 = vsel %vm1002_vm1, %v5749_v40, %v5784_v43  ;;  %v1315_v4 = vmul.f32 %v5889_v37, %v1311_v48 }
 0x196   : > { %v5815_v58 = vpop.permute.xlu1 %1915 }
 0x197   : > { %v391_v14 = vsub.f32 %v384_v0, %v3053_v1 }
 0x198   : > { %v5817_v49 = vpop.permute.xlu0 %1913 }
 0x199   : > { %v405_v62 = vcombine.high %v391_v14, %v391_v14  ;;  %v1920_v1 = vsel %vm1919_vm7, %v5817_v49, %v5815_v58  ;;  %v1618_v49 = vsel %vm1616_vm8, %v5792_v33, %v5798_v5 }
 0x19a   : > { %v5825_v24 = vpop.permute.xlu1 %1931 }
 0x19b   : > { %v408_v46 = vmul.f32 %v5889_v37, %v405_v62  ;;  %v1632_v62 = vsel %vm1616_vm8, %v5796_v9, %v5809_v30 }
 0x19c   : > { %v5827_v45 = vpop.permute.xlu0 %1917 }
 0x19d   : > { %v1921_v29 = vsel %vm1919_vm7, %v5815_v58, %v5827_v45 }
 0x19e   : > { %v5833_v61 = vpop.permute.xlu1 %1935 }
 0x1a0   : > { %v5835_v57 = vpop.permute.xlu0 %1933 }
 0x1a2   : > { %v5847_v50 = vpop.permute.xlu1 %2222 }
 0x1a4   : > { %v5849_v41 = vpop.permute.xlu0 %2220 }
 0x1a5   : > { %v2227_v58 = vsel %vm2226_vm9, %v5849_v41, %v5847_v50 }
 0x1a6   : > { %v5855_v17 = vpop.permute.xlu1 %2238 }
 0x1a7   : > { %6110 = vst [vmem:[#allocation19_spill] sm:$0xff] %v5855_v17  ;;  %v221_v17 = vand.u32 15, %v215_v10  ;;  %v1310_v10 = vsel %vm1309_vm4, %v5767_v13, %v5788_v53  ;;  %v705_v53 = vadd.f32 %v701_v2, %v408_v46  ;;  %v6112_v46 = vld [vmem:[#allocation17_spill] sm:$0xff] }
 0x1a9   : > { %vm241_vm0 = vcmp.ge.s32.totalorder %v221_v17, 1  ;;  %vm247_vm2 = vcmp.le.s32.totalorder %v221_v17, 14  ;;  %v397_v17 = vadd.f32 %v3054_v12, %v373_v35  ;;  %v1328_v35 = vsel %vm1309_vm4, %v5790_v34, %v5780_v18 }
 0x1aa   : > { %v5871_v23 = vsel %vm241_vm0, 1.0, %v3793_v11  ;;  %v5873_v31 = vsel %vm247_vm2, 1.0, %v3793_v11  ;;  %v1010_v45 = vadd.f32 %v1008_v6, %v705_v53 }
 0x1ab   : > { %v5857_v7 = vpop.permute.xlu0 %2224  ;;  %v407_v22 = vmul.f32 %v5871_v23, %v391_v14  ;;  %v1007_v40 = vmul.f32 %v5873_v31, %v1003_v15  ;;  %v403_v13 = vadd.f32 %v3055_v26, %v397_v17  ;;  %v1314_v56 = vmul.f32 %v5871_v23, %v1310_v10 }
 0x1ac   : > { %v1024_v16 = vmul.f32 %v5873_v31, %v1020_v27  ;;  %v1331_v12 = vmul.f32 %v5871_v23, %v1327_v42  ;;  %v1924_v11 = vmul.f32 %v5873_v31, %v1920_v1  ;;  %v1925_v14 = vmul.f32 %v5895_v51, %v1921_v29 }
 0x1ad   : > { %v704_v52 = vadd.f32 %v700_v44, %v407_v22  ;;  %v412_v32 = vcombine.high %v403_v13, %v403_v13  ;;  %v414_v39 = vmul.f32 %v5871_v23, %v403_v13  ;;  %v1937_v22 = vsel %vm1919_vm7, %v5825_v24, %v5835_v57 }
 0x1ae   : > { %v2228_v33 = vsel %vm2226_vm9, %v5847_v50, %v5857_v7  ;;  %v1317_v41 = vadd.f32 %v1315_v4, %v1010_v45  ;;  %v2231_v17 = vmul.f32 %v5871_v23, %v2227_v58  ;;  %v1332_v26 = vmul.f32 %v5889_v37, %v1328_v35  ;;  %v6111_v27 = vld [vmem:[#allocation19_spill] sm:$0xff] }
 0x1af   : > { %v5865_v3 = vpop.permute.xlu0 %2240  ;;  %v1009_v54 = vadd.f32 %v1007_v40, %v704_v52  ;;  %v415_v18 = vmul.f32 %v5889_v37, %v412_v32  ;;  %v719_v5 = vadd.f32 %v715_v28, %v414_v39  ;;  %v1938_v44 = vsel %vm1919_vm7, %v5835_v57, %v5833_v61 }
 0x1b0   : > { %v1622_v7 = vadd.f32 %v1618_v49, %v1317_v41  ;;  %v2232_v40 = vmul.f32 %v5889_v37, %v2228_v33  ;;  %v1941_v55 = vmul.f32 %v5873_v31, %v1937_v22  ;;  %v2244_v9 = vsel %vm2226_vm9, %v6111_v27, %v5865_v3 }
 0x1b1   : > { %v1316_v0 = vadd.f32 %v1314_v56, %v1009_v54  ;;  %v1026_v50 = vadd.f32 %v1024_v16, %v719_v5  ;;  %v720_v2 = vadd.f32 %v716_v60, %v415_v18  ;;  %v1633_v28 = vsel %vm1616_vm8, %v5809_v30, %v6112_v46 }
 0x1b2   : > { %v1927_v52 = vadd.f32 %v1925_v14, %v1622_v7  ;;  %v2248_v54 = vmul.f32 %v5871_v23, %v2244_v9  ;;  %v1942_v32 = vmul.f32 %v5895_v51, %v1938_v44  ;;  %v2863_v39 = vstv %s5965_s10 }
 0x1b3   : > { %v5863_v47 = vpop.permute.xlu1 %2242  ;;  %v1621_v34 = vadd.f32 %v1617_v59, %v1316_v0  ;;  %v1333_v57 = vadd.f32 %v1331_v12, %v1026_v50  ;;  %v1027_v56 = vadd.f32 %v1025_v19, %v720_v2  ;;  %v2879_v18 = vstv %s5989_s11 }
 0x1b4   : > { %v2245_v19 = vsel %vm2226_vm9, %v5865_v3, %v5863_v47 }
 0x1b5   : > { %v1926_v10 = vadd.f32 %v1924_v11, %v1621_v34  ;;  %v1636_v6 = vadd.f32 %v1632_v62, %v1333_v57  ;;  %v1334_v42 = vadd.f32 %v1332_v26, %v1027_v56  ;;  %v2249_v4 = vmul.f32 %v5889_v37, %v2245_v19 }
 0x1b7   : > { %v2233_v13 = vadd.f32 %v2231_v17, %v1926_v10  ;;  %v1637_v29 = vadd.f32 %v1633_v28, %v1334_v42 }
 0x1b9   : > { %v1944_v35 = vadd.f32 %v1942_v32, %v1637_v29 }
 0x1bb   : > { %v2251_v14 = vadd.f32 %v2249_v4, %v1944_v35 }
 0x1bd   : > { %v5869_v63 = vpop.permute.xlu0 %2527 }
 0x1bf   : > { %v5867_v38 = vpop.permute.xlu1 %2529 }
 0x1c0   : > { %v2534_v61 = vsel %vm2533_vm11, %v5869_v63, %v5867_v38  ;;  %v2234_v63 = vadd.f32 %v2232_v40, %v1927_v52 }
 0x1c1   : > { %v2538_v48 = vadd.f32 %v2534_v61, %v2233_v13 }
 0x1c6   : > { %v5878_v21 = vpop.permute.xlu1 %2543 }
 0x1ce   : > { %v5880_v36 = vpop.permute.xlu0 %2531 }
 0x1cf   : > { %v2535_v60 = vsel %vm2533_vm11, %v5867_v38, %v5880_v36  ;;  %v1943_v38 = vadd.f32 %v1941_v55, %v1636_v6 }
 0x1d0   : > { %v2539_v36 = vadd.f32 %v2535_v60, %v2234_v63 }
 0x1d1   : > { %v2250_v47 = vadd.f32 %v2248_v54, %v1943_v38 }
 0x1d2   : > { %v5916_v43 = vpop.permute.xlu0 %2545 }
 0x1d3   : > { %v2549_v53 = vsel %vm2533_vm11, %v5878_v21, %v5916_v43 }
 0x1d4   : > { %v2553_v49 = vadd.f32 %v2549_v53, %v2250_v47 }
 0x1d5   : > { %v5914_v8 = vpop.permute.xlu1 %2547 }
 0x1d6   : > { %v2550_v21 = vsel %vm2533_vm11, %v5916_v43, %v5914_v8 }
 0x1d7   : > { %v2554_v22 = vadd.f32 %v2550_v21, %v2251_v14 }
 0x1df   : > { %v2831_v15 = vpop.permute.xlu0 %2830 }
 0x1e1   : > { %v2833_v20 = vpop.permute.xlu1 %2832 }
 0x1e2   : > { %v2837_v24 = vsel %vm2836_vm10, %v2831_v15, %v2833_v20 }
 0x1e3   : > { %v2841_v25 = vmul.f32 %v5873_v31, %v2837_v24 }
 0x1e5   : > { %v2843_v0 = vadd.f32 %v2841_v25, %v2538_v48 }
 0x1e7   : > { %v2864_v58 = vadd.f32 %v2863_v39, %v2843_v0 }
 0x1e8   : > { %v2849_v23 = vpop.permute.xlu1 %2848 }
 0x1f0   : > { %v2835_v16 = vpop.permute.xlu0 %2834 }
 0x1f1   : > { %v2838_v30 = vsel %vm2836_vm10, %v2833_v20, %v2835_v16 }
 0x1f2   : > { %v2842_v1 = vmul.f32 %v5895_v51, %v2838_v30 }
 0x1f4   : > { %v2844_v3 = vadd.f32 %v2842_v1, %v2539_v36  ;;  %v2851_v59 = vpop.permute.xlu0 %2850 }
 0x1f5   : > { %v2854_v12 = vsel %vm2836_vm10, %v2849_v23, %v2851_v59 }
 0x1f6   : > { %v2865_v45 = vadd.f32 %v2863_v39, %v2844_v3  ;;  %v2858_v11 = vmul.f32 %v5873_v31, %v2854_v12 }
 0x1f7   : > { %v2853_v20 = vpop.permute.xlu1 %2852 }
 0x1f8   : > { %v2868_v37 = vcombine.low %v2864_v58, %v2865_v45  ;;  %v2860_v15 = vadd.f32 %v2858_v11, %v2553_v49  ;;  %v2855_v34 = vsel %vm2836_vm10, %v2851_v59, %v2853_v20 }
 0x1f9   : > { %v2859_v33 = vmul.f32 %v5895_v51, %v2855_v34 }
 0x1fa   : > { %3552 = vst.sshfl [vmem:[%s213_s23] sm:$0x33 pattern:$0x76325410] %v2868_v37  ;;  %v2880_v5 = vadd.f32 %v2879_v18, %v2860_v15 }
 0x1fb   : > { %v2861_v31 = vadd.f32 %v2859_v33, %v2554_v22 }
 0x1fd   : > { %v2881_v41 = vadd.f32 %v2879_v18, %v2861_v31 }
 0x1ff   : > { %v2884_v8 = vcombine.low %v2880_v5, %v2881_v41 }
 0x201   : > { %3560 = vst.sshfl [vmem:[%s213_s23 + $0x4] sm:$0x33 pattern:$0x76325410] %v2884_v8 }
 0x202   : > { %3717 = shalt.err (!%p3714_p9)
}
 0x203   : > { %s3718_s29 = scalar_lea.hbm %s6010_s9, 128  ;;  %s3722_s28 = scalar_lea.hbm %s6059_s3, 256 }
 0x204   : > { %p3719_p2 = scmp.ne.s32.totalorder %s6010_s9, %s3718_s29  ;;  %p3723_p4 = scmp.lt.u32.totalorder %s6010_s9, %s6059_s3 }
 0x205   : > { %p3724_p5 = scmp.lt.u32.totalorder %s3722_s28, %s3718_s29  ;;  %p3726_p3 = scmp.lt.u32.totalorder %s3718_s29, %s6010_s9 }
 0x206   : > { %p3720_p11 = pnand %p3719_p2, %p6113_p0 }
 0x207   : > { %p3725_p13 = por %p3724_p5, %p3723_p4 }
 0x208   : > { %p3721_p1 = pneg %p3720_p11 }
 0x209   : > { %p3727_p8 = por %p3726_p3, %p3725_p13 }
 0x20b   : > { %p3728_p10 = pnand %p3727_p8, %p3721_p1 }
 0x20d   : > { %3731 = shalt.err (!%p3728_p10)
}
 0x20e   : > { %s3795_s27 = smov 64   ;;  %s3796_s23 = smov 128  }
 0x20f   : > { %s3797_s5 = smov 4  }
 0x210   : > { %3575 = dma.vmem_to_hbm [thread:$0]  (%p6113_p0), %s6012_s6, 128, %s6010_s9, %s2896_s26, %s3795_s27, %s3796_s23, %s3797_s5  }
 0x211 PF: > { %s2924_s7 = sand.u32 1, %s3766_s12   ;;  %p6114_p6 = scmp.ne.s32.totalorder %s6077_s25, 0 }
 0x212   : > { %p6115_p12 = scmp.ge.s32.totalorder %s3778_s15, 2  ;;  %s2925_s8 = scalar_lea.sflag [#allocation4], %s2924_s7 }
 0x214   : > { %p3589_p7 = pnand %p6115_p12, %p6114_p6 }
 0x216   : > { %3761 = dma.done.wait (!%p3589_p7), %s2925_s8, 128  }
 0x217   : > { %3763 = vsyncadd (!%p3589_p7), %s2925_s8, 4294967168  ;;  %p18_p9 = scmp.ge.s32.totalorder %s3843_s18, 4   ;;  %s6116_s12 = smov %s3770_s13 }
 0x218   : > { %s6117_s13 = smov %s3774_s14  ;;  %s6118_s14 = smov %s3855_s21 }
 0x219   : > { %s6119_s15 = smov %s3843_s18  ;;  %20 = sbr.rel (!%p18_p9) target bundleno = 7 (0x7), region = 91 }
 0x220   :  { %2930 = vsyncpa [#allocation3], 1 }
 0x221   :  { %2932 = vsyncpa [#allocation3 + $0x1], 1 }
 0x222   :  { %2933 = vsyncpa [#allocation4], 1 }
 0x223   :  { %2935 = vsyncpa [#allocation4 + $0x1], 1 }
 0x224   :  { %2936 = vsyncpa [#allocation5], 1 }
 0x225   :  { %2938 = vsyncpa [#allocation5 + $0x1], 1 }
 0x226   :  { %2939 = vsyncpa [#allocation6], 1 }
 0x227   :  { %2941 = vsyncpa [#allocation6 + $0x1], 1 }

</bundles_post_ra>
